<compile_context>
chip_gen: v6e
topology: v6e:2x2x1
jax: 0.10.0
libtpu: 0.0.40
codegen_flags: <defaults>
</compile_context>

<pallas_src>
import functools

import numpy as np
import jax
import jax.numpy as jnp
from jax import lax
from jax.experimental import pallas as pl
from jax.experimental.pallas import tpu as pltpu

SE_SIZE = np.pi / 2.0          # clampedSlopedDilatedSin(input, np.pi/2.0, 0.05)
COEFF = 0.05
LEAKY_SLOPE = 0.2
BN_EPS = 1e-5


def _clamped_sloped_dilated_sin(x):
    t = x - SE_SIZE / 2.0
    t = jnp.clip(t, -np.pi / 2.0, np.pi / 2.0 - SE_SIZE / 2.0)
    return jnp.sin(t + SE_SIZE / 2.0) + jnp.maximum(x, 0.0) * COEFF


def _round_up(x, m):
    return ((x + m - 1) // m) * m


# --------------------------------------------------------------------------- #
# Kernel: one grid step = B images, each a lane-dense (H, W*C) slab staged with
# its pad=1 zero-row halo into a shared bf16 VMEM scratch; each 3x3 conv is
# three accumulating per-dy MXU matmuls over all B padded images at once.
# --------------------------------------------------------------------------- #
def residual_conv_kernel(x_ref, w1_ref, s1_ref, t1_ref, w2_ref, s2_ref, t2_ref,
                         *rest, use_res, B, H, W, cin_pad, cout):
    if use_res:
        wres_ref, sr_ref, tr_ref, o_ref, xpad_ref, apad_ref = rest
    else:
        o_ref, xpad_ref, apad_ref = rest

    f32, bf16 = jnp.float32, jnp.bfloat16
    Win = W * cin_pad
    Wc = W * cout
    P = H + 2                            # rows per padded image block
    M_img = B * P                        # rows actually holding image data
    Mout = xpad_ref.shape[0] - 2         # matmul M (rounded up to 8 host-side)
    tail = (Mout + 2) - M_img            # alignment-tail rows (never stored)

    # ---- stage the B images into the bf16 row-padded scratch ----------------
    # Halo / tail rows are re-zeroed every step so megacore grid sharding stays
    # correct (each core's scratch persists across its own steps only).
    zin = jnp.zeros((1, Win), bf16)
    for b in range(B):
        r0 = b * P
        xpad_ref[r0:r0 + 1, :] = zin
        xpad_ref[r0 + H + 1:r0 + H + 2, :] = zin
        xpad_ref[r0 + 1:r0 + 1 + H, :] = x_ref[b].astype(bf16)
    if tail > 0:
        xpad_ref[M_img:M_img + tail, :] = jnp.zeros((tail, Win), bf16)

    # ---- conv1 (3x3, pad 1, no bias): 3 accumulating per-dy MXU matmuls -----
    acc1 = jnp.dot(xpad_ref[0:Mout, :], w1_ref[0], preferred_element_type=f32)
    acc1 = acc1 + jnp.dot(xpad_ref[1:1 + Mout, :], w1_ref[1],
                          preferred_element_type=f32)
    acc1 = acc1 + jnp.dot(xpad_ref[2:2 + Mout, :], w1_ref[2],
                          preferred_element_type=f32)
    # folded BN1 + clampedSlopedDilatedSin (f32 VPU/EUP; the per-image boundary
    # rows are junk but are never stored anywhere that matters)
    act = _clamped_sloped_dilated_sin(acc1 * s1_ref[...] + t1_ref[...])

    # ---- stage the activation the same way for conv2 ------------------------
    zout = jnp.zeros((1, Wc), bf16)
    for b in range(B):
        r0 = b * P
        apad_ref[r0:r0 + 1, :] = zout
        apad_ref[r0 + H + 1:r0 + H + 2, :] = zout
        apad_ref[r0 + 1:r0 + 1 + H, :] = act[r0:r0 + H, :].astype(bf16)
    if tail > 0:
        apad_ref[M_img:M_img + tail, :] = jnp.zeros((tail, Wc), bf16)

    # ---- conv2 (3x3, pad 1; bias folded into the BN2 shift) + folded BN2 ----
    acc2 = jnp.dot(apad_ref[0:Mout, :], w2_ref[0], preferred_element_type=f32)
    acc2 = acc2 + jnp.dot(apad_ref[1:1 + Mout, :], w2_ref[1],
                          preferred_element_type=f32)
    acc2 = acc2 + jnp.dot(apad_ref[2:2 + Mout, :], w2_ref[2],
                          preferred_element_type=f32)
    y2 = acc2 * s2_ref[...] + t2_ref[...]

    # ---- residual: block-diagonal 1x1 conv + BN when nin != nout ------------
    if use_res:
        xflat = x_ref[...].reshape(B * H, Win).astype(bf16)
        res = jnp.dot(xflat, wres_ref[...], preferred_element_type=f32)
        res = res * sr_ref[...] + tr_ref[...]

    # ---- add residual + leaky_relu(., 0.2); store only the valid rows -------
    for b in range(B):
        y_b = y2[b * P:b * P + H, :]
        if use_res:
            r_b = res[b * H:(b + 1) * H, :]
        else:
            r_b = x_ref[b]                       # identity residual: cin == cout
        v = y_b + r_b
        o_ref[b] = jnp.where(v >= 0.0, v, LEAKY_SLOPE * v)


# --------------------------------------------------------------------------- #
# Host-side (one-time) parameter preprocessing.
# --------------------------------------------------------------------------- #
def bn_fold(gamma, beta, rm, rv):
    scale = gamma / jnp.sqrt(rv + BN_EPS)
    shift = beta - rm * scale
    return scale, shift


def toeplitz_conv3x3_per_dy(w_hwio, W_img, cin_pad):
    """(3,3,cin,cout) HWIO -> three per-dy block-Toeplitz slabs
    (3, W*cin_pad, W*cout) for a pad=1 conv on the lane-dense layout.
    Out-of-range column taps (the column halo) simply have no entry; channels
    >= cin (lane padding) stay zero."""
    w = np.asarray(w_hwio, np.float32)
    _, _, cin, cout = w.shape
    big = np.zeros((3, W_img * cin_pad, W_img * cout), np.float32)
    for dy in range(3):
        for wcol in range(W_img):              # output column
            for dx in range(3):
                j = wcol + dx - 1              # input column for this tap
                if 0 <= j < W_img:             # out-of-range taps = zero pad
                    big[dy, j * cin_pad:j * cin_pad + cin,
                        wcol * cout:(wcol + 1) * cout] = w[dy, dx]
    return big


def blockdiag_1x1(wres, W_img, cin_pad):
    """(cin, cout) 1x1-conv weight -> block-diagonal (W*cin_pad, W*cout)."""
    w = np.asarray(wres, np.float32)
    cin, cout = w.shape
    big = np.zeros((W_img * cin_pad, W_img * cout), np.float32)
    for wcol in range(W_img):
        big[wcol * cin_pad:wcol * cin_pad + cin,
            wcol * cout:(wcol + 1) * cout] = w
    return big


def init_params(key, nin, nout):
    ks = jax.random.split(key, 16)

    def bn(k0, k1, k2, k3):
        return dict(gamma=1.0 + 0.1 * jax.random.normal(k0, (nout,), jnp.float32),
                    beta=0.1 * jax.random.normal(k1, (nout,), jnp.float32),
                    rm=0.1 * jax.random.normal(k2, (nout,), jnp.float32),
                    rv=1.0 + 0.1 * jnp.abs(jax.random.normal(k3, (nout,), jnp.float32)))

    return {
        'w1': 0.2 * jax.random.normal(ks[0], (3, 3, nin, nout), jnp.float32),   # HWIO
        'bn1': bn(ks[1], ks[2], ks[3], ks[4]),
        'w2': 0.2 * jax.random.normal(ks[5], (3, 3, nout, nout), jnp.float32),  # HWIO
        'b2': 0.1 * jax.random.normal(ks[6], (nout,), jnp.float32),
        'bn2': bn(ks[7], ks[8], ks[9], ks[10]),
        'wres': 0.2 * jax.random.normal(ks[11], (nin, nout), jnp.float32),      # 1x1 conv
        'bnres': bn(ks[12], ks[13], ks[14], ks[15]),
    }


def _choose_batch_block(N, H, target_rows=256, min_grid_steps=2):
    """Images per grid step: aim for ~target_rows MXU rows per conv matmul
    (256 fills the v6e/v7x MXU height; 128 already saturates v5e), prefer a B
    with zero batch padding, and keep >= 2 grid steps for the v7x megacore
    whenever that does not starve the MXU below ~128 rows."""
    rows_per_image = H + 2
    bmax = max(1, min(N, (target_rows // rows_per_image) or 1))
    B = bmax
    for b in range(bmax, max(0, bmax // 2), -1):       # prefer no batch padding
        if N % b == 0:
            B = b
            break
    while (B > 1 and -(-N // B) < min_grid_steps
           and (B // 2) * rows_per_image >= 128):
        B //= 2
    return B


# --------------------------------------------------------------------------- #
# Wrapper.
# --------------------------------------------------------------------------- #
def residual_conv_forward(x_nchw, params, nin, nout, batch_block=None):
    N, _, H, W = x_nchw.shape
    use_res = (nin != nout)

    # Pad input channels so W*Cin is a full multiple of 128 lanes (only when
    # the residual is a 1x1 conv; padding an identity residual would break
    # channel alignment with the output).  Padded channels have zero weights.
    cin_pad = nin
    if use_res and (W * nin) % 128 != 0 and 128 % W == 0:
        step = 128 // W
        cin_pad = int(-(-nin // step) * step)
    Win, Wc = W * cin_pad, W * nout

    B = batch_block if batch_block is not None else _choose_batch_block(N, H)
    B = max(1, min(int(B), N))
    Npad = -(-N // B) * B
    grid = (Npad // B,)
    scr_rows = _round_up(B * (H + 2) - 2, 8) + 2        # aligned matmul M + halo

    # Fold BatchNorms (inference mode) and the conv2 bias.
    s1, t1 = bn_fold(**params['bn1'])
    s2, t2 = bn_fold(**params['bn2'])
    t2 = t2 + params['b2'] * s2              # (acc + b)*s + t == acc*s + (b*s + t)

    def lane(v):                             # (cout,) -> (1, W*cout) lane vector
        return jnp.tile(v.astype(jnp.float32), W).reshape(1, Wc)

    # Structured bf16 MXU weights (per-dy block-Toeplitz / block-diagonal).
    bw1 = jnp.asarray(toeplitz_conv3x3_per_dy(params['w1'], W, cin_pad), jnp.bfloat16)
    bw2 = jnp.asarray(toeplitz_conv3x3_per_dy(params['w2'], W, nout), jnp.bfloat16)

    # NCHW -> lane-dense (Npad, H, W*cin_pad) slab (layout ops in the wrapper).
    x_nhwc = jnp.transpose(x_nchw.astype(jnp.float32), (0, 2, 3, 1))
    if cin_pad != nin:
        x_nhwc = jnp.pad(x_nhwc, ((0, 0), (0, 0), (0, 0), (0, cin_pad - nin)))
    if Npad != N:
        x_nhwc = jnp.pad(x_nhwc, ((0, Npad - N), (0, 0), (0, 0), (0, 0)))
    x2 = x_nhwc.reshape(Npad, H, Win)

    args = [x2, bw1, lane(s1), lane(t1), bw2, lane(s2), lane(t2)]
    if use_res:
        sr, tr = bn_fold(**params['bnres'])
        bres = jnp.asarray(blockdiag_1x1(params['wres'], W, cin_pad), jnp.bfloat16)
        args += [bres, lane(sr), lane(tr)]

    def build_in_specs(const_mode):
        def const_spec(shape):
            idx = (lambda n: (0,) * len(shape))
            if const_mode is None:
                return pl.BlockSpec(shape, idx)
            # Constant index_map -> single-buffer to halve the weight VMEM.
            return pl.BlockSpec(shape, idx, pipeline_mode=const_mode)
        specs = [pl.BlockSpec((B, H, Win), lambda n: (n, 0, 0)),
                 const_spec((3, Win, Wc)), const_spec((1, Wc)), const_spec((1, Wc)),
                 const_spec((3, Wc, Wc)), const_spec((1, Wc)), const_spec((1, Wc))]
        if use_res:
            specs += [const_spec((Win, Wc)), const_spec((1, Wc)), const_spec((1, Wc))]
        return specs

    flops = 2 * Npad * H * W * nout * (9 * cin_pad + 9 * nout
                                       + (cin_pad if use_res else 0))
    bytes_accessed = int(x2.size * 4 + Npad * H * Wc * 4
                         + sum(a.size * a.dtype.itemsize for a in args[1:]))
    cost = pl.CostEstimate(flops=int(flops),
                           transcendentals=int(Npad * H * Wc),
                           bytes_accessed=bytes_accessed)

    kernel = functools.partial(residual_conv_kernel, use_res=use_res, B=B,
                               H=H, W=W, cin_pad=cin_pad, cout=nout)

    # Try single-buffered constant operands first; fall back to the default
    # (double-buffered) pipeline if this JAX build rejects pl.Buffered(1).
    const_modes = [None]
    try:
        const_modes.insert(0, pl.Buffered(1))
    except Exception:
        pass

    out2 = None
    for mode in const_modes:
        try:
            out2 = pl.pallas_call(
                kernel,
                out_shape=jax.ShapeDtypeStruct((Npad, H, Wc), jnp.float32),
                grid_spec=pltpu.PrefetchScalarGridSpec(
                    num_scalar_prefetch=0,
                    grid=grid,
                    in_specs=build_in_specs(mode),
                    out_specs=pl.BlockSpec((B, H, Wc), lambda n: (n, 0, 0)),
                    scratch_shapes=[pltpu.VMEM((scr_rows, Win), jnp.bfloat16),
                                    pltpu.VMEM((scr_rows, Wc), jnp.bfloat16)],
                ),
                compiler_params=pltpu.CompilerParams(
                    dimension_semantics=("parallel",),   # v7x: batch over 2 TCs
                    vmem_limit_bytes=32 * 1024 * 1024,   # explicit VMEM budget
                ),
                cost_estimate=cost,
            )(*args)
            break
        except Exception:
            if mode is const_modes[-1]:
                raise

    if Npad != N:
        out2 = out2[:N]
    # lane-dense (N, H, W*cout) -> NCHW f32 (kept to match the PyTorch module;
    # a bf16/NHWC consumer could skip this transpose and halve HBM writeback).
    return out2.reshape(N, H, W, nout).transpose(0, 3, 1, 2)


# --------------------------------------------------------------------------- #
# Pure-JAX reference (eval-mode BN, bf16 conv operands / f32 accumulation to
# mirror the kernel's MXU precision).
# --------------------------------------------------------------------------- #
def reference_forward(x_nchw, params, nin, nout):
    dn = ('NCHW', 'HWIO', 'NCHW')
    pad3 = [(1, 1), (1, 1)]
    xb = x_nchw.astype(jnp.bfloat16)

    y = lax.conv_general_dilated(xb, params['w1'].astype(jnp.bfloat16), (1, 1), pad3,
                                 dimension_numbers=dn,
                                 preferred_element_type=jnp.float32)
    s1, t1 = bn_fold(**params['bn1'])
    y = y * s1[None, :, None, None] + t1[None, :, None, None]
    y = _clamped_sloped_dilated_sin(y)

    y = lax.conv_general_dilated(y.astype(jnp.bfloat16),
                                 params['w2'].astype(jnp.bfloat16), (1, 1), pad3,
                                 dimension_numbers=dn,
                                 preferred_element_type=jnp.float32)
    y = y + params['b2'][None, :, None, None]
    s2, t2 = bn_fold(**params['bn2'])
    y = y * s2[None, :, None, None] + t2[None, :, None, None]

    if nin != nout:
        r = lax.conv_general_dilated(
            xb, params['wres'].reshape(1, 1, nin, nout).astype(jnp.bfloat16),
            (1, 1), [(0, 0), (0, 0)], dimension_numbers=dn,
            preferred_element_type=jnp.float32)
        sr, tr = bn_fold(**params['bnres'])
        r = r * sr[None, :, None, None] + tr[None, :, None, None]
    else:
        r = x_nchw
    o = y + r
    return jnp.where(o >= 0.0, o, LEAKY_SLOPE * o)


if __name__ == "__main__":
    key = jax.random.PRNGKey(0)
    H, W = 16, 16

    # (N, nin, nout, forced batch-block):
    #   - 1x1-conv residual (nin != nout) with auto batching,
    #   - identity residual (nin == nout),
    #   - ragged batch (N=5, B=2) exercising batch padding + a 3-step grid.
    configs = [(2, 4, 8, None), (2, 8, 8, None), (5, 4, 8, 2)]
    for (N, nin, nout, bb) in configs:
        kx, kp, key = jax.random.split(key, 3)
        x = jax.random.normal(kx, (N, nin, H, W), jnp.float32)   # NCHW, PyTorch-style
        params = init_params(kp, nin, nout)

        out = jax.block_until_ready(
            residual_conv_forward(x, params, nin, nout, batch_block=bb))
        ref = jax.block_until_ready(reference_forward(x, params, nin, nout))

        assert out.shape == (N, nout, H, W)
        np.testing.assert_allclose(np.asarray(out), np.asarray(ref),
                                   rtol=1e-3, atol=1e-3)

    print("KERNEL_OK")
</pallas_src>

<mosaic_0001>
module attributes {stable_mosaic.version = 11 : i64} {
  func.func @residual_conv_kernel(%arg0: i32, %arg1: memref<2x16x128xf32, #tpu.memory_space<vmem>>, %arg2: memref<3x128x128xbf16, #tpu.memory_space<vmem>>, %arg3: memref<1x128xf32, #tpu.memory_space<vmem>>, %arg4: memref<1x128xf32, #tpu.memory_space<vmem>>, %arg5: memref<3x128x128xbf16, #tpu.memory_space<vmem>>, %arg6: memref<1x128xf32, #tpu.memory_space<vmem>>, %arg7: memref<1x128xf32, #tpu.memory_space<vmem>>, %arg8: memref<128x128xbf16, #tpu.memory_space<vmem>>, %arg9: memref<1x128xf32, #tpu.memory_space<vmem>>, %arg10: memref<1x128xf32, #tpu.memory_space<vmem>>, %arg11: memref<2x16x128xf32, #tpu.memory_space<vmem>>, %arg12: memref<42x128xbf16, #tpu.memory_space<vmem>>, %arg13: memref<42x128xbf16, #tpu.memory_space<vmem>>) attributes {dimension_semantics = [#tpu.dimension_semantics<parallel>], iteration_bounds = array<i64: 1>, scalar_prefetch = 0 : i64, scratch_operands = 2 : i64, tpu.core_type = #tpu.core_type<tc>, window_params = [{transform_indices = @transform_0, window_bounds = array<i64: 2, 16, 128>}, {pipeline_mode = #tpu.pipeline_mode<synchronous>, transform_indices = @transform_1, window_bounds = array<i64: 3, 128, 128>}, {pipeline_mode = #tpu.pipeline_mode<synchronous>, transform_indices = @transform_2, window_bounds = array<i64: 1, 128>}, {pipeline_mode = #tpu.pipeline_mode<synchronous>, transform_indices = @transform_3, window_bounds = array<i64: 1, 128>}, {pipeline_mode = #tpu.pipeline_mode<synchronous>, transform_indices = @transform_4, window_bounds = array<i64: 3, 128, 128>}, {pipeline_mode = #tpu.pipeline_mode<synchronous>, transform_indices = @transform_5, window_bounds = array<i64: 1, 128>}, {pipeline_mode = #tpu.pipeline_mode<synchronous>, transform_indices = @transform_6, window_bounds = array<i64: 1, 128>}, {pipeline_mode = #tpu.pipeline_mode<synchronous>, transform_indices = @transform_7, window_bounds = array<i64: 128, 128>}, {pipeline_mode = #tpu.pipeline_mode<synchronous>, transform_indices = @transform_8, window_bounds = array<i64: 1, 128>}, {pipeline_mode = #tpu.pipeline_mode<synchronous>, transform_indices = @transform_9, window_bounds = array<i64: 1, 128>}, {transform_indices = @transform_10, window_bounds = array<i64: 2, 16, 128>}]} {
    %cst = arith.constant 0.000000e+00 : bf16
    %0 = vector.broadcast %cst : bf16 to vector<1x128xbf16>
    %c0 = arith.constant 0 : index
    %c0_0 = arith.constant 0 : index
    %1 = vector.load %arg12[%c0, %c0_0] : memref<42x128xbf16, #tpu.memory_space<vmem>>, vector<1x128xbf16>
    tpu.vector_store %arg12[%c0, %c0_0], %0 {strides = array<i32>} : memref<42x128xbf16, #tpu.memory_space<vmem>>, vector<1x128xbf16>,
    %c17 = arith.constant 17 : index
    %c0_1 = arith.constant 0 : index
    %2 = vector.load %arg12[%c17, %c0_1] : memref<42x128xbf16, #tpu.memory_space<vmem>>, vector<1x128xbf16>
    tpu.vector_store %arg12[%c17, %c0_1], %0 {strides = array<i32>} : memref<42x128xbf16, #tpu.memory_space<vmem>>, vector<1x128xbf16>,
    %c0_2 = arith.constant 0 : index
    %c0_3 = arith.constant 0 : index
    %c0_4 = arith.constant 0 : index
    %3 = vector.load %arg1[%c0_2, %c0_3, %c0_4] : memref<2x16x128xf32, #tpu.memory_space<vmem>>, vector<1x16x128xf32>
    %4 = vector.shape_cast %3 : vector<1x16x128xf32> to vector<16x128xf32>
    %5 = arith.truncf %4 : vector<16x128xf32> to vector<16x128xbf16>
    %c1 = arith.constant 1 : index
    %c0_5 = arith.constant 0 : index
    %6 = vector.load %arg12[%c1, %c0_5] : memref<42x128xbf16, #tpu.memory_space<vmem>>, vector<16x128xbf16>
    tpu.vector_store %arg12[%c1, %c0_5], %5 {strides = array<i32>} : memref<42x128xbf16, #tpu.memory_space<vmem>>, vector<16x128xbf16>,
    %c18 = arith.constant 18 : index
    %c0_6 = arith.constant 0 : index
    %7 = vector.load %arg12[%c18, %c0_6] : memref<42x128xbf16, #tpu.memory_space<vmem>>, vector<1x128xbf16>
    tpu.vector_store %arg12[%c18, %c0_6], %0 {strides = array<i32>} : memref<42x128xbf16, #tpu.memory_space<vmem>>, vector<1x128xbf16>,
    %c35 = arith.constant 35 : index
    %c0_7 = arith.constant 0 : index
    %8 = vector.load %arg12[%c35, %c0_7] : memref<42x128xbf16, #tpu.memory_space<vmem>>, vector<1x128xbf16>
    tpu.vector_store %arg12[%c35, %c0_7], %0 {strides = array<i32>} : memref<42x128xbf16, #tpu.memory_space<vmem>>, vector<1x128xbf16>,
    %c1_8 = arith.constant 1 : index
    %c0_9 = arith.constant 0 : index
    %c0_10 = arith.constant 0 : index
    %9 = vector.load %arg1[%c1_8, %c0_9, %c0_10] : memref<2x16x128xf32, #tpu.memory_space<vmem>>, vector<1x16x128xf32>
    %10 = vector.shape_cast %9 : vector<1x16x128xf32> to vector<16x128xf32>
    %11 = arith.truncf %10 : vector<16x128xf32> to vector<16x128xbf16>
    %c19 = arith.constant 19 : index
    %c0_11 = arith.constant 0 : index
    %12 = vector.load %arg12[%c19, %c0_11] : memref<42x128xbf16, #tpu.memory_space<vmem>>, vector<16x128xbf16>
    tpu.vector_store %arg12[%c19, %c0_11], %11 {strides = array<i32>} : memref<42x128xbf16, #tpu.memory_space<vmem>>, vector<16x128xbf16>,
    %cst_12 = arith.constant 0.000000e+00 : bf16
    %13 = vector.broadcast %cst_12 : bf16 to vector<6x128xbf16>
    %c36 = arith.constant 36 : index
    %c0_13 = arith.constant 0 : index
    %14 = vector.load %arg12[%c36, %c0_13] : memref<42x128xbf16, #tpu.memory_space<vmem>>, vector<6x128xbf16>
    tpu.vector_store %arg12[%c36, %c0_13], %13 {strides = array<i32>} : memref<42x128xbf16, #tpu.memory_space<vmem>>, vector<6x128xbf16>,
    %c0_14 = arith.constant 0 : index
    %c0_15 = arith.constant 0 : index
    %15 = vector.load %arg12[%c0_14, %c0_15] : memref<42x128xbf16, #tpu.memory_space<vmem>>, vector<40x128xbf16>
    %c0_16 = arith.constant 0 : index
    %c0_17 = arith.constant 0 : index
    %c0_18 = arith.constant 0 : index
    %16 = vector.load %arg2[%c0_16, %c0_17, %c0_18] : memref<3x128x128xbf16, #tpu.memory_space<vmem>>, vector<1x128x128xbf16>
    %17 = vector.shape_cast %16 : vector<1x128x128xbf16> to vector<128x128xbf16>
    %cst_19 = arith.constant dense<0.000000e+00> : vector<40x128xf32>
    %18 = tpu.matmul %15, %17, %cst_19 {dimension_numbers = #tpu.dot_dimension_numbers<[1], [0], [0], [1], [0, 0, 1, 1], [], []>} : vector<40x128xbf16>, vector<128x128xbf16>, vector<40x128xf32> -> vector<40x128xf32>
    %c1_20 = arith.constant 1 : index
    %c0_21 = arith.constant 0 : index
    %19 = vector.load %arg12[%c1_20, %c0_21] : memref<42x128xbf16, #tpu.memory_space<vmem>>, vector<40x128xbf16>
    %c1_22 = arith.constant 1 : index
    %c0_23 = arith.constant 0 : index
    %c0_24 = arith.constant 0 : index
    %20 = vector.load %arg2[%c1_22, %c0_23, %c0_24] : memref<3x128x128xbf16, #tpu.memory_space<vmem>>, vector<1x128x128xbf16>
    %21 = vector.shape_cast %20 : vector<1x128x128xbf16> to vector<128x128xbf16>
    %cst_25 = arith.constant dense<0.000000e+00> : vector<40x128xf32>
    %22 = tpu.matmul %19, %21, %cst_25 {dimension_numbers = #tpu.dot_dimension_numbers<[1], [0], [0], [1], [0, 0, 1, 1], [], []>} : vector<40x128xbf16>, vector<128x128xbf16>, vector<40x128xf32> -> vector<40x128xf32>
    %23 = arith.addf %18, %22 : vector<40x128xf32>
    %c2 = arith.constant 2 : index
    %c0_26 = arith.constant 0 : index
    %24 = vector.load %arg12[%c2, %c0_26] : memref<42x128xbf16, #tpu.memory_space<vmem>>, vector<40x128xbf16>
    %c2_27 = arith.constant 2 : index
    %c0_28 = arith.constant 0 : index
    %c0_29 = arith.constant 0 : index
    %25 = vector.load %arg2[%c2_27, %c0_28, %c0_29] : memref<3x128x128xbf16, #tpu.memory_space<vmem>>, vector<1x128x128xbf16>
    %26 = vector.shape_cast %25 : vector<1x128x128xbf16> to vector<128x128xbf16>
    %cst_30 = arith.constant dense<0.000000e+00> : vector<40x128xf32>
    %27 = tpu.matmul %24, %26, %cst_30 {dimension_numbers = #tpu.dot_dimension_numbers<[1], [0], [0], [1], [0, 0, 1, 1], [], []>} : vector<40x128xbf16>, vector<128x128xbf16>, vector<40x128xf32> -> vector<40x128xf32>
    %28 = arith.addf %23, %27 : vector<40x128xf32>
    %c0_31 = arith.constant 0 : index
    %c0_32 = arith.constant 0 : index
    %29 = vector.load %arg3[%c0_31, %c0_32] : memref<1x128xf32, #tpu.memory_space<vmem>>, vector<1x128xf32>
    %30 = vector.broadcast %29 : vector<1x128xf32> to vector<40x128xf32>
    %31 = arith.mulf %28, %30 : vector<40x128xf32>
    %c0_33 = arith.constant 0 : index
    %c0_34 = arith.constant 0 : index
    %32 = vector.load %arg4[%c0_33, %c0_34] : memref<1x128xf32, #tpu.memory_space<vmem>>, vector<1x128xf32>
    %33 = vector.broadcast %32 : vector<1x128xf32> to vector<40x128xf32>
    %34 = arith.addf %31, %33 : vector<40x128xf32>
    %cst_35 = arith.constant 0.785398185 : f32
    %35 = vector.broadcast %cst_35 : f32 to vector<40x128xf32>
    %36 = arith.subf %34, %35 : vector<40x128xf32>
    %cst_36 = arith.constant -1.57079637 : f32
    %cst_37 = arith.constant 0.785398185 : f32
    %37 = vector.broadcast %cst_36 : f32 to vector<40x128xf32>
    %38 = arith.maximumf %37, %36 : vector<40x128xf32>
    %39 = vector.broadcast %cst_37 : f32 to vector<40x128xf32>
    %40 = arith.minimumf %39, %38 : vector<40x128xf32>
    %cst_38 = arith.constant 0.785398185 : f32
    %41 = vector.broadcast %cst_38 : f32 to vector<40x128xf32>
    %42 = arith.addf %40, %41 : vector<40x128xf32>
    %43 = math.sin %42 : vector<40x128xf32>
    %cst_39 = arith.constant 0.000000e+00 : f32
    %44 = vector.broadcast %cst_39 : f32 to vector<40x128xf32>
    %45 = arith.maximumf %34, %44 : vector<40x128xf32>
    %cst_40 = arith.constant 5.000000e-02 : f32
    %46 = vector.broadcast %cst_40 : f32 to vector<40x128xf32>
    %47 = arith.mulf %45, %46 : vector<40x128xf32>
    %48 = arith.addf %43, %47 : vector<40x128xf32>
    %cst_41 = arith.constant 0.000000e+00 : bf16
    %49 = vector.broadcast %cst_41 : bf16 to vector<1x128xbf16>
    %c0_42 = arith.constant 0 : index
    %c0_43 = arith.constant 0 : index
    %50 = vector.load %arg13[%c0_42, %c0_43] : memref<42x128xbf16, #tpu.memory_space<vmem>>, vector<1x128xbf16>
    tpu.vector_store %arg13[%c0_42, %c0_43], %49 {strides = array<i32>} : memref<42x128xbf16, #tpu.memory_space<vmem>>, vector<1x128xbf16>,
    %c17_44 = arith.constant 17 : index
    %c0_45 = arith.constant 0 : index
    %51 = vector.load %arg13[%c17_44, %c0_45] : memref<42x128xbf16, #tpu.memory_space<vmem>>, vector<1x128xbf16>
    tpu.vector_store %arg13[%c17_44, %c0_45], %49 {strides = array<i32>} : memref<42x128xbf16, #tpu.memory_space<vmem>>, vector<1x128xbf16>,
    %52 = vector.extract_strided_slice %48 {offsets = [0, 0], sizes = [16, 128], strides = [1, 1]} : vector<40x128xf32> to vector<16x128xf32>
    %53 = arith.truncf %52 : vector<16x128xf32> to vector<16x128xbf16>
    %c1_46 = arith.constant 1 : index
    %c0_47 = arith.constant 0 : index
    %54 = vector.load %arg13[%c1_46, %c0_47] : memref<42x128xbf16, #tpu.memory_space<vmem>>, vector<16x128xbf16>
    tpu.vector_store %arg13[%c1_46, %c0_47], %53 {strides = array<i32>} : memref<42x128xbf16, #tpu.memory_space<vmem>>, vector<16x128xbf16>,
    %c18_48 = arith.constant 18 : index
    %c0_49 = arith.constant 0 : index
    %55 = vector.load %arg13[%c18_48, %c0_49] : memref<42x128xbf16, #tpu.memory_space<vmem>>, vector<1x128xbf16>
    tpu.vector_store %arg13[%c18_48, %c0_49], %49 {strides = array<i32>} : memref<42x128xbf16, #tpu.memory_space<vmem>>, vector<1x128xbf16>,
    %c35_50 = arith.constant 35 : index
    %c0_51 = arith.constant 0 : index
    %56 = vector.load %arg13[%c35_50, %c0_51] : memref<42x128xbf16, #tpu.memory_space<vmem>>, vector<1x128xbf16>
    tpu.vector_store %arg13[%c35_50, %c0_51], %49 {strides = array<i32>} : memref<42x128xbf16, #tpu.memory_space<vmem>>, vector<1x128xbf16>,
    %57 = vector.extract_strided_slice %48 {offsets = [18, 0], sizes = [16, 128], strides = [1, 1]} : vector<40x128xf32> to vector<16x128xf32>
    %58 = arith.truncf %57 : vector<16x128xf32> to vector<16x128xbf16>
    %c19_52 = arith.constant 19 : index
    %c0_53 = arith.constant 0 : index
    %59 = vector.load %arg13[%c19_52, %c0_53] : memref<42x128xbf16, #tpu.memory_space<vmem>>, vector<16x128xbf16>
    tpu.vector_store %arg13[%c19_52, %c0_53], %58 {strides = array<i32>} : memref<42x128xbf16, #tpu.memory_space<vmem>>, vector<16x128xbf16>,
    %cst_54 = arith.constant 0.000000e+00 : bf16
    %60 = vector.broadcast %cst_54 : bf16 to vector<6x128xbf16>
    %c36_55 = arith.constant 36 : index
    %c0_56 = arith.constant 0 : index
    %61 = vector.load %arg13[%c36_55, %c0_56] : memref<42x128xbf16, #tpu.memory_space<vmem>>, vector<6x128xbf16>
    tpu.vector_store %arg13[%c36_55, %c0_56], %60 {strides = array<i32>} : memref<42x128xbf16, #tpu.memory_space<vmem>>, vector<6x128xbf16>,
    %c0_57 = arith.constant 0 : index
    %c0_58 = arith.constant 0 : index
    %62 = vector.load %arg13[%c0_57, %c0_58] : memref<42x128xbf16, #tpu.memory_space<vmem>>, vector<40x128xbf16>
    %c0_59 = arith.constant 0 : index
    %c0_60 = arith.constant 0 : index
    %c0_61 = arith.constant 0 : index
    %63 = vector.load %arg5[%c0_59, %c0_60, %c0_61] : memref<3x128x128xbf16, #tpu.memory_space<vmem>>, vector<1x128x128xbf16>
    %64 = vector.shape_cast %63 : vector<1x128x128xbf16> to vector<128x128xbf16>
    %cst_62 = arith.constant dense<0.000000e+00> : vector<40x128xf32>
    %65 = tpu.matmul %62, %64, %cst_62 {dimension_numbers = #tpu.dot_dimension_numbers<[1], [0], [0], [1], [0, 0, 1, 1], [], []>} : vector<40x128xbf16>, vector<128x128xbf16>, vector<40x128xf32> -> vector<40x128xf32>
    %c1_63 = arith.constant 1 : index
    %c0_64 = arith.constant 0 : index
    %66 = vector.load %arg13[%c1_63, %c0_64] : memref<42x128xbf16, #tpu.memory_space<vmem>>, vector<40x128xbf16>
    %c1_65 = arith.constant 1 : index
    %c0_66 = arith.constant 0 : index
    %c0_67 = arith.constant 0 : index
    %67 = vector.load %arg5[%c1_65, %c0_66, %c0_67] : memref<3x128x128xbf16, #tpu.memory_space<vmem>>, vector<1x128x128xbf16>
    %68 = vector.shape_cast %67 : vector<1x128x128xbf16> to vector<128x128xbf16>
    %cst_68 = arith.constant dense<0.000000e+00> : vector<40x128xf32>
    %69 = tpu.matmul %66, %68, %cst_68 {dimension_numbers = #tpu.dot_dimension_numbers<[1], [0], [0], [1], [0, 0, 1, 1], [], []>} : vector<40x128xbf16>, vector<128x128xbf16>, vector<40x128xf32> -> vector<40x128xf32>
    %70 = arith.addf %65, %69 : vector<40x128xf32>
    %c2_69 = arith.constant 2 : index
    %c0_70 = arith.constant 0 : index
    %71 = vector.load %arg13[%c2_69, %c0_70] : memref<42x128xbf16, #tpu.memory_space<vmem>>, vector<40x128xbf16>
    %c2_71 = arith.constant 2 : index
    %c0_72 = arith.constant 0 : index
    %c0_73 = arith.constant 0 : index
    %72 = vector.load %arg5[%c2_71, %c0_72, %c0_73] : memref<3x128x128xbf16, #tpu.memory_space<vmem>>, vector<1x128x128xbf16>
    %73 = vector.shape_cast %72 : vector<1x128x128xbf16> to vector<128x128xbf16>
    %cst_74 = arith.constant dense<0.000000e+00> : vector<40x128xf32>
    %74 = tpu.matmul %71, %73, %cst_74 {dimension_numbers = #tpu.dot_dimension_numbers<[1], [0], [0], [1], [0, 0, 1, 1], [], []>} : vector<40x128xbf16>, vector<128x128xbf16>, vector<40x128xf32> -> vector<40x128xf32>
    %75 = arith.addf %70, %74 : vector<40x128xf32>
    %c0_75 = arith.constant 0 : index
    %c0_76 = arith.constant 0 : index
    %76 = vector.load %arg6[%c0_75, %c0_76] : memref<1x128xf32, #tpu.memory_space<vmem>>, vector<1x128xf32>
    %77 = vector.broadcast %76 : vector<1x128xf32> to vector<40x128xf32>
    %78 = arith.mulf %75, %77 : vector<40x128xf32>
    %c0_77 = arith.constant 0 : index
    %c0_78 = arith.constant 0 : index
    %79 = vector.load %arg7[%c0_77, %c0_78] : memref<1x128xf32, #tpu.memory_space<vmem>>, vector<1x128xf32>
    %80 = vector.broadcast %79 : vector<1x128xf32> to vector<40x128xf32>
    %81 = arith.addf %78, %80 : vector<40x128xf32>
    %c0_79 = arith.constant 0 : index
    %c0_80 = arith.constant 0 : index
    %c0_81 = arith.constant 0 : index
    %82 = vector.load %arg1[%c0_79, %c0_80, %c0_81] : memref<2x16x128xf32, #tpu.memory_space<vmem>>, vector<2x16x128xf32>
    %83 = vector.shape_cast %82 : vector<2x16x128xf32> to vector<32x128xf32>
    %84 = arith.truncf %83 : vector<32x128xf32> to vector<32x128xbf16>
    %c0_82 = arith.constant 0 : index
    %c0_83 = arith.constant 0 : index
    %85 = vector.load %arg8[%c0_82, %c0_83] : memref<128x128xbf16, #tpu.memory_space<vmem>>, vector<128x128xbf16>
    %cst_84 = arith.constant dense<0.000000e+00> : vector<32x128xf32>
    %86 = tpu.matmul %84, %85, %cst_84 {dimension_numbers = #tpu.dot_dimension_numbers<[1], [0], [0], [1], [0, 0, 1, 1], [], []>} : vector<32x128xbf16>, vector<128x128xbf16>, vector<32x128xf32> -> vector<32x128xf32>
    %c0_85 = arith.constant 0 : index
    %c0_86 = arith.constant 0 : index
    %87 = vector.load %arg9[%c0_85, %c0_86] : memref<1x128xf32, #tpu.memory_space<vmem>>, vector<1x128xf32>
    %88 = vector.broadcast %87 : vector<1x128xf32> to vector<32x128xf32>
    %89 = arith.mulf %86, %88 : vector<32x128xf32>
    %c0_87 = arith.constant 0 : index
    %c0_88 = arith.constant 0 : index
    %90 = vector.load %arg10[%c0_87, %c0_88] : memref<1x128xf32, #tpu.memory_space<vmem>>, vector<1x128xf32>
    %91 = vector.broadcast %90 : vector<1x128xf32> to vector<32x128xf32>
    %92 = arith.addf %89, %91 : vector<32x128xf32>
    %93 = vector.extract_strided_slice %81 {offsets = [0, 0], sizes = [16, 128], strides = [1, 1]} : vector<40x128xf32> to vector<16x128xf32>
    %94 = vector.extract_strided_slice %92 {offsets = [0, 0], sizes = [16, 128], strides = [1, 1]} : vector<32x128xf32> to vector<16x128xf32>
    %95 = arith.addf %93, %94 : vector<16x128xf32>
    %cst_89 = arith.constant 0.000000e+00 : f32
    %96 = vector.broadcast %cst_89 : f32 to vector<16x128xf32>
    %97 = arith.cmpf oge, %95, %96 : vector<16x128xf32>
    %cst_90 = arith.constant 2.000000e-01 : f32
    %98 = vector.broadcast %cst_90 : f32 to vector<16x128xf32>
    %99 = arith.mulf %98, %95 : vector<16x128xf32>
    %100 = arith.select %97, %95, %99 : vector<16x128xi1>, vector<16x128xf32>
    %c0_91 = arith.constant 0 : index
    %c0_92 = arith.constant 0 : index
    %c0_93 = arith.constant 0 : index
    %101 = vector.load %arg11[%c0_91, %c0_92, %c0_93] : memref<2x16x128xf32, #tpu.memory_space<vmem>>, vector<1x16x128xf32>
    %102 = vector.shape_cast %101 : vector<1x16x128xf32> to vector<16x128xf32>
    %103 = vector.shape_cast %100 : vector<16x128xf32> to vector<1x16x128xf32>
    tpu.vector_store %arg11[%c0_91, %c0_92, %c0_93], %103 {strides = array<i32>} : memref<2x16x128xf32, #tpu.memory_space<vmem>>, vector<1x16x128xf32>,
    %104 = vector.extract_strided_slice %81 {offsets = [18, 0], sizes = [16, 128], strides = [1, 1]} : vector<40x128xf32> to vector<16x128xf32>
    %105 = vector.extract_strided_slice %92 {offsets = [16, 0], sizes = [16, 128], strides = [1, 1]} : vector<32x128xf32> to vector<16x128xf32>
    %106 = arith.addf %104, %105 : vector<16x128xf32>
    %cst_94 = arith.constant 0.000000e+00 : f32
    %107 = vector.broadcast %cst_94 : f32 to vector<16x128xf32>
    %108 = arith.cmpf oge, %106, %107 : vector<16x128xf32>
    %cst_95 = arith.constant 2.000000e-01 : f32
    %109 = vector.broadcast %cst_95 : f32 to vector<16x128xf32>
    %110 = arith.mulf %109, %106 : vector<16x128xf32>
    %111 = arith.select %108, %106, %110 : vector<16x128xi1>, vector<16x128xf32>
    %c1_96 = arith.constant 1 : index
    %c0_97 = arith.constant 0 : index
    %c0_98 = arith.constant 0 : index
    %112 = vector.load %arg11[%c1_96, %c0_97, %c0_98] : memref<2x16x128xf32, #tpu.memory_space<vmem>>, vector<1x16x128xf32>
    %113 = vector.shape_cast %112 : vector<1x16x128xf32> to vector<16x128xf32>
    %114 = vector.shape_cast %111 : vector<16x128xf32> to vector<1x16x128xf32>
    tpu.vector_store %arg11[%c1_96, %c0_97, %c0_98], %114 {strides = array<i32>} : memref<2x16x128xf32, #tpu.memory_space<vmem>>, vector<1x16x128xf32>,
    return
  }
  func.func @transform_0(%arg0: i32) -> (i32, i32, i32) {
    %c0_i32 = arith.constant 0 : i32
    %c0_i32_0 = arith.constant 0 : i32
    %c0_i32_1 = arith.constant 0 : i32
    return %arg0, %c0_i32, %c0_i32_0 : i32, i32, i32
  }
  func.func @transform_1(%arg0: i32) -> (i32, i32, i32) {
    %c0_i32 = arith.constant 0 : i32
    %c0_i32_0 = arith.constant 0 : i32
    %c0_i32_1 = arith.constant 0 : i32
    %c0_i32_2 = arith.constant 0 : i32
    return %c0_i32, %c0_i32_0, %c0_i32_1 : i32, i32, i32
  }
  func.func @transform_2(%arg0: i32) -> (i32, i32) {
    %c0_i32 = arith.constant 0 : i32
    %c0_i32_0 = arith.constant 0 : i32
    %c0_i32_1 = arith.constant 0 : i32
    return %c0_i32, %c0_i32_0 : i32, i32
  }
  func.func @transform_3(%arg0: i32) -> (i32, i32) {
    %c0_i32 = arith.constant 0 : i32
    %c0_i32_0 = arith.constant 0 : i32
    %c0_i32_1 = arith.constant 0 : i32
    return %c0_i32, %c0_i32_0 : i32, i32
  }
  func.func @transform_4(%arg0: i32) -> (i32, i32, i32) {
    %c0_i32 = arith.constant 0 : i32
    %c0_i32_0 = arith.constant 0 : i32
    %c0_i32_1 = arith.constant 0 : i32
    %c0_i32_2 = arith.constant 0 : i32
    return %c0_i32, %c0_i32_0, %c0_i32_1 : i32, i32, i32
  }
  func.func @transform_5(%arg0: i32) -> (i32, i32) {
    %c0_i32 = arith.constant 0 : i32
    %c0_i32_0 = arith.constant 0 : i32
    %c0_i32_1 = arith.constant 0 : i32
    return %c0_i32, %c0_i32_0 : i32, i32
  }
  func.func @transform_6(%arg0: i32) -> (i32, i32) {
    %c0_i32 = arith.constant 0 : i32
    %c0_i32_0 = arith.constant 0 : i32
    %c0_i32_1 = arith.constant 0 : i32
    return %c0_i32, %c0_i32_0 : i32, i32
  }
  func.func @transform_7(%arg0: i32) -> (i32, i32) {
    %c0_i32 = arith.constant 0 : i32
    %c0_i32_0 = arith.constant 0 : i32
    %c0_i32_1 = arith.constant 0 : i32
    return %c0_i32, %c0_i32_0 : i32, i32
  }
  func.func @transform_8(%arg0: i32) -> (i32, i32) {
    %c0_i32 = arith.constant 0 : i32
    %c0_i32_0 = arith.constant 0 : i32
    %c0_i32_1 = arith.constant 0 : i32
    return %c0_i32, %c0_i32_0 : i32, i32
  }
  func.func @transform_9(%arg0: i32) -> (i32, i32) {
    %c0_i32 = arith.constant 0 : i32
    %c0_i32_0 = arith.constant 0 : i32
    %c0_i32_1 = arith.constant 0 : i32
    return %c0_i32, %c0_i32_0 : i32, i32
  }
  func.func @transform_10(%arg0: i32) -> (i32, i32, i32) {
    %c0_i32 = arith.constant 0 : i32
    %c0_i32_0 = arith.constant 0 : i32
    %c0_i32_1 = arith.constant 0 : i32
    return %arg0, %c0_i32, %c0_i32_0 : i32, i32, i32
  }
}

module attributes {stable_mosaic.version = 11 : i64} {
  func.func @residual_conv_kernel(%arg0: i32, %arg1: memref<2x16x128xf32, #tpu.memory_space<vmem>>, %arg2: memref<3x128x128xbf16, #tpu.memory_space<vmem>>, %arg3: memref<1x128xf32, #tpu.memory_space<vmem>>, %arg4: memref<1x128xf32, #tpu.memory_space<vmem>>, %arg5: memref<3x128x128xbf16, #tpu.memory_space<vmem>>, %arg6: memref<1x128xf32, #tpu.memory_space<vmem>>, %arg7: memref<1x128xf32, #tpu.memory_space<vmem>>, %arg8: memref<128x128xbf16, #tpu.memory_space<vmem>>, %arg9: memref<1x128xf32, #tpu.memory_space<vmem>>, %arg10: memref<1x128xf32, #tpu.memory_space<vmem>>, %arg11: memref<2x16x128xf32, #tpu.memory_space<vmem>>, %arg12: memref<42x128xbf16, #tpu.memory_space<vmem>>, %arg13: memref<42x128xbf16, #tpu.memory_space<vmem>>) attributes {dimension_semantics = [#tpu.dimension_semantics<parallel>], iteration_bounds = array<i64: 1>, scalar_prefetch = 0 : i64, scratch_operands = 2 : i64, tpu.core_type = #tpu.core_type<tc>, window_params = [{transform_indices = @transform_0, window_bounds = array<i64: 2, 16, 128>}, {pipeline_mode = #tpu.pipeline_mode<synchronous>, transform_indices = @transform_1, window_bounds = array<i64: 3, 128, 128>}, {pipeline_mode = #tpu.pipeline_mode<synchronous>, transform_indices = @transform_2, window_bounds = array<i64: 1, 128>}, {pipeline_mode = #tpu.pipeline_mode<synchronous>, transform_indices = @transform_3, window_bounds = array<i64: 1, 128>}, {pipeline_mode = #tpu.pipeline_mode<synchronous>, transform_indices = @transform_4, window_bounds = array<i64: 3, 128, 128>}, {pipeline_mode = #tpu.pipeline_mode<synchronous>, transform_indices = @transform_5, window_bounds = array<i64: 1, 128>}, {pipeline_mode = #tpu.pipeline_mode<synchronous>, transform_indices = @transform_6, window_bounds = array<i64: 1, 128>}, {pipeline_mode = #tpu.pipeline_mode<synchronous>, transform_indices = @transform_7, window_bounds = array<i64: 128, 128>}, {pipeline_mode = #tpu.pipeline_mode<synchronous>, transform_indices = @transform_8, window_bounds = array<i64: 1, 128>}, {pipeline_mode = #tpu.pipeline_mode<synchronous>, transform_indices = @transform_9, window_bounds = array<i64: 1, 128>}, {transform_indices = @transform_10, window_bounds = array<i64: 2, 16, 128>}]} {
    %cst = arith.constant 0.000000e+00 : bf16
    %0 = vector.broadcast %cst : bf16 to vector<1x128xbf16>
    %c0 = arith.constant 0 : index
    %c0_0 = arith.constant 0 : index
    %1 = vector.load %arg12[%c0, %c0_0] : memref<42x128xbf16, #tpu.memory_space<vmem>>, vector<1x128xbf16>
    tpu.vector_store %arg12[%c0, %c0_0], %0 {strides = array<i32>} : memref<42x128xbf16, #tpu.memory_space<vmem>>, vector<1x128xbf16>,
    %c17 = arith.constant 17 : index
    %c0_1 = arith.constant 0 : index
    %2 = vector.load %arg12[%c17, %c0_1] : memref<42x128xbf16, #tpu.memory_space<vmem>>, vector<1x128xbf16>
    tpu.vector_store %arg12[%c17, %c0_1], %0 {strides = array<i32>} : memref<42x128xbf16, #tpu.memory_space<vmem>>, vector<1x128xbf16>,
    %c0_2 = arith.constant 0 : index
    %c0_3 = arith.constant 0 : index
    %c0_4 = arith.constant 0 : index
    %3 = vector.load %arg1[%c0_2, %c0_3, %c0_4] : memref<2x16x128xf32, #tpu.memory_space<vmem>>, vector<1x16x128xf32>
    %4 = vector.shape_cast %3 : vector<1x16x128xf32> to vector<16x128xf32>
    %5 = arith.truncf %4 : vector<16x128xf32> to vector<16x128xbf16>
    %c1 = arith.constant 1 : index
    %c0_5 = arith.constant 0 : index
    %6 = vector.load %arg12[%c1, %c0_5] : memref<42x128xbf16, #tpu.memory_space<vmem>>, vector<16x128xbf16>
    tpu.vector_store %arg12[%c1, %c0_5], %5 {strides = array<i32>} : memref<42x128xbf16, #tpu.memory_space<vmem>>, vector<16x128xbf16>,
    %c18 = arith.constant 18 : index
    %c0_6 = arith.constant 0 : index
    %7 = vector.load %arg12[%c18, %c0_6] : memref<42x128xbf16, #tpu.memory_space<vmem>>, vector<1x128xbf16>
    tpu.vector_store %arg12[%c18, %c0_6], %0 {strides = array<i32>} : memref<42x128xbf16, #tpu.memory_space<vmem>>, vector<1x128xbf16>,
    %c35 = arith.constant 35 : index
    %c0_7 = arith.constant 0 : index
    %8 = vector.load %arg12[%c35, %c0_7] : memref<42x128xbf16, #tpu.memory_space<vmem>>, vector<1x128xbf16>
    tpu.vector_store %arg12[%c35, %c0_7], %0 {strides = array<i32>} : memref<42x128xbf16, #tpu.memory_space<vmem>>, vector<1x128xbf16>,
    %c1_8 = arith.constant 1 : index
    %c0_9 = arith.constant 0 : index
    %c0_10 = arith.constant 0 : index
    %9 = vector.load %arg1[%c1_8, %c0_9, %c0_10] : memref<2x16x128xf32, #tpu.memory_space<vmem>>, vector<1x16x128xf32>
    %10 = vector.shape_cast %9 : vector<1x16x128xf32> to vector<16x128xf32>
    %11 = arith.truncf %10 : vector<16x128xf32> to vector<16x128xbf16>
    %c19 = arith.constant 19 : index
    %c0_11 = arith.constant 0 : index
    %12 = vector.load %arg12[%c19, %c0_11] : memref<42x128xbf16, #tpu.memory_space<vmem>>, vector<16x128xbf16>
    tpu.vector_store %arg12[%c19, %c0_11], %11 {strides = array<i32>} : memref<42x128xbf16, #tpu.memory_space<vmem>>, vector<16x128xbf16>,
    %cst_12 = arith.constant 0.000000e+00 : bf16
    %13 = vector.broadcast %cst_12 : bf16 to vector<6x128xbf16>
    %c36 = arith.constant 36 : index
    %c0_13 = arith.constant 0 : index
    %14 = vector.load %arg12[%c36, %c0_13] : memref<42x128xbf16, #tpu.memory_space<vmem>>, vector<6x128xbf16>
    tpu.vector_store %arg12[%c36, %c0_13], %13 {strides = array<i32>} : memref<42x128xbf16, #tpu.memory_space<vmem>>, vector<6x128xbf16>,
    %c0_14 = arith.constant 0 : index
    %c0_15 = arith.constant 0 : index
    %15 = vector.load %arg12[%c0_14, %c0_15] : memref<42x128xbf16, #tpu.memory_space<vmem>>, vector<40x128xbf16>
    %c0_16 = arith.constant 0 : index
    %c0_17 = arith.constant 0 : index
    %c0_18 = arith.constant 0 : index
    %16 = vector.load %arg2[%c0_16, %c0_17, %c0_18] : memref<3x128x128xbf16, #tpu.memory_space<vmem>>, vector<1x128x128xbf16>
    %17 = vector.shape_cast %16 : vector<1x128x128xbf16> to vector<128x128xbf16>
    %cst_19 = arith.constant dense<0.000000e+00> : vector<40x128xf32>
    %18 = tpu.matmul %15, %17, %cst_19 {dimension_numbers = #tpu.dot_dimension_numbers<[1], [0], [0], [1], [0, 0, 1, 1], [], []>} : vector<40x128xbf16>, vector<128x128xbf16>, vector<40x128xf32> -> vector<40x128xf32>
    %c1_20 = arith.constant 1 : index
    %c0_21 = arith.constant 0 : index
    %19 = vector.load %arg12[%c1_20, %c0_21] : memref<42x128xbf16, #tpu.memory_space<vmem>>, vector<40x128xbf16>
    %c1_22 = arith.constant 1 : index
    %c0_23 = arith.constant 0 : index
    %c0_24 = arith.constant 0 : index
    %20 = vector.load %arg2[%c1_22, %c0_23, %c0_24] : memref<3x128x128xbf16, #tpu.memory_space<vmem>>, vector<1x128x128xbf16>
    %21 = vector.shape_cast %20 : vector<1x128x128xbf16> to vector<128x128xbf16>
    %cst_25 = arith.constant dense<0.000000e+00> : vector<40x128xf32>
    %22 = tpu.matmul %19, %21, %cst_25 {dimension_numbers = #tpu.dot_dimension_numbers<[1], [0], [0], [1], [0, 0, 1, 1], [], []>} : vector<40x128xbf16>, vector<128x128xbf16>, vector<40x128xf32> -> vector<40x128xf32>
    %23 = arith.addf %18, %22 : vector<40x128xf32>
    %c2 = arith.constant 2 : index
    %c0_26 = arith.constant 0 : index
    %24 = vector.load %arg12[%c2, %c0_26] : memref<42x128xbf16, #tpu.memory_space<vmem>>, vector<40x128xbf16>
    %c2_27 = arith.constant 2 : index
    %c0_28 = arith.constant 0 : index
    %c0_29 = arith.constant 0 : index
    %25 = vector.load %arg2[%c2_27, %c0_28, %c0_29] : memref<3x128x128xbf16, #tpu.memory_space<vmem>>, vector<1x128x128xbf16>
    %26 = vector.shape_cast %25 : vector<1x128x128xbf16> to vector<128x128xbf16>
    %cst_30 = arith.constant dense<0.000000e+00> : vector<40x128xf32>
    %27 = tpu.matmul %24, %26, %cst_30 {dimension_numbers = #tpu.dot_dimension_numbers<[1], [0], [0], [1], [0, 0, 1, 1], [], []>} : vector<40x128xbf16>, vector<128x128xbf16>, vector<40x128xf32> -> vector<40x128xf32>
    %28 = arith.addf %23, %27 : vector<40x128xf32>
    %c0_31 = arith.constant 0 : index
    %c0_32 = arith.constant 0 : index
    %29 = vector.load %arg3[%c0_31, %c0_32] : memref<1x128xf32, #tpu.memory_space<vmem>>, vector<1x128xf32>
    %30 = vector.broadcast %29 : vector<1x128xf32> to vector<40x128xf32>
    %31 = arith.mulf %28, %30 : vector<40x128xf32>
    %c0_33 = arith.constant 0 : index
    %c0_34 = arith.constant 0 : index
    %32 = vector.load %arg4[%c0_33, %c0_34] : memref<1x128xf32, #tpu.memory_space<vmem>>, vector<1x128xf32>
    %33 = vector.broadcast %32 : vector<1x128xf32> to vector<40x128xf32>
    %34 = arith.addf %31, %33 : vector<40x128xf32>
    %cst_35 = arith.constant 0.785398185 : f32
    %35 = vector.broadcast %cst_35 : f32 to vector<40x128xf32>
    %36 = arith.subf %34, %35 : vector<40x128xf32>
    %cst_36 = arith.constant -1.57079637 : f32
    %cst_37 = arith.constant 0.785398185 : f32
    %37 = vector.broadcast %cst_36 : f32 to vector<40x128xf32>
    %38 = arith.maximumf %37, %36 : vector<40x128xf32>
    %39 = vector.broadcast %cst_37 : f32 to vector<40x128xf32>
    %40 = arith.minimumf %39, %38 : vector<40x128xf32>
    %cst_38 = arith.constant 0.785398185 : f32
    %41 = vector.broadcast %cst_38 : f32 to vector<40x128xf32>
    %42 = arith.addf %40, %41 : vector<40x128xf32>
    %43 = math.sin %42 : vector<40x128xf32>
    %cst_39 = arith.constant 0.000000e+00 : f32
    %44 = vector.broadcast %cst_39 : f32 to vector<40x128xf32>
    %45 = arith.maximumf %34, %44 : vector<40x128xf32>
    %cst_40 = arith.constant 5.000000e-02 : f32
    %46 = vector.broadcast %cst_40 : f32 to vector<40x128xf32>
    %47 = arith.mulf %45, %46 : vector<40x128xf32>
    %48 = arith.addf %43, %47 : vector<40x128xf32>
    %cst_41 = arith.constant 0.000000e+00 : bf16
    %49 = vector.broadcast %cst_41 : bf16 to vector<1x128xbf16>
    %c0_42 = arith.constant 0 : index
    %c0_43 = arith.constant 0 : index
    %50 = vector.load %arg13[%c0_42, %c0_43] : memref<42x128xbf16, #tpu.memory_space<vmem>>, vector<1x128xbf16>
    tpu.vector_store %arg13[%c0_42, %c0_43], %49 {strides = array<i32>} : memref<42x128xbf16, #tpu.memory_space<vmem>>, vector<1x128xbf16>,
    %c17_44 = arith.constant 17 : index
    %c0_45 = arith.constant 0 : index
    %51 = vector.load %arg13[%c17_44, %c0_45] : memref<42x128xbf16, #tpu.memory_space<vmem>>, vector<1x128xbf16>
    tpu.vector_store %arg13[%c17_44, %c0_45], %49 {strides = array<i32>} : memref<42x128xbf16, #tpu.memory_space<vmem>>, vector<1x128xbf16>,
    %52 = vector.extract_strided_slice %48 {offsets = [0, 0], sizes = [16, 128], strides = [1, 1]} : vector<40x128xf32> to vector<16x128xf32>
    %53 = arith.truncf %52 : vector<16x128xf32> to vector<16x128xbf16>
    %c1_46 = arith.constant 1 : index
    %c0_47 = arith.constant 0 : index
    %54 = vector.load %arg13[%c1_46, %c0_47] : memref<42x128xbf16, #tpu.memory_space<vmem>>, vector<16x128xbf16>
    tpu.vector_store %arg13[%c1_46, %c0_47], %53 {strides = array<i32>} : memref<42x128xbf16, #tpu.memory_space<vmem>>, vector<16x128xbf16>,
    %c18_48 = arith.constant 18 : index
    %c0_49 = arith.constant 0 : index
    %55 = vector.load %arg13[%c18_48, %c0_49] : memref<42x128xbf16, #tpu.memory_space<vmem>>, vector<1x128xbf16>
    tpu.vector_store %arg13[%c18_48, %c0_49], %49 {strides = array<i32>} : memref<42x128xbf16, #tpu.memory_space<vmem>>, vector<1x128xbf16>,
    %c35_50 = arith.constant 35 : index
    %c0_51 = arith.constant 0 : index
    %56 = vector.load %arg13[%c35_50, %c0_51] : memref<42x128xbf16, #tpu.memory_space<vmem>>, vector<1x128xbf16>
    tpu.vector_store %arg13[%c35_50, %c0_51], %49 {strides = array<i32>} : memref<42x128xbf16, #tpu.memory_space<vmem>>, vector<1x128xbf16>,
    %57 = vector.extract_strided_slice %48 {offsets = [18, 0], sizes = [16, 128], strides = [1, 1]} : vector<40x128xf32> to vector<16x128xf32>
    %58 = arith.truncf %57 : vector<16x128xf32> to vector<16x128xbf16>
    %c19_52 = arith.constant 19 : index
    %c0_53 = arith.constant 0 : index
    %59 = vector.load %arg13[%c19_52, %c0_53] : memref<42x128xbf16, #tpu.memory_space<vmem>>, vector<16x128xbf16>
    tpu.vector_store %arg13[%c19_52, %c0_53], %58 {strides = array<i32>} : memref<42x128xbf16, #tpu.memory_space<vmem>>, vector<16x128xbf16>,
    %cst_54 = arith.constant 0.000000e+00 : bf16
    %60 = vector.broadcast %cst_54 : bf16 to vector<6x128xbf16>
    %c36_55 = arith.constant 36 : index
    %c0_56 = arith.constant 0 : index
    %61 = vector.load %arg13[%c36_55, %c0_56] : memref<42x128xbf16, #tpu.memory_space<vmem>>, vector<6x128xbf16>
    tpu.vector_store %arg13[%c36_55, %c0_56], %60 {strides = array<i32>} : memref<42x128xbf16, #tpu.memory_space<vmem>>, vector<6x128xbf16>,
    %c0_57 = arith.constant 0 : index
    %c0_58 = arith.constant 0 : index
    %62 = vector.load %arg13[%c0_57, %c0_58] : memref<42x128xbf16, #tpu.memory_space<vmem>>, vector<40x128xbf16>
    %c0_59 = arith.constant 0 : index
    %c0_60 = arith.constant 0 : index
    %c0_61 = arith.constant 0 : index
    %63 = vector.load %arg5[%c0_59, %c0_60, %c0_61] : memref<3x128x128xbf16, #tpu.memory_space<vmem>>, vector<1x128x128xbf16>
    %64 = vector.shape_cast %63 : vector<1x128x128xbf16> to vector<128x128xbf16>
    %cst_62 = arith.constant dense<0.000000e+00> : vector<40x128xf32>
    %65 = tpu.matmul %62, %64, %cst_62 {dimension_numbers = #tpu.dot_dimension_numbers<[1], [0], [0], [1], [0, 0, 1, 1], [], []>} : vector<40x128xbf16>, vector<128x128xbf16>, vector<40x128xf32> -> vector<40x128xf32>
    %c1_63 = arith.constant 1 : index
    %c0_64 = arith.constant 0 : index
    %66 = vector.load %arg13[%c1_63, %c0_64] : memref<42x128xbf16, #tpu.memory_space<vmem>>, vector<40x128xbf16>
    %c1_65 = arith.constant 1 : index
    %c0_66 = arith.constant 0 : index
    %c0_67 = arith.constant 0 : index
    %67 = vector.load %arg5[%c1_65, %c0_66, %c0_67] : memref<3x128x128xbf16, #tpu.memory_space<vmem>>, vector<1x128x128xbf16>
    %68 = vector.shape_cast %67 : vector<1x128x128xbf16> to vector<128x128xbf16>
    %cst_68 = arith.constant dense<0.000000e+00> : vector<40x128xf32>
    %69 = tpu.matmul %66, %68, %cst_68 {dimension_numbers = #tpu.dot_dimension_numbers<[1], [0], [0], [1], [0, 0, 1, 1], [], []>} : vector<40x128xbf16>, vector<128x128xbf16>, vector<40x128xf32> -> vector<40x128xf32>
    %70 = arith.addf %65, %69 : vector<40x128xf32>
    %c2_69 = arith.constant 2 : index
    %c0_70 = arith.constant 0 : index
    %71 = vector.load %arg13[%c2_69, %c0_70] : memref<42x128xbf16, #tpu.memory_space<vmem>>, vector<40x128xbf16>
    %c2_71 = arith.constant 2 : index
    %c0_72 = arith.constant 0 : index
    %c0_73 = arith.constant 0 : index
    %72 = vector.load %arg5[%c2_71, %c0_72, %c0_73] : memref<3x128x128xbf16, #tpu.memory_space<vmem>>, vector<1x128x128xbf16>
    %73 = vector.shape_cast %72 : vector<1x128x128xbf16> to vector<128x128xbf16>
    %cst_74 = arith.constant dense<0.000000e+00> : vector<40x128xf32>
    %74 = tpu.matmul %71, %73, %cst_74 {dimension_numbers = #tpu.dot_dimension_numbers<[1], [0], [0], [1], [0, 0, 1, 1], [], []>} : vector<40x128xbf16>, vector<128x128xbf16>, vector<40x128xf32> -> vector<40x128xf32>
    %75 = arith.addf %70, %74 : vector<40x128xf32>
    %c0_75 = arith.constant 0 : index
    %c0_76 = arith.constant 0 : index
    %76 = vector.load %arg6[%c0_75, %c0_76] : memref<1x128xf32, #tpu.memory_space<vmem>>, vector<1x128xf32>
    %77 = vector.broadcast %76 : vector<1x128xf32> to vector<40x128xf32>
    %78 = arith.mulf %75, %77 : vector<40x128xf32>
    %c0_77 = arith.constant 0 : index
    %c0_78 = arith.constant 0 : index
    %79 = vector.load %arg7[%c0_77, %c0_78] : memref<1x128xf32, #tpu.memory_space<vmem>>, vector<1x128xf32>
    %80 = vector.broadcast %79 : vector<1x128xf32> to vector<40x128xf32>
    %81 = arith.addf %78, %80 : vector<40x128xf32>
    %c0_79 = arith.constant 0 : index
    %c0_80 = arith.constant 0 : index
    %c0_81 = arith.constant 0 : index
    %82 = vector.load %arg1[%c0_79, %c0_80, %c0_81] : memref<2x16x128xf32, #tpu.memory_space<vmem>>, vector<2x16x128xf32>
    %83 = vector.shape_cast %82 : vector<2x16x128xf32> to vector<32x128xf32>
    %84 = arith.truncf %83 : vector<32x128xf32> to vector<32x128xbf16>
    %c0_82 = arith.constant 0 : index
    %c0_83 = arith.constant 0 : index
    %85 = vector.load %arg8[%c0_82, %c0_83] : memref<128x128xbf16, #tpu.memory_space<vmem>>, vector<128x128xbf16>
    %cst_84 = arith.constant dense<0.000000e+00> : vector<32x128xf32>
    %86 = tpu.matmul %84, %85, %cst_84 {dimension_numbers = #tpu.dot_dimension_numbers<[1], [0], [0], [1], [0, 0, 1, 1], [], []>} : vector<32x128xbf16>, vector<128x128xbf16>, vector<32x128xf32> -> vector<32x128xf32>
    %c0_85 = arith.constant 0 : index
    %c0_86 = arith.constant 0 : index
    %87 = vector.load %arg9[%c0_85, %c0_86] : memref<1x128xf32, #tpu.memory_space<vmem>>, vector<1x128xf32>
    %88 = vector.broadcast %87 : vector<1x128xf32> to vector<32x128xf32>
    %89 = arith.mulf %86, %88 : vector<32x128xf32>
    %c0_87 = arith.constant 0 : index
    %c0_88 = arith.constant 0 : index
    %90 = vector.load %arg10[%c0_87, %c0_88] : memref<1x128xf32, #tpu.memory_space<vmem>>, vector<1x128xf32>
    %91 = vector.broadcast %90 : vector<1x128xf32> to vector<32x128xf32>
    %92 = arith.addf %89, %91 : vector<32x128xf32>
    %93 = vector.extract_strided_slice %81 {offsets = [0, 0], sizes = [16, 128], strides = [1, 1]} : vector<40x128xf32> to vector<16x128xf32>
    %94 = vector.extract_strided_slice %92 {offsets = [0, 0], sizes = [16, 128], strides = [1, 1]} : vector<32x128xf32> to vector<16x128xf32>
    %95 = arith.addf %93, %94 : vector<16x128xf32>
    %cst_89 = arith.constant 0.000000e+00 : f32
    %96 = vector.broadcast %cst_89 : f32 to vector<16x128xf32>
    %97 = arith.cmpf oge, %95, %96 : vector<16x128xf32>
    %cst_90 = arith.constant 2.000000e-01 : f32
    %98 = vector.broadcast %cst_90 : f32 to vector<16x128xf32>
    %99 = arith.mulf %98, %95 : vector<16x128xf32>
    %100 = arith.select %97, %95, %99 : vector<16x128xi1>, vector<16x128xf32>
    %c0_91 = arith.constant 0 : index
    %c0_92 = arith.constant 0 : index
    %c0_93 = arith.constant 0 : index
    %101 = vector.load %arg11[%c0_91, %c0_92, %c0_93] : memref<2x16x128xf32, #tpu.memory_space<vmem>>, vector<1x16x128xf32>
    %102 = vector.shape_cast %101 : vector<1x16x128xf32> to vector<16x128xf32>
    %103 = vector.shape_cast %100 : vector<16x128xf32> to vector<1x16x128xf32>
    tpu.vector_store %arg11[%c0_91, %c0_92, %c0_93], %103 {strides = array<i32>} : memref<2x16x128xf32, #tpu.memory_space<vmem>>, vector<1x16x128xf32>,
    %104 = vector.extract_strided_slice %81 {offsets = [18, 0], sizes = [16, 128], strides = [1, 1]} : vector<40x128xf32> to vector<16x128xf32>
    %105 = vector.extract_strided_slice %92 {offsets = [16, 0], sizes = [16, 128], strides = [1, 1]} : vector<32x128xf32> to vector<16x128xf32>
    %106 = arith.addf %104, %105 : vector<16x128xf32>
    %cst_94 = arith.constant 0.000000e+00 : f32
    %107 = vector.broadcast %cst_94 : f32 to vector<16x128xf32>
    %108 = arith.cmpf oge, %106, %107 : vector<16x128xf32>
    %cst_95 = arith.constant 2.000000e-01 : f32
    %109 = vector.broadcast %cst_95 : f32 to vector<16x128xf32>
    %110 = arith.mulf %109, %106 : vector<16x128xf32>
    %111 = arith.select %108, %106, %110 : vector<16x128xi1>, vector<16x128xf32>
    %c1_96 = arith.constant 1 : index
    %c0_97 = arith.constant 0 : index
    %c0_98 = arith.constant 0 : index
    %112 = vector.load %arg11[%c1_96, %c0_97, %c0_98] : memref<2x16x128xf32, #tpu.memory_space<vmem>>, vector<1x16x128xf32>
    %113 = vector.shape_cast %112 : vector<1x16x128xf32> to vector<16x128xf32>
    %114 = vector.shape_cast %111 : vector<16x128xf32> to vector<1x16x128xf32>
    tpu.vector_store %arg11[%c1_96, %c0_97, %c0_98], %114 {strides = array<i32>} : memref<2x16x128xf32, #tpu.memory_space<vmem>>, vector<1x16x128xf32>,
    return
  }
  func.func @transform_0(%arg0: i32) -> (i32, i32, i32) {
    %c0_i32 = arith.constant 0 : i32
    %c0_i32_0 = arith.constant 0 : i32
    %c0_i32_1 = arith.constant 0 : i32
    return %arg0, %c0_i32, %c0_i32_0 : i32, i32, i32
  }
  func.func @transform_1(%arg0: i32) -> (i32, i32, i32) {
    %c0_i32 = arith.constant 0 : i32
    %c0_i32_0 = arith.constant 0 : i32
    %c0_i32_1 = arith.constant 0 : i32
    %c0_i32_2 = arith.constant 0 : i32
    return %c0_i32, %c0_i32_0, %c0_i32_1 : i32, i32, i32
  }
  func.func @transform_2(%arg0: i32) -> (i32, i32) {
    %c0_i32 = arith.constant 0 : i32
    %c0_i32_0 = arith.constant 0 : i32
    %c0_i32_1 = arith.constant 0 : i32
    return %c0_i32, %c0_i32_0 : i32, i32
  }
  func.func @transform_3(%arg0: i32) -> (i32, i32) {
    %c0_i32 = arith.constant 0 : i32
    %c0_i32_0 = arith.constant 0 : i32
    %c0_i32_1 = arith.constant 0 : i32
    return %c0_i32, %c0_i32_0 : i32, i32
  }
  func.func @transform_4(%arg0: i32) -> (i32, i32, i32) {
    %c0_i32 = arith.constant 0 : i32
    %c0_i32_0 = arith.constant 0 : i32
    %c0_i32_1 = arith.constant 0 : i32
    %c0_i32_2 = arith.constant 0 : i32
    return %c0_i32, %c0_i32_0, %c0_i32_1 : i32, i32, i32
  }
  func.func @transform_5(%arg0: i32) -> (i32, i32) {
    %c0_i32 = arith.constant 0 : i32
    %c0_i32_0 = arith.constant 0 : i32
    %c0_i32_1 = arith.constant 0 : i32
    return %c0_i32, %c0_i32_0 : i32, i32
  }
  func.func @transform_6(%arg0: i32) -> (i32, i32) {
    %c0_i32 = arith.constant 0 : i32
    %c0_i32_0 = arith.constant 0 : i32
    %c0_i32_1 = arith.constant 0 : i32
    return %c0_i32, %c0_i32_0 : i32, i32
  }
  func.func @transform_7(%arg0: i32) -> (i32, i32) {
    %c0_i32 = arith.constant 0 : i32
    %c0_i32_0 = arith.constant 0 : i32
    %c0_i32_1 = arith.constant 0 : i32
    return %c0_i32, %c0_i32_0 : i32, i32
  }
  func.func @transform_8(%arg0: i32) -> (i32, i32) {
    %c0_i32 = arith.constant 0 : i32
    %c0_i32_0 = arith.constant 0 : i32
    %c0_i32_1 = arith.constant 0 : i32
    return %c0_i32, %c0_i32_0 : i32, i32
  }
  func.func @transform_9(%arg0: i32) -> (i32, i32) {
    %c0_i32 = arith.constant 0 : i32
    %c0_i32_0 = arith.constant 0 : i32
    %c0_i32_1 = arith.constant 0 : i32
    return %c0_i32, %c0_i32_0 : i32, i32
  }
  func.func @transform_10(%arg0: i32) -> (i32, i32, i32) {
    %c0_i32 = arith.constant 0 : i32
    %c0_i32_0 = arith.constant 0 : i32
    %c0_i32_1 = arith.constant 0 : i32
    return %arg0, %c0_i32, %c0_i32_0 : i32, i32, i32
  }
}

</mosaic_0001>

<bundles_post_ra>
// kernel: tpu_custom_call.1
= control target key start
LH: loop header
LB: loop body
LE: loop exit
PB: predicated region body
PF: predicated region fallthrough
CT: control target
= control target key end

     0   :  { %15 = vsyncpa [#allocation5], 0  ;;  %s3336_s0 = inlined_call_operand.hbm [shape: f32[2,16,128], index: 0, kind: input, shape index: {}]   ;;  %s3337_s1 = inlined_call_operand.hbm [shape: bf16[3,128,128], index: 1, kind: input, shape index: {}]   ;;  %s3338_s2 = inlined_call_operand.vmem [shape: f32[1,128], index: 2, kind: input, shape index: {}]   ;;  %s3339_s3 = inlined_call_operand.vmem [shape: f32[1,128], index: 3, kind: input, shape index: {}]   ;;  %s3340_s4 = inlined_call_operand.hbm [shape: bf16[3,128,128], index: 4, kind: input, shape index: {}]   ;;  %s3341_s5 = inlined_call_operand.vmem [shape: f32[1,128], index: 5, kind: input, shape index: {}]   ;;  %s3342_s6 = inlined_call_operand.vmem [shape: f32[1,128], index: 6, kind: input, shape index: {}]   ;;  %s3343_s7 = inlined_call_operand.hbm [shape: bf16[128,128], index: 7, kind: input, shape index: {}]   ;;  %s3344_s8 = inlined_call_operand.vmem [shape: f32[1,128], index: 8, kind: input, shape index: {}]   ;;  %s3345_s9 = inlined_call_operand.vmem [shape: f32[1,128], index: 9, kind: input, shape index: {}]   ;;  %s3346_s10 = inlined_call_operand.hbm [shape: f32[2,16,128], index: 10, kind: output, shape index: {}]  }
   0x1   :  { %16 = vsyncpa [#allocation8], 0 }
   0x2   :  { %17 = vsyncpa [#allocation11], 0 }
   0x3   :  { %18 = vsyncpa [#allocation6], 0  ;;  %s2562_s13 = smov [#allocation7]  }
   0x4   :  { %s36_s14 = sshll.u32 %s2562_s13, 4  ;;  %s37_s14 = int_to_ptr.vmem [resolvable:$true] %s36_s14 }
   0x5   :  { %s2462_s15 = scalar_lea.vmem %s37_s14, 3072  ;;  %p2467_p1 = scmp.lt.s32.totalorder %s37_s14, %s37_s14 }
   0x6   :  { %p2463_p0 = scmp.ne.s32.totalorder %s37_s14, %s2462_s15  ;;  %p2468_p2 = scmp.lt.s32.totalorder %s2462_s15, %s2462_s15 }
   0x8   :  { %p2469_p3 = por %p2468_p2, %p2467_p1 }
   0xa   :  { %p2470_p4 = pnand %p2469_p3, %p2463_p0 }
   0xc   :  { %2473 = shalt.err (!%p2470_p4)
}
   0xd   :  { %s2563_s16 = smov 64   ;;  %s2564_s17 = smov 4  }
   0xe   :  { %42 = dma.hbm_to_vmem [thread:$0]  %s3337_s1, 3072, %s37_s14, [#allocation8], %s2563_s16, %s2563_s16, %s2564_s17  }
   0xf   :  { %s2565_s20 = smov [#allocation4]  }
  0x10   :  { %s24_s21 = sshll.u32 %s2565_s20, 4  ;;  %s25_s21 = int_to_ptr.vmem [resolvable:$true] %s24_s21 }
  0x11   :  { %s2482_s22 = scalar_lea.vmem %s25_s21, 512  ;;  %p2487_p6 = scmp.lt.s32.totalorder %s25_s21, %s25_s21 }
  0x12   :  { %p2483_p5 = scmp.ne.s32.totalorder %s25_s21, %s2482_s22  ;;  %p2488_p7 = scmp.lt.s32.totalorder %s2482_s22, %s2482_s22 }
  0x14   :  { %p2489_p8 = por %p2488_p7, %p2487_p6 }
  0x16   :  { %p2490_p9 = pnand %p2489_p8, %p2483_p5 }
  0x18   :  { %2493 = shalt.err (!%p2490_p9)
}
  0x19   :  { %s2566_s23 = smov 128   ;;  %s2567_s24 = smov 8  }
  0x1a   :  { %30 = dma.hbm_to_vmem [thread:$0]  %s3336_s0, 512, %s25_s21, [#allocation5], %s2566_s23, %s2566_s23, %s2567_s24  }
  0x1b   :  { %s2568_s1 = smov [#allocation9]   ;;  %s2569_s28 = smov [#allocation10]  }
  0x1c   :  { %s52_s27 = sshll.u32 %s2568_s1, 4  ;;  %s68_s29 = sshll.u32 %s2569_s28, 4  ;;  %s53_s27 = int_to_ptr.vmem [resolvable:$true] %s52_s27  ;;  %s69_s29 = int_to_ptr.vmem [resolvable:$true] %s68_s29 }
  0x1d   :  { %s2502_s30 = scalar_lea.vmem %s53_s27, 3072  ;;  %p2507_p11 = scmp.lt.s32.totalorder %s53_s27, %s53_s27 }
  0x1e   :  { %p2503_p10 = scmp.ne.s32.totalorder %s53_s27, %s2502_s30  ;;  %p2508_p12 = scmp.lt.s32.totalorder %s2502_s30, %s2502_s30 }
  0x20   :  { %p2509_p13 = por %p2508_p12, %p2507_p11 }
  0x22   :  { %p2510_p0 = pnand %p2509_p13, %p2503_p10 }
  0x24   :  { %2513 = shalt.err (!%p2510_p0)
}
  0x25   :  { %58 = dma.hbm_to_vmem [thread:$0]  %s3340_s4, 3072, %s53_s27, [#allocation8], %s2563_s16, %s2563_s16, %s2564_s17  }
  0x26   :  { %s2522_s0 = scalar_lea.vmem %s69_s29, 1024  ;;  %p2527_p2 = scmp.lt.s32.totalorder %s69_s29, %s69_s29 }
  0x27   :  { %p2523_p1 = scmp.ne.s32.totalorder %s69_s29, %s2522_s0  ;;  %p2528_p3 = scmp.lt.s32.totalorder %s2522_s0, %s2522_s0 }
  0x29   :  { %p2529_p4 = por %p2528_p3, %p2527_p2 }
  0x2b   :  { %p2530_p5 = pnand %p2529_p4, %p2523_p1 }
  0x2d   :  { %2533 = shalt.err (!%p2530_p5)
}
  0x2e   :  { %74 = dma.hbm_to_vmem [thread:$0]  %s3343_s7, 1024, %s69_s29, [#allocation11], %s2563_s16, %s2563_s16, %s2564_s17  }
  0x2f   :  { %2554 = dma.done.wait [#allocation5], 512  }
  0x30   :  { %2555 = vsyncadd [#allocation5], 4294966784 }
  0x31   :  { %2556 = dma.done.wait [#allocation8], 6144  }
  0x32   :  { %2557 = vsyncadd [#allocation8], 4294961152 }
  0x33   :  { %2558 = dma.done.wait [#allocation11], 1024  }
  0x34   :  { %2559 = vsyncadd [#allocation11], 4294966272  ;;  %v2570_v0 = vmov 0.0   ;;  %vm2571_vm0 = vmmov 0   ;;  %v2572_v1 = vmov 0   ;;  %v2368_v2 = vld [vmem:[#allocation7 + $0x78] sm:$0xff]  }
  0x35   :  { %2142 = vmatprep.subr.bf16.mxu0 %v2570_v0  ;;  %2170 = vmatprep.subr.bf16.mxu1 %v2570_v0  ;;  %197 = vst [vmem:[#allocation2 + $0x10] sm:$0xc] %v2572_v1  ;;  %198 = vst [vmem:[#allocation2 + $0x14] sm:$0x1] %v2572_v1  ;;  %v2369_v3 = vld [vmem:[#allocation7 + $0x38] sm:$0xff]   ;;  %v2370_v4 = vld [vmem:[#allocation7 + $0x70] sm:$0xff]  }
  0x36   :  { %2158 = vmatprep.mubr.msk.bf16.mxu0 %vm2571_vm0, %v2570_v0  ;;  %2186 = vmatprep.mubr.msk.bf16.mxu1 %vm2571_vm0, %v2570_v0  ;;  %1300 = vst [vmem:[#allocation3 + $0x10] sm:$0xc] %v2572_v1  ;;  %1301 = vst [vmem:[#allocation3 + $0x14] sm:$0x1] %v2572_v1  ;;  %v2371_v5 = vld [vmem:[#allocation7 + $0x30] sm:$0xff]   ;;  %v2372_v6 = vld [vmem:[#allocation7 + $0x68] sm:$0xff]  }
  0x37   :  { %2143 = vmatpush3.bf16.msra.mxu0 %v2368_v2  ;;  %2171 = vmatpush3.bf16.msra.mxu1 %v2369_v3  ;;  %vm93_vm1 = vsmask.f32 256  ;;  %vm92_vm2 = vcmask 1040384   ;;  %v2373_v7 = vld [vmem:[#allocation7 + $0x28] sm:$0xff]   ;;  %vm98_vm3 = vsmask.f32 7938 }
  0x38   :  { %2144 = vmatprep.subr.bf16.mxu0 %v2570_v0  ;;  %2172 = vmatprep.subr.bf16.mxu1 %v2570_v0  ;;  %vm2671_vm4 = vmand %vm92_vm2, %vm93_vm1  ;;  %vm143_vm5 = vsmask.f32 1280  ;;  %v2374_v9 = vld [vmem:[#allocation7 + $0x60] sm:$0xff]   ;;  %vm142_vm6 = vcmask 1041409   ;;  %vm111_vm8 = vsmask.f32 4368 }
  0x39   :  { %v2375_v10 = vld [vmem:[#allocation7 + $0x20] sm:$0xff]   ;;  %vm2679_vm7 = vmand %vm92_vm2, %vm98_vm3  ;;  %vm148_vm10 = vsmask.f32 7942  ;;  %v2376_v13 = vld [vmem:[#allocation7 + $0x58] sm:$0xff]   ;;  %vm162_vm11 = vsmask.f32 5392 }
  0x3a   :  { %vm2685_vm9 = vmand %vm142_vm6, %vm143_vm5  ;;  %v2377_v14 = vld [vmem:[#allocation7 + $0x18] sm:$0xff]   ;;  %v95_v15 = vld [vmem:[#allocation2] sm:$0x1]  ;;  %vm133_vm12 = vcmask 1043456   ;;  %vm186_vm14 = vcmask 1043457  }
  0x3b   :  { %2145 = vmatpush3.bf16.msra.mxu0 %v2370_v4  ;;  %2173 = vmatpush3.bf16.msra.mxu1 %v2371_v5  ;;  %v100_v16 = vld [vmem:[#allocation2 + $0x8] sm:$0x1]  ;;  %v103_v17 = vld [vmem:[#allocation4] sm:$0xff]  ;;  %v96_v18 = vsel %vm2671_vm4, 0, %v95_v15  ;;  %v104_v20 = vld [vmem:[#allocation4 + $0x8] sm:$0xff] }
  0x3c   :  { %2146 = vmatprep.subr.bf16.mxu0 %v2570_v0  ;;  %2174 = vmatprep.subr.bf16.mxu1 %v2570_v0  ;;  %v101_v19 = vsel %vm2679_vm7, 0, %v100_v16  ;;  %v2057_v21 = vpack.c.bf16 %v103_v17, %v103_v17  ;;  %v145_v22 = vld [vmem:[#allocation2 + $0x8] sm:$0x2]  ;;  %v154_v23 = vld [vmem:[#allocation4 + $0x10] sm:$0xff]  ;;  %97 = vst [vmem:[#allocation2] sm:$0x1] %v96_v18  ;;  %v2058_v25 = vpack.c.bf16 %v104_v20, %v104_v20  ;;  %vm2701_vm13 = vmor %vm93_vm1, %vm111_vm8 }
  0x3d   :  { %v2378_v24 = vld [vmem:[#allocation7 + $0x50] sm:$0xff]   ;;  %102 = vst [vmem:[#allocation2 + $0x8] sm:$0x1] %v101_v19  ;;  %v146_v26 = vsel %vm2685_vm9, 0, %v145_v22  ;;  %v155_v27 = vld [vmem:[#allocation4 + $0x18] sm:$0xff]  ;;  %v2059_v28 = vpack.c.bf16 %v154_v23, %v154_v23  ;;  %v2380_v41 = vld [vmem:[#allocation7 + $0x48] sm:$0xff]  }
  0x3e   :  { %v2379_v29 = vld [vmem:[#allocation7 + $0x10] sm:$0xff]   ;;  %v114_v30 = vshrl.u32 %v2057_v21, 16  ;;  %v117_v31 = vshll.u32 %v2057_v21, 16  ;;  %147 = vst [vmem:[#allocation2 + $0x8] sm:$0x2] %v146_v26  ;;  %v2060_v32 = vpack.c.bf16 %v155_v27, %v155_v27  ;;  %v122_v33 = vshrl.u32 %v2058_v25, 16  ;;  %vm2707_vm15 = vmand %vm142_vm6, %vm148_vm10 }
  0x3f   :  { %2147 = vmatpush3.bf16.msra.mxu0 %v2372_v6  ;;  %2175 = vmatpush3.bf16.msra.mxu1 %v2373_v7  ;;  %v125_v34 = vshll.u32 %v2058_v25, 16  ;;  %v165_v35 = vshrl.u32 %v2059_v28, 16  ;;  %v168_v36 = vshll.u32 %v2059_v28, 16  ;;  %v2381_v46 = vld [vmem:[#allocation7 + $0x8] sm:$0xff]   ;;  %vm2714_vm1 = vmand %vm133_vm12, %vm98_vm3  ;;  %v2382_v52 = vld [vmem:[#allocation7 + $0x40] sm:$0xff]   ;;  %vm3347_vm6 = vcmask 1041408  }
  0x40   :  { %2148 = vmatprep.subr.bf16.mxu0 %v2570_v0  ;;  %2176 = vmatprep.subr.bf16.mxu1 %v2570_v0  ;;  %v116_v38 = vrot.slane %v114_v30, 7  ;;  %v174_v39 = vshrl.u32 %v2060_v32, 16  ;;  %v177_v40 = vshll.u32 %v2060_v32, 16  ;;  %v124_v42 = vrot.slane %v122_v33, 7  ;;  %vm2721_vm2 = vmand %vm186_vm14, %vm148_vm10  ;;  %v150_v57 = vld [vmem:[#allocation2 + $0x10] sm:$0x2] }
  0x41   :  { %v167_v43 = vrot.slane %v165_v35, 6  ;;  %v170_v44 = vrot.slane %v168_v36, 7  ;;  %vm2727_vm3 = vmor %vm143_vm5, %vm162_vm11  ;;  %v151_v62 = vsel %vm2707_vm15, 0, %v150_v57  ;;  %v2383_v63 = vld [vmem:[#allocation7] sm:$0xff]   ;;  %vm3348_vm10 = vcmask 1046528  }
  0x42   :  { %v119_v47 = vor.u32 %v117_v31, %v116_v38  ;;  %v120_v48 = vrot.slane %v116_v38, 4  ;;  %v176_v50 = vrot.slane %v174_v39, 6  ;;  %v179_v51 = vrot.slane %v177_v40, 7  ;;  %152 = vst [vmem:[#allocation2 + $0x10] sm:$0x2] %v151_v62  ;;  %vm2744_vm8 = vmand %vm3347_vm6, %vm143_vm5  ;;  %v2387_v31 = vld [vmem:[#allocation7 + $0xb0] sm:$0xff]  }
  0x43   :  { %2149 = vmatpush3.bf16.msra.mxu0 %v2374_v9  ;;  %2177 = vmatpush3.bf16.msra.mxu1 %v2375_v10  ;;  %v127_v53 = vor.u32 %v125_v34, %v124_v42  ;;  %v129_v54 = vrot.slane %v124_v42, 4  ;;  %v171_v55 = vor.u32 %v170_v44, %v167_v43  ;;  %v135_v58 = vld [vmem:[#allocation2] sm:$0xf]  ;;  %vm253_vm5 = vsmask.f32 7424  ;;  %v2388_v34 = vld [vmem:[#allocation7 + $0xa8] sm:$0xff]  }
  0x44   :  { %2150 = vmatprep.subr.bf16.mxu0 %v2570_v0  ;;  %2178 = vmatprep.subr.bf16.mxu1 %v2570_v0  ;;  %v139_v59 = vld [vmem:[#allocation2 + $0x8] sm:$0x1]  ;;  %v180_v61 = vor.u32 %v179_v51, %v176_v50  ;;  %v136_v2 = vsel %vm2714_vm1, %v119_v47, %v135_v58  ;;  %v220_v22 = vld [vmem:[#allocation2 + $0x14] sm:$0x1]  ;;  %v2392_v43 = vld [vmem:[#allocation7 + $0x90] sm:$0xff]  }
  0x45   :  { %v128_v1 = vsel %vm2701_vm13, %v120_v48, %v127_v53  ;;  %v140_v3 = vsel %vm2671_vm4, %v129_v54, %v139_v59  ;;  %v172_v4 = vrot.slane %v171_v55, 4  ;;  %v188_v5 = vld [vmem:[#allocation2 + $0x8] sm:$0xe]  ;;  %137 = vst [vmem:[#allocation2] sm:$0xf] %v136_v2  ;;  %v2390_v40 = vld [vmem:[#allocation7 + $0xa0] sm:$0xff]  }
  0x46   :  { %138 = vst [vmem:[#allocation2 + $0x4] sm:$0xf] %v128_v1  ;;  %141 = vst [vmem:[#allocation2 + $0x8] sm:$0x1] %v140_v3  ;;  %v189_v6 = vsel %vm2721_vm2, %v171_v55, %v188_v5  ;;  %v182_v7 = vrot.slane %v180_v61, 4  ;;  %v2391_v42 = vld [vmem:[#allocation7 + $0x98] sm:$0xff]  }
  0x47   :  { %2151 = vmatpush3.bf16.msra.mxu0 %v2376_v13  ;;  %2179 = vmatpush3.bf16.msra.mxu1 %v2377_v14  ;;  %v181_v10 = vsel %vm2727_vm3, %v172_v4, %v180_v61  ;;  %190 = vst [vmem:[#allocation2 + $0x8] sm:$0xe] %v189_v6  ;;  %v2395_v48 = vld [vmem:[#allocation7 + $0x80] sm:$0xff]   ;;  %v1210_v2 = vld [vmem:[#allocation3] sm:$0x1] }
  0x48   :  { %2152 = vmatprep.subr.bf16.mxu0 %v2570_v0  ;;  %2180 = vmatprep.subr.bf16.mxu1 %v2570_v0  ;;  %191 = vst [vmem:[#allocation2 + $0xc] sm:$0xf] %v181_v10  ;;  %v1211_v3 = vsel %vm2671_vm4, 0, %v1210_v2 }
  0x49   :  { %v194_v13 = vld [vmem:[#allocation2 + $0x10] sm:$0x3]  ;;  %1212 = vst [vmem:[#allocation3] sm:$0x1] %v1211_v3 }
  0x4a   :  { %v195_v16 = vsel %vm2744_vm8, %v182_v7, %v194_v13 }
  0x4b   :  { %2153 = vmatpush3.bf16.msra.mxu0 %v2378_v24  ;;  %2181 = vmatpush3.bf16.msra.mxu1 %v2379_v29  ;;  %196 = vst [vmem:[#allocation2 + $0x10] sm:$0x3] %v195_v16  ;;  %v2386_v24 = vld [vmem:[#allocation7 + $0xb8] sm:$0xff]  }
  0x4c   :  { %2154 = vmatprep.subr.bf16.mxu0 %v2570_v0  ;;  %2182 = vmatprep.subr.bf16.mxu1 %v2570_v0  ;;  %v199_v14 = vld [vmem:[#allocation2] sm:$0xf] }
  0x4d   :  { %v200_v15 = vld [vmem:[#allocation2 + $0x4] sm:$0xf]  ;;  %v492_v44 = vld [vmem:[#allocation2] sm:$0xe] }
  0x4e   :  { %v1955_v17 = vcombine.low %v199_v14, %v200_v15  ;;  %v1975_v47 = vcombine.low %v492_v44, %v200_v15 }
  0x4f   :  { %2155 = vmatpush3.bf16.msra.mxu0 %v2380_v41  ;;  %2183 = vmatpush3.bf16.msra.mxu1 %v2381_v46  ;;  %v2755_v18 = vld [vmem:[#allocation2 + $0x8] sm:$0xff]   ;;  %v2394_v46 = vld [vmem:[#allocation7 + $0x88] sm:$0xff]  }
  0x50   :  { %2156 = vmatprep.subr.bf16.mxu0 %v2570_v0  ;;  %2184 = vmatprep.subr.bf16.mxu1 %v2570_v0  ;;  %v255_v19 = vshrl.u32 %v1955_v17, 16  ;;  %v257_v20 = vshll.u32 %v1955_v17, 16  ;;  %v262_v21 = vshll.u32 %v2755_v18, 16  ;;  %v266_v26 = vshrl.u32 %v2755_v18, 16 }
  0x51   :  { %v514_v50 = vrot.slane %v1975_v47, 1  ;;  %v515_v51 = vrot.slane %v2755_v18, 1 }
  0x52   :  { %v259_v23 = vrot.slane %v257_v20, 1  ;;  %v264_v25 = vrot.slane %v262_v21, 1  ;;  %v203_v28 = vld [vmem:[#allocation2 + $0x10] sm:$0xf] }
  0x53   :  { %2157 = vmatpush3.bf16.msra.mxu0 %v2382_v52  ;;  %2185 = vmatpush3.bf16.msra.mxu1 %v2383_v63  ;;  %v1957_v30 = vcombine.low %v203_v28, %v220_v22  ;;  %v1966_v39 = vcombine.low %v203_v28, %v203_v28  ;;  %v516_v52 = vsel %vm3348_vm10, %v514_v50, %v515_v51 }
  0x54   :  { %2198 = vmatprep.subr.bf16.mxu0 %v2570_v0  ;;  %2226 = vmatprep.subr.bf16.mxu1 %v2570_v0  ;;  %v260_v27 = vor.u32 %v259_v23, %v255_v19  ;;  %v268_v32 = vor.u32 %v266_v26, %v264_v25  ;;  %v1213_v19 = vld [vmem:[#allocation3 + $0x8] sm:$0x1] }
  0x55   :  { %v270_v33 = vshll.u32 %v1957_v30, 16  ;;  %v274_v36 = vshrl.u32 %v1957_v30, 16  ;;  %v517_v53 = vrot.slane %v1957_v30, 1  ;;  %v1214_v21 = vsel %vm2679_vm7, 0, %v1213_v19 }
  0x56   :  { %2187 = vmatmul.mubr.bf16.vlgmr.msra.gmra.mxu1 %v1955_v17  ;;  %v265_v29 = vsel %vm253_vm5, %v260_v27, %v264_v25  ;;  %1215 = vst [vmem:[#allocation3 + $0x8] sm:$0x1] %v1214_v21 }
  0x57   :  { %2190 = vmatprep.mubr.msk.bf16.mxu1 %vm2571_vm0, %v2570_v0  ;;  %2159 = vmatmul.mubr.bf16.vlgmr.msra.gmra.mxu0 %v265_v29  ;;  %v272_v35 = vrot.slane %v270_v33, 1  ;;  %v518_v54 = vsel %vm3348_vm10, %v515_v51, %v517_v53  ;;  %v1984_v29 = vld [vmem:[%s3338_s2] ss:$0 sm:$0xff] }
  0x58   :  { %2199 = vmatpush3.bf16.msra.mxu0 %v2386_v24  ;;  %2162 = vmatprep.mubr.msk.bf16.mxu0 %vm2571_vm0, %v2570_v0 }
  0x59   :  { %2200 = vmatprep.subr.bf16.mxu0 %v2570_v0  ;;  %v273_v38 = vsel %vm253_vm5, %v268_v32, %v272_v35  ;;  %v276_v41 = vor.u32 %v274_v36, %v272_v35 }
  0x5c   :  { %2201 = vmatpush3.bf16.msra.mxu0 %v2387_v31  ;;  %v1985_v31 = vld [vmem:[%s3339_s3] ss:$0 sm:$0xff] }
  0x5d   :  { %2202 = vmatprep.subr.bf16.mxu0 %v2570_v0 }
  0x5e   :  { %2191 = vmatmul.mubr.bf16.gmra.mxu1 %v2755_v18 }
  0x5f   :  { %2194 = vmatprep.mubr.msk.bf16.mxu1 %vm2571_vm0, %v2570_v0  ;;  %2163 = vmatmul.mubr.bf16.gmra.mxu0 %v273_v38 }
  0x60   :  { %2203 = vmatpush3.bf16.msra.mxu0 %v2388_v34  ;;  %2166 = vmatprep.mubr.msk.bf16.mxu0 %vm2571_vm0, %v2570_v0 }
  0x61   :  { %2204 = vmatprep.subr.bf16.mxu0 %v2570_v0 }
  0x64   :  { %2205 = vmatpush3.bf16.msra.mxu0 %v2390_v40 }
  0x65   :  { %2206 = vmatprep.subr.bf16.mxu0 %v2570_v0 }
  0x66   :  { %2195 = vmatmul.mubr.bf16.gmra.mxu1 %v1966_v39 }
  0x67   :  { %2242 = vmatprep.mubr.msk.bf16.mxu1 %vm2571_vm0, %v2570_v0  ;;  %2167 = vmatmul.mubr.bf16.gmra.mxu0 %v276_v41 }
  0x68   :  { %2207 = vmatpush3.bf16.msra.mxu0 %v2391_v42  ;;  %2214 = vmatprep.mubr.msk.bf16.mxu0 %vm2571_vm0, %v2570_v0 }
  0x69   :  { %2208 = vmatprep.subr.bf16.mxu0 %v2570_v0 }
  0x6c   :  { %2209 = vmatpush3.bf16.msra.mxu0 %v2392_v43  ;;  %v1249_v43 = vld [vmem:[#allocation3 + $0x8] sm:$0x2] }
  0x6d   :  { %2210 = vmatprep.subr.bf16.mxu0 %v2570_v0 }
  0x70   :  { %2211 = vmatpush3.bf16.msra.mxu0 %v2394_v46 }
  0x71   :  { %2212 = vmatprep.subr.bf16.mxu0 %v2570_v0 }
  0x74   :  { %2213 = vmatpush3.bf16.msra.mxu0 %v2395_v48  ;;  %v1250_v48 = vsel %vm2685_vm9, 0, %v1249_v43 }
  0x75   :  { %2254 = vmatprep.subr.bf16.mxu0 %v2570_v0  ;;  %1251 = vst [vmem:[#allocation3 + $0x8] sm:$0x2] %v1250_v48 }
  0x77   :  { %2215 = vmatmul.mubr.bf16.vlgmr.msra.gmra.mxu0 %v516_v52 }
  0x78   :  { %2218 = vmatprep.mubr.msk.bf16.mxu0 %vm2571_vm0, %v2570_v0 }
  0x7f   :  { %2219 = vmatmul.mubr.bf16.gmra.mxu0 %v518_v54 }
  0x80   :  { %2222 = vmatprep.mubr.msk.bf16.mxu0 %vm2571_vm0, %v2570_v0 }
  0x87   :  { %2223 = vmatmul.mubr.bf16.gmra.mxu0 %v517_v53 }
  0x88   :  { %2270 = vmatprep.mubr.msk.bf16.mxu0 %vm2571_vm0, %v2570_v0 }
 0x116   :  { %v470_v55 = vpop.f32.mrf.mxu1 }
 0x117   :  { %v362_v60 = vpop.f32.mrf.mxu0 }
 0x118   :  { %v2188_v57 = vpop.f32.mrf.mxu1  ;;  %v471_v27 = vadd.f32 %v470_v55, %v362_v60 }
 0x119   :  { %v2160_v61 = vpop.f32.mrf.mxu0 }
 0x11a   :  { %v473_v58 = vpop.f32.mrf.mxu1 }
 0x11b   :  { %v365_v63 = vpop.f32.mrf.mxu0 }
 0x11c   :  { %v2189_v59 = vpop.f32.mrf.mxu1  ;;  %v474_v11 = vadd.f32 %v473_v58, %v365_v63 }
 0x11d   :  { %v2161_v4 = vpop.f32.mrf.mxu0 }
 0x11e   :  { %v478_v62 = vpop.f32.mrf.mxu1 }
 0x11f   :  { %v370_v6 = vpop.f32.mrf.mxu0 }
 0x120   :  { %v2192_v1 = vpop.f32.mrf.mxu1  ;;  %v479_v39 = vadd.f32 %v478_v62, %v370_v6 }
 0x121   :  { %v2164_v10 = vpop.f32.mrf.mxu0 }
 0x122   :  { %v481_v5 = vpop.f32.mrf.mxu1 }
 0x123   :  { %v373_v14 = vpop.f32.mrf.mxu0 }
 0x124   :  { %v2193_v7 = vpop.f32.mrf.mxu1  ;;  %v482_v16 = vadd.f32 %v481_v5, %v373_v14 }
 0x125   :  { %v2165_v17 = vpop.f32.mrf.mxu0 }
 0x126   :  { %v486_v13 = vpop.f32.mrf.mxu1 }
 0x127   :  { %v378_v20 = vpop.f32.mrf.mxu0 }
 0x128   :  { %v2196_v15 = vpop.f32.mrf.mxu1  ;;  %v487_v23 = vadd.f32 %v486_v13, %v378_v20 }
 0x129   :  { %v2168_v24 = vpop.f32.mrf.mxu0 }
 0x12a   :  { %v489_v18 = vpop.f32.mrf.mxu1 }
 0x12b   :  { %v381_v25 = vpop.f32.mrf.mxu0 }
 0x12c   :  { %v2197_v22 = vpop.f32.mrf.mxu1 }
 0x12d   :  { %v2169_v26 = vpop.f32.mrf.mxu0 }
 0x137   :  { %v604_v28 = vpop.f32.mrf.mxu0 }
 0x138   :  { %v626_v30 = vadd.f32 %v604_v28, %v471_v27 }
 0x139   :  { %v2216_v32 = vpop.f32.mrf.mxu0 }
 0x13a   :  { %v638_v33 = vmul.f32 %v1984_v29, %v626_v30 }
 0x13b   :  { %v607_v34 = vpop.f32.mrf.mxu0 }
 0x13c   :  { %v2801_v35 = vadd.f32 %v1985_v31, %v638_v33  ;;  %v627_v36 = vadd.f32 %v607_v34, %v474_v11  ;;  %v2573_v34 = vmov 683565275  }
 0x13d   :  { %v2217_v38 = vpop.f32.mrf.mxu0 }
 0x13e   :  { %v1986_v40 = vadd.f32 -0.7853982, %v2801_v35  ;;  %v639_v41 = vmul.f32 %v1984_v29, %v627_v36  ;;  %v2574_v38 = vmov 2475754826  }
 0x13f   :  { %v612_v42 = vpop.f32.mrf.mxu0 }
 0x140   :  { %v660_v44 = vmax.f32 %v1986_v40, -1.5707964  ;;  %v2804_v46 = vadd.f32 %v1985_v31, %v639_v41  ;;  %v628_v47 = vadd.f32 %v612_v42, %v479_v39  ;;  %v2575_v41 = vmov 2131351028  }
 0x141   :  { %v2220_v50 = vpop.f32.mrf.mxu0  ;;  %v2576_v42 = vmov 2102212464  }
 0x142   :  { %v665_v51 = vmin.f32 %v660_v44, 0.7853982  ;;  %v1987_v52 = vadd.f32 -0.7853982, %v2804_v46  ;;  %v640_v53 = vmul.f32 %v1984_v29, %v628_v47  ;;  %v2577_v44 = vmov 920167782  }
 0x143   :  { %v615_v54 = vpop.f32.mrf.mxu0 }
 0x144   :  { %v2809_v55 = vadd.f32 0.7853982, %v665_v51  ;;  %v661_v57 = vmax.f32 %v1987_v52, -1.5707964  ;;  %v2811_v58 = vadd.f32 %v1985_v31, %v640_v53  ;;  %v629_v59 = vadd.f32 %v615_v54, %v482_v16 }
 0x145   :  { %v2221_v60 = vpop.f32.mrf.mxu0  ;;  %v2578_v54 = vmov 1326507024  }
 0x146   :  { %v675_v61 = vand.u32 2147483647, %v2809_v55  ;;  %v678_v62 = vand.u32 2139095040, %v2809_v55  ;;  %v666_v12 = vmin.f32 %v661_v57, 0.7853982  ;;  %v641_v1 = vmul.f32 %v1984_v29, %v629_v59 }
 0x147   :  { %v1988_v63 = vadd.f32 -0.7853982, %v2811_v58  ;;  %v620_v2 = vpop.f32.mrf.mxu0 }
 0x148   :  { %v679_v3 = vshrl.u32 %v678_v62, 23  ;;  %v630_v4 = vadd.f32 %v620_v2, %v487_v23  ;;  %v682_v5 = vand.u32 8388607, %v675_v61  ;;  %v2818_v6 = vadd.f32 0.7853982, %v666_v12 }
 0x149   :  { %v662_v7 = vmax.f32 %v1988_v63, -1.5707964  ;;  %v2820_v10 = vadd.f32 %v1985_v31, %v641_v1  ;;  %v2224_v13 = vpop.f32.mrf.mxu0 }
 0x14a   :  { %v1991_v14 = vadd.s32 4294967169, %v679_v3  ;;  %v642_v15 = vmul.f32 %v1984_v29, %v630_v4  ;;  %v779_v16 = vand.u32 2147483647, %v2818_v6  ;;  %v782_v17 = vand.u32 2139095040, %v2818_v6 }
 0x14b   :  { %v623_v18 = vpop.f32.mrf.mxu0  ;;  %v683_v20 = vor.u32 8388608, %v682_v5  ;;  %v667_v23 = vmin.f32 %v662_v7, 0.7853982  ;;  %vm781_vm6 = vcmp.lt.s32.totalorder %v2818_v6, 0 }
 0x14c   :  { %v685_v19 = vadd.s32 1, %v1991_v14  ;;  %v783_v21 = vshrl.u32 %v782_v17, 23  ;;  %v786_v22 = vand.u32 8388607, %v779_v16  ;;  %v2826_v25 = vadd.f32 %v1985_v31, %v642_v15 }
 0x14d   :  { %v2225_v24 = vpop.f32.mrf.mxu0  ;;  %v2828_v30 = vshll.u32 %v683_v20, 8  ;;  %v2830_v11 = vadd.f32 0.7853982, %v667_v23 }
 0x14e   :  { %vm686_vm7 = vcmp.gt.s32.totalorder %v685_v19, 0  ;;  %v1995_v27 = vadd.s32 4294967169, %v783_v21  ;;  %v787_v32 = vor.u32 8388608, %v786_v22 }
 0x14f   :  { %v687_v26 = vsel %vm686_vm7, %v685_v19, 0 }
 0x150   :  { %v688_v28 = vshrl.u32 %v687_v26, 5  ;;  %v689_v29 = vand.u32 31, %v687_v26  ;;  %v789_v40 = vadd.s32 1, %v1995_v27  ;;  %v2854_v23 = vshll.u32 %v787_v32, 8 }
 0x152   :  { %v690_v33 = vsub.s32 32, %v689_v29  ;;  %v692_v36 = vshll.u32 %v2573_v34, %v689_v29  ;;  %v695_v39 = vshll.u32 %v2574_v38, %v689_v29  ;;  %v698_v31 = vshll.u32 %v2575_v41, %v689_v29 }
 0x153   :  { %v701_v43 = vshll.u32 %v2576_v42, %v689_v29  ;;  %v704_v47 = vshll.u32 %v2577_v44, %v689_v29  ;;  %vm707_vm9 = vcmp.lt.s32.totalorder %v688_v28, 1  ;;  %vm708_vm11 = vcmp.lt.s32.totalorder %v688_v28, 2 }
 0x154   :  { %v693_v48 = vshrl.u32 %v2574_v38, %v690_v33  ;;  %v696_v50 = vshrl.u32 %v2575_v41, %v690_v33  ;;  %v699_v51 = vshrl.u32 %v2576_v42, %v690_v33  ;;  %v691_v52 = vshrl.u32 %v2573_v34, %v690_v33 }
 0x155   :  { %v702_v53 = vshrl.u32 %v2577_v44, %v690_v33  ;;  %v705_v57 = vshrl.u32 %v2578_v54, %v690_v33  ;;  %vm709_vm12 = vcmp.lt.s32.totalorder %v688_v28, 3  ;;  %vm790_vm14 = vcmp.gt.s32.totalorder %v789_v40, 0 }
 0x156   :  { %v694_v59 = vor.u32 %v693_v48, %v692_v36  ;;  %v697_v60 = vor.u32 %v696_v50, %v695_v39  ;;  %v700_v62 = vor.u32 %v699_v51, %v698_v31  ;;  %vm710_vm3 = vcmp.lt.s32.totalorder %v688_v28, 4 }
 0x157   :  { %v703_v12 = vor.u32 %v702_v53, %v701_v43  ;;  %v706_v63 = vor.u32 %v705_v57, %v704_v47  ;;  %v791_v1 = vsel %vm790_vm14, %v789_v40, 0  ;;  %v886_v39 = vand.u32 2139095040, %v2830_v11 }
 0x158   :  { %v711_v2 = vsel %vm707_vm9, %v691_v52, %v694_v59  ;;  %v712_v3 = vsel %vm710_vm3, %v700_v62, 2102212464  ;;  %v715_v4 = vsel %vm707_vm9, %v694_v59, %v697_v60  ;;  %v719_v5 = vsel %vm707_vm9, %v697_v60, %v700_v62 }
 0x159   :  { %v713_v7 = vsel %vm709_vm12, %v697_v60, %v712_v3  ;;  %v716_v13 = vsel %vm710_vm3, %v703_v12, 920167782  ;;  %v720_v14 = vsel %vm710_vm3, %v706_v63, 1326507024  ;;  %v2847_v15 = vshrl.u32 %v791_v1, 5  ;;  %v2397_v60 = vld [vmem:[#allocation9 + $0x38] sm:$0xff]  }
 0x15a   :  { %v714_v17 = vsel %vm708_vm11, %v711_v2, %v713_v7  ;;  %v717_v18 = vsel %vm709_vm12, %v700_v62, %v716_v13  ;;  %v721_v19 = vsel %vm709_vm12, %v703_v12, %v720_v14  ;;  %v793_v20 = vand.u32 31, %v791_v1  ;;  %2255 = vmatpush3.bf16.msra.mxu0 %v2397_v60 }
 0x15b   :  { %v718_v21 = vsel %vm708_vm11, %v715_v4, %v717_v18  ;;  %v722_v22 = vsel %vm708_vm11, %v719_v5, %v721_v19  ;;  %v730_v33 = vmul.u32 %v2828_v30, %v714_v17  ;;  %vm811_vm7 = vcmp.lt.s32.totalorder %v2847_v15, 1  ;;  %2256 = vmatprep.subr.bf16.mxu0 %v2570_v0 }
 0x15c   :  { %v2857_v24 = vmul.u32.u64.low %v2828_v30, %v722_v22  ;;  %v2858_v26 = vmul.u32.u64.high %v2828_v30, %v722_v22, %v2857_v24  ;;  %v2861_v27 = vmul.u32.u64.low %v2828_v30, %v718_v21  ;;  %v2862_v29 = vmul.u32.u64.high %v2828_v30, %v718_v21, %v2861_v27 }
 0x15d   :  { %v794_v36 = vsub.s32 32, %v793_v20  ;;  %v796_v28 = vshll.u32 %v2573_v34, %v793_v20  ;;  %v799_v32 = vshll.u32 %v2574_v38, %v793_v20  ;;  %v802_v40 = vshll.u32 %v2575_v41, %v793_v20 }
 0x15e   :  { %v805_v31 = vshll.u32 %v2576_v42, %v793_v20  ;;  %v808_v30 = vshll.u32 %v2577_v44, %v793_v20  ;;  %vm732_vm9 = vc.u32 %v2858_v26, %v2861_v27  ;;  %v733_v50 = vadd.s32 1, %v2862_v29  ;;  %v2398_v20 = vld [vmem:[#allocation9 + $0x30] sm:$0xff]  }
 0x15f   :  { %v797_v43 = vshrl.u32 %v2574_v38, %v794_v36  ;;  %v800_v47 = vshrl.u32 %v2575_v41, %v794_v36  ;;  %v803_v48 = vshrl.u32 %v2576_v42, %v794_v36  ;;  %v806_v51 = vshrl.u32 %v2577_v44, %v794_v36  ;;  %2257 = vmatpush3.bf16.msra.mxu0 %v2398_v20  ;;  %v2403_v20 = vld [vmem:[#allocation9 + $0x18] sm:$0xff]  }
 0x160   :  { %vm812_vm11 = vcmp.lt.s32.totalorder %v2847_v15, 2  ;;  %v809_v59 = vshrl.u32 %v2578_v54, %v794_v36  ;;  %v734_v62 = vsel %vm732_vm9, %v733_v50, %v2862_v29  ;;  %vm814_vm12 = vcmp.lt.s32.totalorder %v2847_v15, 4  ;;  %2258 = vmatprep.subr.bf16.mxu0 %v2570_v0 }
 0x161   :  { %v798_v52 = vor.u32 %v797_v43, %v796_v28  ;;  %v801_v53 = vor.u32 %v800_v47, %v799_v32  ;;  %v804_v57 = vor.u32 %v803_v48, %v802_v40  ;;  %v807_v12 = vor.u32 %v806_v51, %v805_v31 }
 0x162   :  { %v887_v63 = vshrl.u32 %v886_v39, 23  ;;  %v735_v1 = vadd.s32 %v734_v62, %v730_v33  ;;  %v795_v2 = vshrl.u32 %v2573_v34, %v794_v36  ;;  %v810_v3 = vor.u32 %v809_v59, %v808_v30  ;;  %v2399_v30 = vld [vmem:[#allocation9 + $0x28] sm:$0xff]   ;;  %v2400_v59 = vld [vmem:[#allocation9 + $0x78] sm:$0xff]  }
 0x163   :  { %v816_v4 = vsel %vm814_vm12, %v804_v57, 2102212464  ;;  %vm813_vm14 = vcmp.lt.s32.totalorder %v2847_v15, 3  ;;  %v819_v5 = vsel %vm811_vm7, %v798_v52, %v801_v53  ;;  %v820_v7 = vsel %vm814_vm12, %v807_v12, 920167782  ;;  %2259 = vmatpush3.bf16.msra.mxu0 %v2399_v30  ;;  %2227 = vmatpush3.bf16.msra.mxu1 %v2400_v59 }
 0x164   :  { %v823_v13 = vsel %vm811_vm7, %v801_v53, %v804_v57  ;;  %v736_v14 = vadd.s32 536870912, %v735_v1  ;;  %v815_v17 = vsel %vm811_vm7, %v795_v2, %v798_v52  ;;  %v821_v18 = vsel %vm813_vm14, %v804_v57, %v820_v7  ;;  %2260 = vmatprep.subr.bf16.mxu0 %v2570_v0  ;;  %2228 = vmatprep.subr.bf16.mxu1 %v2570_v0 }
 0x165   :  { %v824_v19 = vsel %vm814_vm12, %v810_v3, 1326507024  ;;  %v817_v21 = vsel %vm813_vm14, %v801_v53, %v816_v4  ;;  %v822_v22 = vsel %vm812_vm11, %v819_v5, %v821_v18  ;;  %v1999_v29 = vadd.s32 4294967169, %v887_v63  ;;  %v2401_v63 = vld [vmem:[#allocation9 + $0x20] sm:$0xff]  }
 0x166   :  { %v825_v24 = vsel %vm813_vm14, %v807_v12, %v824_v19  ;;  %v737_v33 = vshrl.u32 %v736_v14, 30  ;;  %v2898_v39 = vmul.u32.u64.low %v2854_v23, %v822_v22  ;;  %v2899_v28 = vmul.u32.u64.high %v2854_v23, %v822_v22, %v2898_v39 }
 0x167   :  { %v826_v36 = vsel %vm812_vm11, %v823_v13, %v825_v24  ;;  %v893_v31 = vadd.s32 1, %v1999_v29  ;;  %v818_v47 = vsel %vm812_vm11, %v815_v17, %v817_v21  ;;  %v1989_v48 = vadd.f32 -0.7853982, %v2820_v10  ;;  %2261 = vmatpush3.bf16.msra.mxu0 %v2401_v63  ;;  %v2402_v13 = vld [vmem:[#allocation9 + $0x70] sm:$0xff]  }
 0x168   :  { %v2903_v32 = vmul.u32.u64.low %v2854_v23, %v826_v36  ;;  %v2904_v40 = vmul.u32.u64.high %v2854_v23, %v826_v36, %v2903_v32  ;;  %v738_v43 = vshll.u32 %v737_v33, 30  ;;  %v837_v51 = vadd.s32 1, %v2899_v28  ;;  %2262 = vmatprep.subr.bf16.mxu0 %v2570_v0  ;;  %2229 = vmatpush3.bf16.msra.mxu1 %v2402_v13 }
 0x169   :  { %vm894_vm3 = vcmp.gt.s32.totalorder %v893_v31, 0  ;;  %v834_v53 = vmul.u32 %v2854_v23, %v818_v47  ;;  %v883_v57 = vand.u32 2147483647, %v2830_v11  ;;  %v663_v12 = vmax.f32 %v1989_v48, -1.5707964  ;;  %2230 = vmatprep.subr.bf16.mxu1 %v2570_v0  ;;  %v2404_v48 = vld [vmem:[#allocation9 + $0x68] sm:$0xff]  }
 0x16a   :  { %v2910_v50 = vsub.s32 %v735_v1, %v738_v43  ;;  %v895_v52 = vsel %vm894_vm3, %v893_v31, 0  ;;  %vm836_vm7 = vc.u32 %v2904_v40, %v2898_v39  ;;  %v1195_v2 = vmax.f32 %v2801_v35, 0.0 }
 0x16b   :  { %v838_v60 = vsel %vm836_vm7, %v837_v51, %v2899_v28  ;;  %v897_v62 = vand.u32 31, %v895_v52  ;;  %vm677_vm9 = vcmp.lt.s32.totalorder %v2809_v55, 0  ;;  %v761_v4 = vsub.s32 4, %v737_v33  ;;  %2263 = vmatpush3.bf16.msra.mxu0 %v2403_v20 }
 0x16c   :  { %v741_v15 = vsub.s32 0, %v2910_v50  ;;  %v839_v1 = vadd.s32 %v838_v60, %v834_v53  ;;  %v2926_v7 = vand.u32 8388607, %v883_v57  ;;  %v731_v14 = vadd.s32 %v2861_v27, %v2858_v26  ;;  %2264 = vmatprep.subr.bf16.mxu0 %v2570_v0  ;;  %v2405_v53 = vld [vmem:[#allocation9 + $0x10] sm:$0xff]   ;;  %2231 = vmatpush3.bf16.msra.mxu1 %v2404_v48 }
 0x16d   :  { %v898_v3 = vsub.s32 32, %v897_v62  ;;  %v2930_v18 = vshrl.u32 %v895_v52, 5  ;;  %v2932_v19 = vmin.f32 %v663_v12, 0.7853982  ;;  %v900_v22 = vshll.u32 %v2573_v34, %v897_v62  ;;  %2232 = vmatprep.subr.bf16.mxu1 %v2570_v0 }
 0x16e   :  { %v1992_v23 = vmin.u32 %v741_v15, %v2910_v50  ;;  %v840_v5 = vadd.s32 536870912, %v839_v1  ;;  %vm2942_vm11 = vcmp.le.f32.partialorder %v675_v61, 0.7853982  ;;  %v903_v36 = vshll.u32 %v2574_v38, %v897_v62 }
 0x16f   :  { %v901_v24 = vshrl.u32 %v2574_v38, %v898_v3  ;;  %v904_v29 = vshrl.u32 %v2575_v41, %v898_v3  ;;  %v907_v28 = vshrl.u32 %v2576_v42, %v898_v3  ;;  %v910_v32 = vshrl.u32 %v2577_v44, %v898_v3  ;;  %2265 = vmatpush3.bf16.msra.mxu0 %v2405_v53 }
 0x170   :  { %v743_v17 = vclz %v1992_v23  ;;  %v2935_v21 = vshrl.u32 %v840_v5, 30  ;;  %v2952_v31 = vsel %vm677_vm9, %v761_v4, %v737_v33  ;;  %v891_v61 = vor.u32 8388608, %v2926_v7  ;;  %2266 = vmatprep.subr.bf16.mxu0 %v2570_v0 }
 0x171   :  { %v909_v47 = vshll.u32 %v2576_v42, %v897_v62  ;;  %v902_v30 = vor.u32 %v901_v24, %v900_v22  ;;  %v905_v51 = vor.u32 %v904_v29, %v903_v36  ;;  %v906_v52 = vshll.u32 %v2575_v41, %v897_v62  ;;  %v2407_v22 = vld [vmem:[#allocation9 + $0x8] sm:$0xff]  }
 0x172   :  { %v1993_v27 = vadd.s32 4294967294, %v743_v17  ;;  %v842_v43 = vshll.u32 %v2935_v21, 30  ;;  %v913_v60 = vshrl.u32 %v2578_v54, %v898_v3  ;;  %vm915_vm14 = vcmp.lt.s32.totalorder %v2930_v18, 1 }
 0x173   :  { %v911_v33 = vor.u32 %v910_v32, %v909_v47  ;;  %v908_v23 = vor.u32 %v907_v28, %v906_v52  ;;  %v899_v5 = vshrl.u32 %v2573_v34, %v898_v3  ;;  %v912_v7 = vshll.u32 %v2577_v44, %v897_v62  ;;  %2267 = vmatpush3.bf16.msra.mxu0 %v2407_v22  ;;  %v2408_v47 = vld [vmem:[#allocation9 + $0x58] sm:$0xff]  }
 0x174   :  { %vm1994_vm12 = vcmp.lt.s32.totalorder %v1993_v27, 0  ;;  %v2959_v15 = vsub.s32 %v839_v1, %v842_v43  ;;  %vm917_vm3 = vcmp.lt.s32.totalorder %v2930_v18, 3  ;;  %v2406_v1 = vld [vmem:[#allocation9 + $0x60] sm:$0xff]   ;;  %vm918_vm7 = vcmp.lt.s32.totalorder %v2930_v18, 4  ;;  %2268 = vmatprep.subr.bf16.mxu0 %v2570_v0 }
 0x175   :  { %v746_v59 = vsel %vm1994_vm12, 0, %v1993_v27  ;;  %v914_v29 = vor.u32 %v913_v60, %v912_v7  ;;  %v923_v3 = vsel %vm915_vm14, %v902_v30, %v905_v51  ;;  %v924_v62 = vsel %vm918_vm7, %v911_v33, 920167782  ;;  %2233 = vmatpush3.bf16.msra.mxu1 %v2406_v1 }
 0x176   :  { %v747_v12 = vsub.s32 32, %v746_v59  ;;  %v751_v63 = vsub.s32 4294967266, %v746_v59  ;;  %v845_v4 = vsub.s32 0, %v2959_v15  ;;  %v748_v13 = vshll.u32 %v2910_v50, %v746_v59  ;;  %2234 = vmatprep.subr.bf16.mxu1 %v2570_v0 }
 0x177   :  { %v920_v50 = vsel %vm918_vm7, %v908_v23, 2102212464  ;;  %v764_v28 = vsel %vm2942_vm11, 0, %v2952_v31  ;;  %vm916_vm12 = vcmp.lt.s32.totalorder %v2930_v18, 2  ;;  %v2986_v43 = vadd.f32 -0.7853982, %v2826_v25 }
 0x178   :  { %v749_v17 = vshrl.u32 %v731_v14, %v747_v12  ;;  %v752_v20 = vadd.s32 127, %v751_v63  ;;  %v1996_v24 = vmin.u32 %v845_v4, %v2959_v15  ;;  %v925_v14 = vsel %vm917_vm3, %v908_v23, %v924_v62  ;;  %v2409_v31 = vld [vmem:[#allocation9] sm:$0xff]  }
 0x179   :  { %v919_v52 = vsel %vm915_vm14, %v899_v5, %v902_v30  ;;  %v926_v53 = vsel %vm916_vm12, %v923_v3, %v925_v14  ;;  %v927_v59 = vsel %vm915_vm14, %v905_v51, %v908_v23  ;;  %v921_v12 = vsel %vm917_vm3, %v905_v51, %v920_v50  ;;  %2235 = vmatpush3.bf16.msra.mxu1 %v2408_v47 }
 0x17a   :  { %v750_v27 = vor.u32 %v749_v17, %v748_v13  ;;  %v753_v36 = vshll.u32 %v752_v20, 23  ;;  %v847_v32 = vclz %v1996_v24  ;;  %v928_v63 = vsel %vm918_vm7, %v914_v29, 1326507024  ;;  %2236 = vmatprep.subr.bf16.mxu1 %v2570_v0  ;;  %2269 = vmatpush3.bf16.msra.mxu0 %v2409_v31 }
 0x17b   :  { %v931_v4 = vshll.u32 %v891_v61, 8  ;;  %v929_v5 = vsel %vm917_vm3, %v911_v33, %v928_v63  ;;  %v3003_v23 = vadd.f32 0.7853982, %v2932_v19  ;;  %v2411_v61 = vld [vmem:[#allocation9 + $0x50] sm:$0xff]   ;;  %v835_v19 = vadd.s32 %v2898_v39, %v2904_v40  ;;  %v2412_v40 = vld [vmem:[#allocation9 + $0x48] sm:$0xff]  }
 0x17c   :  { %v754_v48 = vor.u32 4788187, %v753_v36  ;;  %v1997_v60 = vadd.s32 4294967294, %v847_v32  ;;  %v757_v30 = vcvt.s32.f32 %v750_v27  ;;  %v930_v51 = vsel %vm916_vm12, %v927_v59, %v929_v5 }
 0x17d   :  { %v3008_v1 = vmul.u32.u64.low %v931_v4, %v926_v53  ;;  %v3009_v13 = vmul.u32.u64.high %v931_v4, %v926_v53, %v3008_v1  ;;  %v3012_v22 = vmul.u32.u64.low %v931_v4, %v930_v51  ;;  %v3013_v24 = vmul.u32.u64.high %v931_v4, %v930_v51, %v3012_v22  ;;  %2237 = vmatpush3.bf16.msra.mxu1 %v2411_v61 }
 0x17e   :  { %v755_v7 = vand.u32 2147483647, %v754_v48  ;;  %vm1998_vm14 = vcmp.lt.s32.totalorder %v1997_v60, 0  ;;  %v922_v3 = vsel %vm916_vm12, %v919_v52, %v921_v12  ;;  %v865_v27 = vsub.s32 4, %v2935_v21  ;;  %2238 = vmatprep.subr.bf16.mxu1 %v2570_v0  ;;  %v3025_v48 = vld [vmem:[#allocation10 + $0x38] sm:$0xff]   ;;  %v2414_v12 = vld [vmem:[#allocation9 + $0x40] sm:$0xff]  }
 0x17f   :  { %v850_v20 = vsel %vm1998_vm14, 0, %v1997_v60  ;;  %v990_v36 = vand.u32 2139095040, %v3003_v23  ;;  %v664_v50 = vmax.f32 %v2986_v43, -1.5707964  ;;  %v941_v39 = vadd.s32 1, %v3009_v13  ;;  %2310 = vmatprep.subr.bf16.mxu0 %v3025_v48 }
 0x180   :  { %v758_v17 = vmul.f32 %v757_v30, %v755_v7  ;;  %v851_v33 = vsub.s32 32, %v850_v20  ;;  %v855_v29 = vsub.s32 4294967266, %v850_v20  ;;  %v852_v14 = vshll.u32 %v2959_v15, %v850_v20  ;;  %v1252_v60 = vld [vmem:[#allocation3 + $0x10] sm:$0x2] }
 0x181   :  { %v768_v52 = vadd.s32 3, %v764_v28  ;;  %v938_v53 = vmul.u32 %v931_v4, %v922_v3  ;;  %vm940_vm3 = vc.u32 %v3013_v24, %v3008_v1  ;;  %2239 = vmatpush3.bf16.msra.mxu1 %v2412_v40  ;;  %v987_v28 = vand.u32 2147483647, %v3003_v23 }
 0x182   :  { %v759_v62 = vxor.u32 2147483648, %v758_v17  ;;  %v853_v32 = vshrl.u32 %v835_v19, %v851_v33  ;;  %v856_v47 = vadd.s32 127, %v855_v29  ;;  %v942_v31 = vsel %vm940_vm3, %v941_v39, %v3009_v13  ;;  %2240 = vmatprep.subr.bf16.mxu1 %v2570_v0 }
 0x183   :  { %v943_v63 = vadd.s32 %v942_v31, %v938_v53  ;;  %v991_v4 = vshrl.u32 %v990_v36, 23  ;;  %v866_v26 = vsel %vm781_vm6, %v865_v27, %v2935_v21  ;;  %v669_v30 = vmin.f32 %v664_v50, 0.7853982 }
 0x184   :  { %v760_v18 = vsel %vm677_vm9, %v759_v62, %v758_v17  ;;  %v854_v15 = vor.u32 %v853_v32, %v852_v14  ;;  %v857_v59 = vshll.u32 %v856_v47, 23  ;;  %v1196_v5 = vmax.f32 %v2804_v46, 0.0 }
 0x185   :  { %v763_v43 = vsel %vm2942_vm11, %v2809_v55, %v760_v18  ;;  %v944_v51 = vadd.s32 536870912, %v943_v63  ;;  %v2003_v13 = vadd.s32 4294967169, %v991_v4  ;;  %v1253_v61 = vsel %vm2707_vm15, 0, %v1252_v60  ;;  %2241 = vmatpush3.bf16.msra.mxu1 %v2414_v12 }
 0x186   :  { %2434 = vcosq.f32 %v763_v43  ;;  %v858_v7 = vor.u32 4788187, %v857_v59  ;;  %vm3046_vm9 = vcmp.le.f32.partialorder %v779_v16, 0.7853982  ;;  %v861_v22 = vcvt.s32.f32 %v854_v15  ;;  %1254 = vst [vmem:[#allocation3 + $0x10] sm:$0x2] %v1253_v61  ;;  %2282 = vmatprep.subr.bf16.mxu1 %v2570_v0 }
 0x187   :  { %2436 = vsinq.f32 %v763_v43  ;;  %v3050_v19 = vadd.f32 0.7853982, %v669_v30  ;;  %v868_v46 = vsel %vm3046_vm9, 0, %v866_v26  ;;  %v945_v21 = vshrl.u32 %v944_v51, 30 }
 0x188   :  { %v859_v20 = vand.u32 2147483647, %v858_v7  ;;  %v994_v45 = vand.u32 8388607, %v987_v28  ;;  %v997_v33 = vadd.s32 1, %v2003_v13  ;;  %v769_v16 = vand.u32 3, %v768_v52 }
 0x189   :  { %v1094_v3 = vand.u32 2139095040, %v3050_v19  ;;  %v1200_v62 = vmul.f32 0.05, %v1195_v2  ;;  %v946_v27 = vshll.u32 %v945_v21, 30  ;;  %v872_v50 = vadd.s32 3, %v868_v46 }
 0x18a   :  { %v862_v29 = vmul.f32 %v861_v22, %v859_v20  ;;  %vm998_vm15 = vcmp.gt.s32.totalorder %v997_v33, 0  ;;  %v3060_v14 = vmul.f32 0.05, %v1196_v5  ;;  %vm885_vm11 = vcmp.lt.s32.totalorder %v2830_v11, 0 }
 0x18b   :  { %v999_v32 = vsel %vm998_vm15, %v997_v33, 0  ;;  %v3063_v47 = vsub.s32 %v943_v63, %v946_v27  ;;  %v995_v39 = vor.u32 8388608, %v994_v45  ;;  %vm770_vm7 = vcmp.lt.s32.totalorder %v769_v16, 2 }
 0x18c   :  { %v863_v36 = vxor.u32 2147483648, %v862_v29  ;;  %v1001_v40 = vand.u32 31, %v999_v32  ;;  %v969_v52 = vsub.s32 4, %v945_v21  ;;  %v1095_v35 = vshrl.u32 %v1094_v3, 23 }
 0x18d   :  { %vm767_vm12 = vweird.f32 %v2809_v55  ;;  %vm771_vm14 = vcmp.eq.s32.totalorder %v769_v16, 0  ;;  %v949_v53 = vsub.s32 0, %v3063_v47  ;;  %vm774_vm3 = vcmp.eq.s32.totalorder %v769_v16, 2 }
 0x18e   :  { %v864_v18 = vsel %vm781_vm6, %v863_v36, %v862_v29  ;;  %v1002_v43 = vsub.s32 32, %v1001_v40  ;;  %v3072_v15 = vand.u32 3, %v872_v50  ;;  %v939_v59 = vadd.s32 %v3008_v1, %v3013_v24 }
 0x18f   :  { %v867_v2 = vsel %vm3046_vm9, %v2818_v6, %v864_v18  ;;  %v2000_v31 = vmin.u32 %v949_v53, %v3063_v47  ;;  %v3077_v60 = vshll.u32 %v995_v39, 8  ;;  %v1091_v12 = vand.u32 2147483647, %v3050_v19 }
 0x190   :  { %2438 = vcosq.f32 %v867_v2  ;;  %v3082_v4 = vsel %vm885_vm11, %v969_v52, %v945_v21  ;;  %v3084_v7 = vshrl.u32 %v999_v32, 5  ;;  %v1005_v26 = vshrl.u32 %v2574_v38, %v1002_v43 }
 0x191   :  { %2440 = vsinq.f32 %v867_v2  ;;  %v3087_v30 = vadd.s32 4294967169, %v1095_v35  ;;  %v951_v24 = vclz %v2000_v31  ;;  %v1008_v51 = vshrl.u32 %v2575_v41, %v1002_v43 }
 0x192   :  { %v1011_v13 = vshrl.u32 %v2576_v42, %v1002_v43  ;;  %v1004_v17 = vshll.u32 %v2573_v34, %v1001_v40  ;;  %v1007_v20 = vshll.u32 %v2574_v38, %v1001_v40  ;;  %v1010_v22 = vshll.u32 %v2575_v41, %v1001_v40 }
 0x193   :  { %v2435_v63 = vpop.eup %2434  ;;  %v2001_v21 = vadd.s32 4294967294, %v951_v24  ;;  %v1013_v45 = vshll.u32 %v2576_v42, %v1001_v40  ;;  %v1014_v33 = vshrl.u32 %v2577_v44, %v1002_v43  ;;  %v1016_v27 = vshll.u32 %v2577_v44, %v1001_v40 }
 0x194   :  { %v2437_v5 = vpop.eup %2436  ;;  %v775_v1 = vxor.u32 2147483648, %v2435_v63  ;;  %v1006_v3 = vor.u32 %v1005_v26, %v1004_v17  ;;  %v1017_v36 = vshrl.u32 %v2578_v54, %v1002_v43  ;;  %vm878_vm6 = vcmp.eq.s32.totalorder %v3072_v15, 2 }
 0x195   :  { %v772_v61 = vxor.u32 2147483648, %v2437_v5  ;;  %vm2002_vm9 = vcmp.lt.s32.totalorder %v2001_v21, 0  ;;  %v1009_v32 = vor.u32 %v1008_v51, %v1007_v20  ;;  %v1012_v39 = vor.u32 %v1011_v13, %v1010_v22 }
 0x196   :  { %v776_v46 = vsel %vm774_vm3, %v775_v1, %v2437_v5  ;;  %vm875_vm15 = vcmp.eq.s32.totalorder %v3072_v15, 0  ;;  %v954_v52 = vsel %vm2002_vm9, 0, %v2001_v21  ;;  %v1015_v35 = vor.u32 %v1014_v33, %v1013_v45 }
 0x197   :  { %v773_v29 = vsel %vm771_vm14, %v2435_v63, %v772_v61  ;;  %v1018_v2 = vor.u32 %v1017_v36, %v1016_v27  ;;  %vm874_vm14 = vcmp.lt.s32.totalorder %v3072_v15, 2  ;;  %v955_v40 = vsub.s32 32, %v954_v52  ;;  %v1242_v36 = vld [vmem:[#allocation3] sm:$0xf] }
 0x198   :  { %v777_v50 = vsel %vm770_vm7, %v773_v29, %v776_v46  ;;  %v959_v31 = vsub.s32 4294967266, %v954_v52  ;;  %v1003_v16 = vshrl.u32 %v2573_v34, %v1002_v43  ;;  %vm871_vm7 = vweird.f32 %v2818_v6 }
 0x199   :  { %v778_v18 = vsel %vm767_vm12, nan, %v777_v50  ;;  %v956_v63 = vshll.u32 %v3063_v47, %v954_v52  ;;  %vm1019_vm3 = vcmp.lt.s32.totalorder %v3084_v7, 1  ;;  %vm1020_vm12 = vcmp.lt.s32.totalorder %v3084_v7, 2 }
 0x19a   :  { %v1205_v53 = vadd.f32 %v1200_v62, %v778_v18  ;;  %vm1021_vm10 = vcmp.lt.s32.totalorder %v3084_v7, 3  ;;  %v957_v26 = vshrl.u32 %v939_v59, %v955_v40  ;;  %v960_v5 = vadd.s32 127, %v959_v31 }
 0x19b   :  { %vm1022_vm9 = vcmp.lt.s32.totalorder %v3084_v7, 4  ;;  %v1023_v62 = vsel %vm1019_vm3, %v1003_v16, %v1006_v3  ;;  %v1031_v43 = vsel %vm1019_vm3, %v1009_v32, %v1012_v39  ;;  %v1027_v59 = vsel %vm1019_vm3, %v1006_v3, %v1009_v32 }
 0x19c   :  { %v2061_v55 = vpack.c.bf16 %v1205_v53, %v1205_v53  ;;  %v1028_v1 = vsel %vm1022_vm9, %v1015_v35, 920167782  ;;  %v1032_v24 = vsel %vm1022_vm9, %v1018_v2, 1326507024  ;;  %v958_v13 = vor.u32 %v957_v26, %v956_v63 }
 0x19d   :  { %v2439_v47 = vpop.eup %2438  ;;  %v961_v61 = vshll.u32 %v960_v5, 23  ;;  %v1024_v17 = vsel %vm1022_vm9, %v1012_v39, 2102212464  ;;  %v1029_v46 = vsel %vm1021_vm10, %v1012_v39, %v1028_v1  ;;  %v1033_v21 = vsel %vm1021_vm10, %v1015_v35, %v1032_v24 }
 0x19e   :  { %v1223_v51 = vshrl.u32 %v2061_v55, 16  ;;  %v2441_v20 = vpop.eup %2440  ;;  %v879_v22 = vxor.u32 2147483648, %v2439_v47  ;;  %v1226_v33 = vshll.u32 %v2061_v55, 16  ;;  %v965_v18 = vcvt.s32.f32 %v958_v13 }
 0x19f   :  { %v876_v29 = vxor.u32 2147483648, %v2441_v20  ;;  %v962_v27 = vor.u32 4788187, %v961_v61  ;;  %v1025_v52 = vsel %vm1021_vm10, %v1009_v32, %v1024_v17  ;;  %v1034_v3 = vsel %vm1020_vm12, %v1031_v43, %v1033_v21  ;;  %v1246_v21 = vld [vmem:[#allocation3 + $0x8] sm:$0x1] }
 0x1a0   :  { %v3123_v45 = vrot.slane %v1223_v51, 7  ;;  %v880_v50 = vsel %vm878_vm6, %v879_v22, %v2441_v20  ;;  %v1030_v53 = vsel %vm1020_vm12, %v1027_v59, %v1029_v46  ;;  %v1101_v32 = vadd.s32 1, %v3087_v30 }
 0x1a1   :  { %v877_v35 = vsel %vm875_vm15, %v2439_v47, %v876_v29  ;;  %v963_v2 = vand.u32 2147483647, %v962_v27  ;;  %v3139_v31 = vmul.u32.u64.low %v3077_v60, %v1034_v3  ;;  %v3140_v16 = vmul.u32.u64.high %v3077_v60, %v1034_v3, %v3139_v31 }
 0x1a2   :  { %v1228_v39 = vor.u32 %v1226_v33, %v3123_v45  ;;  %v881_v40 = vsel %vm874_vm14, %v877_v35, %v880_v50  ;;  %v1026_v5 = vsel %vm1020_vm12, %v1023_v62, %v1025_v52  ;;  %vm1102_vm10 = vcmp.gt.s32.totalorder %v1101_v32, 0 }
 0x1a3   :  { %v882_v55 = vsel %vm871_vm7, nan, %v881_v40  ;;  %v966_v26 = vmul.f32 %v965_v18, %v963_v2  ;;  %v3151_v1 = vmul.u32.u64.low %v3077_v60, %v1030_v53  ;;  %v3152_v43 = vmul.u32.u64.high %v3077_v60, %v1030_v53, %v3151_v1 }
 0x1a4   :  { %v1243_v63 = vsel %vm2714_vm1, %v1228_v39, %v1242_v36  ;;  %v1206_v15 = vadd.f32 %v3060_v14, %v882_v55  ;;  %vm3157_vm6 = vcmp.le.f32.partialorder %v883_v57, 0.7853982  ;;  %v1103_v30 = vsel %vm1102_vm10, %v1101_v32, 0 }
 0x1a5   :  { %1244 = vst [vmem:[#allocation3] sm:$0xf] %v1243_v63  ;;  %v967_v6 = vxor.u32 2147483648, %v966_v26  ;;  %v972_v7 = vsel %vm3157_vm6, 0, %v3082_v4  ;;  %v1098_v14 = vand.u32 8388607, %v1091_v12  ;;  %v1042_v47 = vmul.u32 %v3077_v60, %v1026_v5 }
 0x1a6   :  { %v2062_v24 = vpack.c.bf16 %v1206_v15, %v1206_v15  ;;  %vm1044_vm1 = vc.u32 %v3140_v16, %v3151_v1  ;;  %v1105_v57 = vand.u32 31, %v1103_v30  ;;  %v1229_v51 = vrot.slane %v3123_v45, 4 }
 0x1a7   :  { %v968_v62 = vsel %vm885_vm11, %v967_v6, %v966_v26  ;;  %v1045_v4 = vadd.s32 1, %v3152_v43  ;;  %v3176_v20 = vshrl.u32 %v1103_v30, 5  ;;  %v1099_v26 = vor.u32 8388608, %v1098_v14 }
 0x1a8   :  { %v1231_v13 = vshrl.u32 %v2062_v24, 16  ;;  %v971_v61 = vsel %vm3157_vm6, %v2830_v11, %v968_v62  ;;  %v1234_v17 = vshll.u32 %v2062_v24, 16  ;;  %v1106_v22 = vsub.s32 32, %v1105_v57 }
 0x1a9   :  { %2442 = vcosq.f32 %v971_v61  ;;  %v1046_v60 = vsel %vm1044_vm1, %v1045_v4, %v3152_v43  ;;  %v1108_v46 = vshll.u32 %v2573_v34, %v1105_v57  ;;  %v1111_v29 = vshll.u32 %v2574_v38, %v1105_v57 }
 0x1aa   :  { %v1233_v59 = vrot.slane %v1231_v13, 7  ;;  %2444 = vsinq.f32 %v971_v61  ;;  %v1047_v45 = vadd.s32 %v1046_v60, %v1042_v47  ;;  %v1109_v33 = vshrl.u32 %v2574_v38, %v1106_v22 }
 0x1ab   :  { %v1112_v27 = vshrl.u32 %v2575_v41, %v1106_v22  ;;  %v1114_v18 = vshll.u32 %v2575_v41, %v1105_v57  ;;  %v1115_v52 = vshrl.u32 %v2576_v42, %v1106_v22  ;;  %v1117_v35 = vshll.u32 %v2576_v42, %v1105_v57 }
 0x1ac   :  { %v1236_v36 = vor.u32 %v1234_v17, %v1233_v59  ;;  %v1238_v50 = vrot.slane %v1233_v59, 4  ;;  %v1048_v3 = vadd.s32 536870912, %v1047_v45  ;;  %v1110_v39 = vor.u32 %v1109_v33, %v1108_v46 }
 0x1ad   :  { %v1118_v2 = vshrl.u32 %v2577_v44, %v1106_v22  ;;  %v1113_v40 = vor.u32 %v1112_v27, %v1111_v29  ;;  %v1116_v31 = vor.u32 %v1115_v52, %v1114_v18  ;;  %v1120_v63 = vshll.u32 %v2577_v44, %v1105_v57  ;;  %v2419_v29 = vld [vmem:[#allocation10 + $0x30] sm:$0xff]  }
 0x1ae   :  { %v1237_v53 = vsel %vm2701_vm13, %v1229_v51, %v1236_v36  ;;  %v1247_v38 = vsel %vm2671_vm4, %v1238_v50, %v1246_v21  ;;  %v3191_v32 = vshrl.u32 %v1048_v3, 30  ;;  %v1121_v55 = vshrl.u32 %v2578_v54, %v1106_v22 }
 0x1af   :  { %1245 = vst [vmem:[#allocation3 + $0x4] sm:$0xf] %v1237_v53  ;;  %1248 = vst [vmem:[#allocation3 + $0x8] sm:$0x1] %v1247_v38  ;;  %v1119_v41 = vor.u32 %v1118_v2, %v1117_v35  ;;  %v976_v42 = vadd.s32 3, %v972_v7  ;;  %v1107_v5 = vshrl.u32 %v2573_v34, %v1106_v22  ;;  %vm1123_vm4 = vcmp.lt.s32.totalorder %v3176_v20, 1 }
 0x1b0   :  { %v1050_v15 = vshll.u32 %v3191_v32, 30  ;;  %v1122_v43 = vor.u32 %v1121_v55, %v1120_v63  ;;  %vm1126_vm11 = vcmp.lt.s32.totalorder %v3176_v20, 4  ;;  %vm1124_vm15 = vcmp.lt.s32.totalorder %v3176_v20, 2  ;;  %v1302_v22 = vld [vmem:[#allocation3] sm:$0xf] }
 0x1b1   :  { %vm1125_vm14 = vcmp.lt.s32.totalorder %v3176_v20, 3  ;;  %v1131_v8 = vsel %vm1123_vm4, %v1110_v39, %v1113_v40  ;;  %v1132_v49 = vsel %vm1126_vm11, %v1119_v41, 920167782  ;;  %v1128_v54 = vsel %vm1126_vm11, %v1116_v31, 2102212464  ;;  %v2421_v38 = vld [vmem:[#allocation10 + $0x28] sm:$0xff]  }
 0x1b2   :  { %v3201_v44 = vsub.s32 %v1047_v45, %v1050_v15  ;;  %v1133_v6 = vsel %vm1125_vm14, %v1116_v31, %v1132_v49  ;;  %v1135_v30 = vsel %vm1123_vm4, %v1113_v40, %v1116_v31  ;;  %v977_v24 = vand.u32 3, %v976_v42 }
 0x1b3   :  { %v1134_v34 = vsel %vm1124_vm15, %v1131_v8, %v1133_v6  ;;  %v1136_v7 = vsel %vm1126_vm11, %v1122_v43, 1326507024  ;;  %v1139_v14 = vshll.u32 %v1099_v26, 8  ;;  %v1127_v47 = vsel %vm1123_vm4, %v1107_v5, %v1110_v39  ;;  %v2423_v5 = vld [vmem:[#allocation10 + $0x20] sm:$0xff]  }
 0x1b4   :  { %v1053_v62 = vsub.s32 0, %v3201_v44  ;;  %v1137_v57 = vsel %vm1125_vm14, %v1119_v41, %v1136_v7  ;;  %v1129_v13 = vsel %vm1125_vm14, %v1113_v40, %v1128_v54  ;;  %v1197_v21 = vmax.f32 %v2811_v58, 0.0 }
 0x1b5   :  { %v1138_v61 = vsel %vm1124_vm15, %v1135_v30, %v1137_v57  ;;  %v3208_v4 = vmul.u32.u64.low %v1139_v14, %v1134_v34  ;;  %v3209_v17 = vmul.u32.u64.high %v1139_v14, %v1134_v34, %v3208_v4  ;;  %vm982_vm7 = vcmp.eq.s32.totalorder %v977_v24, 2 }
 0x1b6   :  { %v2443_v51 = vpop.eup %2442  ;;  %v3212_v59 = vld [vmem:[#allocation3 + $0x4] sm:$0xf]  ;;  %v2004_v45 = vmin.u32 %v1053_v62, %v3201_v44  ;;  %v3219_v36 = vmul.u32.u64.low %v1139_v14, %v1138_v61  ;;  %v3220_v50 = vmul.u32.u64.high %v1139_v14, %v1138_v61, %v3219_v36  ;;  %vm979_vm3 = vcmp.eq.s32.totalorder %v977_v24, 0  ;;  %v2427_v61 = vld [vmem:[#allocation10 + $0x10] sm:$0xff]  }
 0x1b7   :  { %v2445_v60 = vpop.eup %2444  ;;  %v983_v46 = vxor.u32 2147483648, %v2443_v51  ;;  %v3217_v33 = vcombine.low %v1302_v22, %v3212_v59  ;;  %v1130_v3 = vsel %vm1124_vm15, %v1127_v47, %v1129_v13  ;;  %vm978_vm12 = vcmp.lt.s32.totalorder %v977_v24, 2 }
 0x1b8   :  { %v980_v27 = vxor.u32 2147483648, %v2445_v60  ;;  %v1055_v52 = vclz %v2004_v45  ;;  %v1149_v39 = vadd.s32 1, %v3209_v17  ;;  %vm975_vm9 = vweird.f32 %v2830_v11 }
 0x1b9   :  { %v984_v18 = vsel %vm982_vm7, %v983_v46, %v2445_v60  ;;  %2271 = vmatmul.mubr.bf16.vlgmr.msra.gmra.mxu0 %v3217_v33  ;;  %v1202_v2 = vmul.f32 0.05, %v1197_v21  ;;  %v1146_v40 = vmul.u32 %v1139_v14, %v1130_v3  ;;  %vm1148_vm10 = vc.u32 %v3220_v50, %v3208_v4  ;;  %v2429_v21 = vld [vmem:[#allocation10 + $0x8] sm:$0xff]  }
 0x1ba   :  { %v981_v58 = vsel %vm979_vm3, %v2443_v51, %v980_v27  ;;  %2274 = vmatprep.mubr.msk.bf16.mxu0 %vm2571_vm0, %v2570_v0  ;;  %2311 = vmatpush3.bf16.msra.mxu0 %v3025_v48  ;;  %v2005_v53 = vadd.s32 4294967294, %v1055_v52  ;;  %v1150_v41 = vsel %vm1148_vm10, %v1149_v39, %v3209_v17  ;;  %v1043_v11 = vadd.s32 %v3151_v1, %v3140_v16  ;;  %v2425_v16 = vld [vmem:[#allocation10 + $0x18] sm:$0xff]   ;;  %v1293_v1 = vld [vmem:[#allocation3 + $0x8] sm:$0xe]  ;;  %v2431_v52 = vld [vmem:[#allocation10] sm:$0xff]  }
 0x1bb   :  { %v985_v35 = vsel %vm978_vm12, %v981_v58, %v984_v18  ;;  %2312 = vmatprep.subr.bf16.mxu0 %v2419_v29  ;;  %v1151_v55 = vadd.s32 %v1150_v41, %v1146_v40  ;;  %vm989_vm1 = vcmp.lt.s32.totalorder %v3003_v23, 0  ;;  %v1073_v45 = vsub.s32 4, %v3191_v32 }
 0x1bc   :  { %v986_v20 = vsel %vm975_vm9, nan, %v985_v35  ;;  %vm2006_vm6 = vcmp.lt.s32.totalorder %v2005_v53, 0  ;;  %vm1093_vm14 = vcmp.lt.s32.totalorder %v3050_v19, 0  ;;  %vm3265_vm3 = vcmp.le.f32.partialorder %v1091_v12, 0.7853982 }
 0x1bd   :  { %v1207_v31 = vadd.f32 %v1202_v2, %v986_v20  ;;  %v1058_v63 = vsel %vm2006_vm6, 0, %v2005_v53  ;;  %v1152_v15 = vadd.s32 536870912, %v1151_v55  ;;  %v1074_v3 = vsel %vm989_vm1, %v1073_v45, %v3191_v32 }
 0x1be   :  { %2313 = vmatpush3.bf16.msra.mxu0 %v2419_v29  ;;  %v1059_v42 = vsub.s32 32, %v1058_v63  ;;  %v1063_v26 = vsub.s32 4294967266, %v1058_v63  ;;  %v1060_v8 = vshll.u32 %v3201_v44, %v1058_v63  ;;  %vm1079_vm12 = vweird.f32 %v3003_v23 }
 0x1bf   :  { %v2063_v48 = vpack.c.bf16 %v1207_v31, %v1207_v31  ;;  %2314 = vmatprep.subr.bf16.mxu0 %v2421_v38  ;;  %v3236_v6 = vshrl.u32 %v1152_v15, 30  ;;  %v1359_v45 = vshll.u32 %v3217_v33, 16 }
 0x1c0   :  { %v1061_v49 = vshrl.u32 %v1043_v11, %v1059_v42  ;;  %v1064_v54 = vadd.s32 127, %v1063_v26  ;;  %v1198_v26 = vmax.f32 %v2820_v10, 0.0 }
 0x1c1   :  { %v1266_v43 = vshrl.u32 %v2063_v48, 16  ;;  %v1269_v24 = vshll.u32 %v2063_v48, 16  ;;  %v1154_v14 = vshll.u32 %v3236_v6, 30 }
 0x1c2   :  { %2315 = vmatpush3.bf16.msra.mxu0 %v2421_v38  ;;  %v1062_v34 = vor.u32 %v1061_v49, %v1060_v8  ;;  %v1065_v7 = vshll.u32 %v1064_v54, 23  ;;  %v1177_v8 = vsub.s32 4, %v3236_v6 }
 0x1c3   :  { %v3238_v30 = vrot.slane %v1266_v43, 7  ;;  %2316 = vmatprep.subr.bf16.mxu0 %v2423_v5  ;;  %v1155_v57 = vsub.s32 %v1151_v55, %v1154_v14 }
 0x1c4   :  { %v1066_v47 = vor.u32 4788187, %v1065_v7  ;;  %v1069_v13 = vcvt.s32.f32 %v1062_v34  ;;  %v1203_v34 = vmul.f32 0.05, %v1198_v26  ;;  %v1178_v14 = vsel %vm1093_vm14, %v1177_v8, %v3236_v6  ;;  %v2426_v26 = vld [vmem:[#allocation9 + $0x98] sm:$0xff]   ;;  %v1758_v8 = vld [vmem:[#allocation4 + $0x10] sm:$0xff] }
 0x1c5   :  { %v1271_v62 = vor.u32 %v1269_v24, %v3238_v30  ;;  %v1157_v17 = vsub.s32 0, %v1155_v57  ;;  %v1180_v12 = vsel %vm3265_vm3, 0, %v1178_v14  ;;  %v2432_v14 = vld [vmem:[#allocation9 + $0x80] sm:$0xff]  }
 0x1c6   :  { %2317 = vmatpush3.bf16.msra.mxu0 %v2423_v5  ;;  %v1067_v51 = vand.u32 2147483647, %v1066_v47 }
 0x1c7   :  { %v1294_v44 = vsel %vm2721_vm2, %v1271_v62, %v1293_v1  ;;  %2318 = vmatprep.subr.bf16.mxu0 %v2425_v16  ;;  %v2008_v60 = vmin.u32 %v1157_v17, %v1155_v57  ;;  %vm3248_vm2 = vcmp.le.f32.partialorder %v987_v28, 0.7853982  ;;  %v1147_v28 = vadd.s32 %v3208_v4, %v3220_v50 }
 0x1c8   :  { %1295 = vst [vmem:[#allocation3 + $0x8] sm:$0xe] %v1294_v44  ;;  %v1070_v22 = vmul.f32 %v1069_v13, %v1067_v51  ;;  %v1076_v2 = vsel %vm3248_vm2, 0, %v1074_v3  ;;  %v1272_v51 = vrot.slane %v3238_v30, 4 }
 0x1c9   :  { %v1159_v29 = vclz %v2008_v60  ;;  %v1080_v40 = vadd.s32 3, %v1076_v2 }
 0x1ca   :  { %2319 = vmatpush3.bf16.msra.mxu0 %v2425_v16  ;;  %v1071_v46 = vxor.u32 2147483648, %v1070_v22 }
 0x1cb   :  { %2320 = vmatprep.subr.bf16.mxu0 %v2427_v61  ;;  %v2009_v18 = vadd.s32 4294967294, %v1159_v29  ;;  %v1081_v63 = vand.u32 3, %v1080_v40  ;;  %v2420_v40 = vld [vmem:[#allocation9 + $0xb0] sm:$0xff]  }
 0x1cc   :  { %v1072_v27 = vsel %vm989_vm1, %v1071_v46, %v1070_v22  ;;  %v1199_v46 = vmax.f32 %v2826_v25, 0.0  ;;  %vm1183_vm1 = vweird.f32 %v3050_v19  ;;  %v1357_v25 = vshrl.u32 %v3217_v33, 16 }
 0x1cd   :  { %v1075_v36 = vsel %vm3248_vm2, %v3003_v23, %v1072_v27  ;;  %vm2010_vm4 = vcmp.lt.s32.totalorder %v2009_v18, 0  ;;  %vm1086_vm11 = vcmp.eq.s32.totalorder %v1081_v63, 2  ;;  %vm1083_vm15 = vcmp.eq.s32.totalorder %v1081_v63, 0 }
 0x1ce   :  { %2321 = vmatpush3.bf16.msra.mxu0 %v2427_v61  ;;  %2446 = vcosq.f32 %v1075_v36  ;;  %v1162_v58 = vsel %vm2010_vm4, 0, %v2009_v18  ;;  %vm1082_vm7 = vcmp.lt.s32.totalorder %v1081_v63, 2  ;;  %v1184_v23 = vadd.s32 3, %v1180_v12  ;;  %v1594_v12 = vld [vmem:[#allocation3] sm:$0xe] }
 0x1cf   :  { %2322 = vmatprep.subr.bf16.mxu0 %v2429_v21  ;;  %2448 = vsinq.f32 %v1075_v36  ;;  %v1163_v39 = vsub.s32 32, %v1162_v58  ;;  %v1167_v35 = vsub.s32 4294967266, %v1162_v58  ;;  %v1164_v53 = vshll.u32 %v1155_v57, %v1162_v58 }
 0x1d0   :  { %v1185_v17 = vand.u32 3, %v1184_v23  ;;  %v1204_v27 = vmul.f32 0.05, %v1199_v46  ;;  %vm3379_vm2 = vcmask 1041408  }
 0x1d1   :  { %v1165_v38 = vshrl.u32 %v1147_v28, %v1163_v39  ;;  %v1168_v20 = vadd.s32 127, %v1167_v35 }
 0x1d2   :  { %2323 = vmatpush3.bf16.msra.mxu0 %v2429_v21  ;;  %vm1190_vm9 = vcmp.eq.s32.totalorder %v1185_v17, 2  ;;  %vm1187_vm10 = vcmp.eq.s32.totalorder %v1185_v17, 0  ;;  %vm1186_vm6 = vcmp.lt.s32.totalorder %v1185_v17, 2 }
 0x1d3   :  { %2324 = vmatprep.subr.bf16.mxu0 %v2431_v52  ;;  %v1166_v31 = vor.u32 %v1165_v38, %v1164_v53  ;;  %v1169_v41 = vshll.u32 %v1168_v20, 23 }
 0x1d5   :  { %v1170_v32 = vor.u32 4788187, %v1169_v41  ;;  %v1173_v48 = vcvt.s32.f32 %v1166_v31  ;;  %v1297_v41 = vld [vmem:[#allocation3 + $0x10] sm:$0x3] }
 0x1d6   :  { %2325 = vmatpush3.bf16.msra.mxu0 %v2431_v52  ;;  %v1361_v52 = vrot.slane %v1359_v45, 1 }
 0x1d7   :  { %v1171_v55 = vand.u32 2147483647, %v1170_v32 }
 0x1d8   :  { %v1362_v39 = vor.u32 %v1361_v52, %v1357_v25 }
 0x1d9   :  { %v1174_v4 = vmul.f32 %v1173_v48, %v1171_v55  ;;  %v2422_v55 = vld [vmem:[#allocation9 + $0xa8] sm:$0xff]   ;;  %v2424_v48 = vld [vmem:[#allocation9 + $0xa0] sm:$0xff]  }
 0x1db   :  { %v2447_v11 = vpop.eup %2446  ;;  %v1175_v15 = vxor.u32 2147483648, %v1174_v4 }
 0x1dc   :  { %v2449_v50 = vpop.eup %2448  ;;  %v1087_v42 = vxor.u32 2147483648, %v2447_v11 }
 0x1dd   :  { %v1084_v5 = vxor.u32 2147483648, %v2449_v50  ;;  %v1176_v24 = vsel %vm1093_vm14, %v1175_v15, %v1174_v4  ;;  %v1757_v4 = vld [vmem:[#allocation4 + $0x8] sm:$0xff] }
 0x1de   :  { %v1088_v43 = vsel %vm1086_vm11, %v1087_v42, %v2449_v50  ;;  %v1179_v7 = vsel %vm3265_vm3, %v3050_v19, %v1176_v24  ;;  %v2416_v19 = vld [vmem:[#allocation9 + $0xb8] sm:$0xff]  }
 0x1df   :  { %v1085_v49 = vsel %vm1083_vm15, %v2447_v11, %v1084_v5  ;;  %2450 = vcosq.f32 %v1179_v7  ;;  %v1756_v11 = vld [vmem:[#allocation4] sm:$0xff]  ;;  %v1323_v50 = vld [vmem:[#allocation3 + $0x14] sm:$0x1] }
 0x1e0   :  { %v1089_v10 = vsel %vm1082_vm7, %v1085_v49, %v1088_v43  ;;  %2452 = vsinq.f32 %v1179_v7  ;;  %v1760_v37 = vpack.c.bf16 %v1757_v4, %v1756_v11  ;;  %v1759_v49 = vld [vmem:[#allocation4 + $0x18] sm:$0xff]  ;;  %v2046_v11 = vld [vmem:[%s3342_s6] ss:$0 sm:$0xff] }
 0x1e1   :  { %v1090_v16 = vsel %vm1079_vm12, nan, %v1089_v10  ;;  %v2428_v10 = vld [vmem:[#allocation9 + $0x90] sm:$0xff]   ;;  %v1761_v7 = vpack.c.bf16 %v1759_v49, %v1758_v8 }
 0x1e2   :  { %v1208_v1 = vadd.f32 %v1203_v34, %v1090_v16  ;;  %v2430_v16 = vld [vmem:[#allocation9 + $0x88] sm:$0xff]  }
 0x1e4   :  { %v2064_v62 = vpack.c.bf16 %v1208_v1, %v1208_v1 }
 0x1e6   :  { %v1274_v47 = vshrl.u32 %v2064_v62, 16  ;;  %v1277_v44 = vshll.u32 %v2064_v62, 16 }
 0x1e8   :  { %v1276_v57 = vrot.slane %v1274_v47, 7  ;;  %v2036_v47 = vcombine.low %v1594_v12, %v3212_v59 }
 0x1ea   :  { %v1279_v13 = vor.u32 %v1277_v44, %v1276_v57  ;;  %v1281_v33 = vrot.slane %v1276_v57, 4  ;;  %v1615_v44 = vrot.slane %v2036_v47, 1 }
 0x1ec   :  { %v1280_v61 = vsel %vm2701_vm13, %v1272_v51, %v1279_v13  ;;  %v2451_v22 = vpop.eup %2450 }
 0x1ed   :  { %1296 = vst [vmem:[#allocation3 + $0xc] sm:$0xf] %v1280_v61  ;;  %v2453_v60 = vpop.eup %2452  ;;  %v1191_v6 = vxor.u32 2147483648, %v2451_v22 }
 0x1ee   :  { %v1188_v21 = vxor.u32 2147483648, %v2453_v60 }
 0x1ef   :  { %v1192_v29 = vsel %vm1190_vm9, %v1191_v6, %v2453_v60 }
 0x1f0   :  { %v1189_v56 = vsel %vm1187_vm10, %v2451_v22, %v1188_v21 }
 0x1f1   :  { %v1193_v30 = vsel %vm1186_vm6, %v1189_v56, %v1192_v29 }
 0x1f2   :  { %v1194_v36 = vsel %vm1183_vm1, nan, %v1193_v30 }
 0x1f3   :  { %v1209_v3 = vadd.f32 %v1204_v27, %v1194_v36 }
 0x1f4   :  { %v3282_v18 = vld [vmem:[#allocation3 + $0x8] sm:$0xff]  }
 0x1f5   :  { %2275 = vmatmul.mubr.bf16.gmra.mxu0 %v3282_v18  ;;  %v1364_v58 = vshll.u32 %v3282_v18, 16  ;;  %v2065_v28 = vpack.c.bf16 %v1209_v3, %v1209_v3  ;;  %v1368_v9 = vshrl.u32 %v3282_v18, 16  ;;  %v1616_v57 = vrot.slane %v3282_v18, 1 }
 0x1f6   :  { %2278 = vmatprep.mubr.msk.bf16.mxu0 %vm2571_vm0, %v2570_v0 }
 0x1f7   :  { %v1366_v35 = vrot.slane %v1364_v58, 1  ;;  %v1283_v2 = vshrl.u32 %v2065_v28, 16  ;;  %v1286_v20 = vshll.u32 %v2065_v28, 16 }
 0x1f9   :  { %v1367_v53 = vsel %vm253_vm5, %v1362_v39, %v1366_v35  ;;  %v1285_v38 = vrot.slane %v1283_v2, 7  ;;  %v1370_v54 = vor.u32 %v1368_v9, %v1366_v35 }
 0x1fa   :  { %2243 = vmatmul.mubr.bf16.vlgmr.msra.gmra.mxu1 %v1367_v53  ;;  %v2055_v53 = vld [vmem:[%s3344_s8] ss:$0 sm:$0xff] }
 0x1fb   :  { %2283 = vmatpush3.bf16.msra.mxu1 %v2416_v19  ;;  %2246 = vmatprep.mubr.msk.bf16.mxu1 %vm2571_vm0, %v2570_v0  ;;  %v1288_v31 = vor.u32 %v1286_v20, %v1285_v38 }
 0x1fc   :  { %2284 = vmatprep.subr.bf16.mxu1 %v2570_v0 }
 0x1fd   :  { %v1289_v32 = vsel %vm2701_vm13, %v1281_v33, %v1288_v31  ;;  %vm3377_vm13 = vcmask 1046528  }
 0x1fe   :  { %v1298_v63 = vsel %vm2744_vm8, %v1289_v32, %v1297_v41  ;;  %v1617_v23 = vsel %vm3377_vm13, %v1615_v44, %v1616_v57  ;;  %vm3378_vm8 = vmmov %vm3377_vm13  ;;  %v2045_v41 = vld [vmem:[%s3341_s5] ss:$0 sm:$0xff]  ;;  %s2579_s5 = smov [#allocation12]  }
 0x1ff   :  { %2285 = vmatpush3.bf16.msra.mxu1 %v2420_v40  ;;  %1299 = vst [vmem:[#allocation3 + $0x10] sm:$0x3] %v1298_v63  ;;  %v2056_v32 = vld [vmem:[%s3345_s9] ss:$0 sm:$0xff]  ;;  %s1937_s6 = sshll.u32 %s2579_s5, 4  ;;  %s1938_s6 = int_to_ptr.vmem [resolvable:$true] %s1937_s6 }
 0x200   :  { %2286 = vmatprep.subr.bf16.mxu1 %v2570_v0  ;;  %s2534_s8 = scalar_lea.vmem %s1938_s6, 512  ;;  %p2539_p7 = scmp.lt.s32.totalorder %s1938_s6, %s1938_s6 }
 0x201   :  { %p2535_p6 = scmp.ne.s32.totalorder %s1938_s6, %s2534_s8  ;;  %p2540_p8 = scmp.lt.s32.totalorder %s2534_s8, %s2534_s8 }
 0x203   :  { %2287 = vmatpush3.bf16.msra.mxu1 %v2422_v55  ;;  %p2541_p9 = por %p2540_p8, %p2539_p7 }
 0x204   :  { %2288 = vmatprep.subr.bf16.mxu1 %v2570_v0 }
 0x205   :  { %p2542_p10 = pnand %p2541_p9, %p2535_p6 }
 0x206   :  { %v1306_v42 = vld [vmem:[#allocation3 + $0x10] sm:$0xf] }
 0x207   :  { %2289 = vmatpush3.bf16.msra.mxu1 %v2424_v48  ;;  %v2018_v5 = vcombine.low %v1306_v42, %v1323_v50  ;;  %v2027_v15 = vcombine.low %v1306_v42, %v1306_v42 }
 0x208   :  { %2290 = vmatprep.subr.bf16.mxu1 %v2570_v0 }
 0x209   :  { %2279 = vmatmul.mubr.bf16.gmra.mxu0 %v2027_v15  ;;  %v1372_v43 = vshll.u32 %v2018_v5, 16  ;;  %v1376_v1 = vshrl.u32 %v2018_v5, 16  ;;  %v1618_v51 = vrot.slane %v2018_v5, 1 }
 0x20a   :  { %2326 = vmatprep.mubr.bf16.mxu0 %v1760_v37 }
 0x20b   :  { %2291 = vmatpush3.bf16.msra.mxu1 %v2426_v26  ;;  %v1374_v24 = vrot.slane %v1372_v43, 1  ;;  %v1619_v13 = vsel %vm3378_vm8, %v1616_v57, %v1618_v51 }
 0x20c   :  { %2292 = vmatprep.subr.bf16.mxu1 %v2570_v0 }
 0x20d   :  { %v1375_v34 = vsel %vm253_vm5, %v1370_v54, %v1374_v24  ;;  %v1378_v62 = vor.u32 %v1376_v1, %v1374_v24 }
 0x20e   :  { %2247 = vmatmul.mubr.bf16.gmra.mxu1 %v1375_v34 }
 0x20f   :  { %2250 = vmatprep.mubr.msk.bf16.mxu1 %vm2571_vm0, %v2570_v0  ;;  %2293 = vmatpush3.bf16.msra.mxu1 %v2428_v10 }
 0x210   :  { %2294 = vmatprep.subr.bf16.mxu1 %v2570_v0 }
 0x211   :  { %2327 = vmatmul.mubr.bf16.vlgmr.msra.gmra.mxu0 %v1761_v7 }
 0x213   :  { %2295 = vmatpush3.bf16.msra.mxu1 %v2430_v16 }
 0x214   :  { %2296 = vmatprep.subr.bf16.mxu1 %v2570_v0 }
 0x216   :  { %2251 = vmatmul.mubr.bf16.gmra.mxu1 %v1378_v62 }
 0x217   :  { %2297 = vmatpush3.bf16.msra.mxu1 %v2432_v14  ;;  %2298 = vmatprep.mubr.msk.bf16.mxu1 %vm2571_vm0, %v2570_v0 }
 0x21e   :  { %2299 = vmatmul.mubr.bf16.vlgmr.msra.gmra.mxu1 %v1617_v23 }
 0x21f   :  { %2302 = vmatprep.mubr.msk.bf16.mxu1 %vm2571_vm0, %v2570_v0 }
 0x226   :  { %2303 = vmatmul.mubr.bf16.gmra.mxu1 %v1619_v13 }
 0x227   :  { %2306 = vmatprep.mubr.msk.bf16.mxu1 %vm2571_vm0, %v2570_v0 }
 0x22e   :  { %2307 = vmatmul.mubr.bf16.gmra.mxu1 %v1618_v51 }
 0x279   :  { %v1572_v61 = vpop.f32.mrf.mxu0 }
 0x27b   :  { %v2272_v17 = vpop.f32.mrf.mxu0 }
 0x27d   :  { %v1575_v59 = vpop.f32.mrf.mxu0 }
 0x27f   :  { %v2273_v22 = vpop.f32.mrf.mxu0 }
 0x2b5   :  { %v1580_v60 = vpop.f32.mrf.mxu0 }
 0x2b7   :  { %v2276_v6 = vpop.f32.mrf.mxu0 }
 0x2b9   :  { %v1583_v46 = vpop.f32.mrf.mxu0 }
 0x2ba   :  { %v1464_v21 = vpop.f32.mrf.mxu1 }
 0x2bb   :  { %v2277_v45 = vpop.f32.mrf.mxu0  ;;  %v1573_v40 = vadd.f32 %v1572_v61, %v1464_v21 }
 0x2bc   :  { %v2244_v29 = vpop.f32.mrf.mxu1 }
 0x2be   :  { %v1467_v56 = vpop.f32.mrf.mxu1 }
 0x2bf   :  { %v1576_v48 = vadd.f32 %v1575_v59, %v1467_v56 }
 0x2c0   :  { %v2245_v30 = vpop.f32.mrf.mxu1 }
 0x2c9   :  { %v1588_v27 = vpop.f32.mrf.mxu0 }
 0x2cb   :  { %v2280_v36 = vpop.f32.mrf.mxu0 }
 0x2cd   :  { %v1591_v18 = vpop.f32.mrf.mxu0 }
 0x2ce   :  { %v1472_v52 = vpop.f32.mrf.mxu1 }
 0x2cf   :  { %v2281_v3 = vpop.f32.mrf.mxu0  ;;  %v1581_v8 = vadd.f32 %v1580_v60, %v1472_v52 }
 0x2d0   :  { %v2248_v25 = vpop.f32.mrf.mxu1 }
 0x2d1   :  { %v2328_v58 = vpop.f32.mrf.mxu0 }
 0x2d2   :  { %v1475_v0 = vpop.f32.mrf.mxu1  ;;  %v1884_v42 = vmul.f32 %v2328_v58, %v2055_v53 }
 0x2d3   :  { %v1860_v35 = vpop.f32.mrf.mxu0  ;;  %v1584_v12 = vadd.f32 %v1583_v46, %v1475_v0 }
 0x2d4   :  { %v2249_v28 = vpop.f32.mrf.mxu1  ;;  %v1882_v33 = vmul.f32 %v2055_v53, %v1860_v35  ;;  %v1895_v54 = vadd.f32 %v2056_v32, %v1884_v42 }
 0x2d5   :  { %v2329_v38 = vpop.f32.mrf.mxu0 }
 0x2d6   :  { %v1480_v39 = vpop.f32.mrf.mxu1  ;;  %v1893_v26 = vadd.f32 %v2056_v32, %v1882_v33  ;;  %v1885_v15 = vmul.f32 %v2329_v38, %v2055_v53  ;;  %v1910_v57 = vrot.slane %v1895_v54, 6 }
 0x2d7   :  { %v1863_v63 = vpop.f32.mrf.mxu0  ;;  %v1589_v6 = vadd.f32 %v1588_v27, %v1480_v39 }
 0x2d8   :  { %v2252_v19 = vpop.f32.mrf.mxu1  ;;  %v1883_v37 = vmul.f32 %v2055_v53, %v1863_v63  ;;  %v1896_v7 = vadd.f32 %v2056_v32, %v1885_v15 }
 0x2da   :  { %v1483_v2 = vpop.f32.mrf.mxu1  ;;  %v1894_v34 = vadd.f32 %v2056_v32, %v1883_v37  ;;  %v1911_v13 = vrot.slane %v1896_v7, 6 }
 0x2dc   :  { %v2253_v20 = vpop.f32.mrf.mxu1  ;;  %v1912_v46 = vsel %vm3379_vm2, %v1910_v57, %v1911_v13 }
 0x2de   :  { %v1705_v31 = vpop.f32.mrf.mxu1 }
 0x2df   :  { %v1727_v55 = vadd.f32 %v1705_v31, %v1573_v40 }
 0x2e0   :  { %v2300_v4 = vpop.f32.mrf.mxu1 }
 0x2e1   :  { %v1739_v50 = vmul.f32 %v2045_v41, %v1727_v55 }
 0x2e2   :  { %v1708_v5 = vpop.f32.mrf.mxu1 }
 0x2e3   :  { %v1751_v9 = vadd.f32 %v2046_v11, %v1739_v50  ;;  %v1728_v43 = vadd.f32 %v1708_v5, %v1576_v48 }
 0x2e4   :  { %v2301_v49 = vpop.f32.mrf.mxu1 }
 0x2e5   :  { %v1897_v24 = vadd.f32 %v1893_v26, %v1751_v9  ;;  %v1740_v10 = vmul.f32 %v2045_v41, %v1728_v43 }
 0x2e6   :  { %v1713_v16 = vpop.f32.mrf.mxu1 }
 0x2e7   :  { %vm1899_vm0 = vcmp.ge.f32.partialorder %v1897_v24, 0.0  ;;  %v1901_v1 = vmul.f32 0.2, %v1897_v24  ;;  %v1752_v14 = vadd.f32 %v2046_v11, %v1740_v10  ;;  %v1729_v62 = vadd.f32 %v1713_v16, %v1581_v8 }
 0x2e8   :  { %v2304_v47 = vpop.f32.mrf.mxu1 }
 0x2e9   :  { %v1903_v44 = vsel %vm1899_vm0, %v1897_v24, %v1901_v1  ;;  %v1898_v23 = vadd.f32 %v1894_v34, %v1752_v14  ;;  %v1741_v51 = vmul.f32 %v2045_v41, %v1729_v62 }
 0x2ea   :  { %1905 = vst [vmem:[#allocation12] sm:$0xff] %v1903_v44  ;;  %v1716_v61 = vpop.f32.mrf.mxu1 }
 0x2eb   :  { %vm1900_vm5 = vcmp.ge.f32.partialorder %v1898_v23, 0.0  ;;  %v1902_v17 = vmul.f32 0.2, %v1898_v23  ;;  %v1753_v59 = vadd.f32 %v2046_v11, %v1741_v51  ;;  %v1730_v22 = vadd.f32 %v1716_v61, %v1584_v12 }
 0x2ec   :  { %v2305_v60 = vpop.f32.mrf.mxu1 }
 0x2ed   :  { %v1904_v21 = vsel %vm1900_vm5, %v1898_v23, %v1902_v17  ;;  %v1916_v45 = vadd.f32 %v1910_v57, %v1753_v59  ;;  %v1742_v29 = vmul.f32 %v2045_v41, %v1730_v22 }
 0x2ee   :  { %1906 = vst [vmem:[#allocation12 + $0x8] sm:$0xff] %v1904_v21  ;;  %v1721_v56 = vpop.f32.mrf.mxu1 }
 0x2ef   :  { %vm1919_vm4 = vcmp.ge.f32.partialorder %v1916_v45, 0.0  ;;  %v1922_v30 = vmul.f32 0.2, %v1916_v45  ;;  %v1754_v36 = vadd.f32 %v2046_v11, %v1742_v29  ;;  %v1731_v18 = vadd.f32 %v1721_v56, %v1589_v6 }
 0x2f0   :  { %v2308_v52 = vpop.f32.mrf.mxu1 }
 0x2f1   :  { %v1925_v3 = vsel %vm1919_vm4, %v1916_v45, %v1922_v30  ;;  %v1917_v25 = vadd.f32 %v1912_v46, %v1754_v36  ;;  %v1743_v0 = vmul.f32 %v2045_v41, %v1731_v18 }
 0x2f2   :  { %1929 = vst [vmem:[#allocation12 + $0xe] sm:$0xfc] %v1925_v3  ;;  %v1724_v58 = vpop.f32.mrf.mxu1 }
 0x2f3   :  { %vm1920_vm11 = vcmp.ge.f32.partialorder %v1917_v25, 0.0  ;;  %v1923_v28 = vmul.f32 0.2, %v1917_v25  ;;  %v1755_v27 = vadd.f32 %v2046_v11, %v1743_v0 }
 0x2f4   :  { %v2309_v39 = vpop.f32.mrf.mxu1 }
 0x2f5   :  { %v1926_v35 = vsel %vm1920_vm11, %v1917_v25, %v1923_v28  ;;  %v1918_v19 = vadd.f32 %v1911_v13, %v1755_v27 }
 0x2f6   :  { %1930 = vst [vmem:[#allocation12 + $0x16] sm:$0xff] %v1926_v35 }
 0x2f7   :  { %vm1921_vm15 = vcmp.ge.f32.partialorder %v1918_v19, 0.0  ;;  %v1924_v2 = vmul.f32 0.2, %v1918_v19 }
 0x2f9   :  { %v1927_v53 = vsel %vm1921_vm15, %v1918_v19, %v1924_v2 }
 0x2fa   :  { %1931 = vst [vmem:[#allocation12 + $0x1e] sm:$0x3] %v1927_v53 }
 0x2fb   :  { %2545 = shalt.err (!%p2542_p10)
}
 0x2fc   :  { %1943 = dma.vmem_to_hbm [thread:$0]  %s1938_s6, 512, %s3346_s10, [#allocation6], %s2566_s23, %s2566_s23, %s2567_s24  }
 0x2fd   :  { %2560 = dma.done.wait [#allocation6], 512  }
 0x2fe   :  { %2561 = vsyncadd [#allocation6], 4294966784 }
 0x2ff   :  { %1947 = vsyncpa [#allocation5], 1 }
 0x300   :  { %1948 = vsyncpa [#allocation8], 1 }
 0x301   :  { %1949 = vsyncpa [#allocation11], 1 }
 0x302   :  { %1950 = vsyncpa [#allocation6], 1 }

// kernel: tpu_custom_call.1
= control target key start
LH: loop header
LB: loop body
LE: loop exit
PB: predicated region body
PF: predicated region fallthrough
CT: control target
= control target key end

     0   :  { %15 = vsyncpa [#allocation5], 0  ;;  %s3336_s0 = inlined_call_operand.hbm [shape: f32[2,16,128], index: 0, kind: input, shape index: {}]   ;;  %s3337_s1 = inlined_call_operand.hbm [shape: bf16[3,128,128], index: 1, kind: input, shape index: {}]   ;;  %s3338_s2 = inlined_call_operand.vmem [shape: f32[1,128], index: 2, kind: input, shape index: {}]   ;;  %s3339_s3 = inlined_call_operand.vmem [shape: f32[1,128], index: 3, kind: input, shape index: {}]   ;;  %s3340_s4 = inlined_call_operand.hbm [shape: bf16[3,128,128], index: 4, kind: input, shape index: {}]   ;;  %s3341_s5 = inlined_call_operand.vmem [shape: f32[1,128], index: 5, kind: input, shape index: {}]   ;;  %s3342_s6 = inlined_call_operand.vmem [shape: f32[1,128], index: 6, kind: input, shape index: {}]   ;;  %s3343_s7 = inlined_call_operand.hbm [shape: bf16[128,128], index: 7, kind: input, shape index: {}]   ;;  %s3344_s8 = inlined_call_operand.vmem [shape: f32[1,128], index: 8, kind: input, shape index: {}]   ;;  %s3345_s9 = inlined_call_operand.vmem [shape: f32[1,128], index: 9, kind: input, shape index: {}]   ;;  %s3346_s10 = inlined_call_operand.hbm [shape: f32[2,16,128], index: 10, kind: output, shape index: {}]  }
   0x1   :  { %16 = vsyncpa [#allocation8], 0 }
   0x2   :  { %17 = vsyncpa [#allocation11], 0 }
   0x3   :  { %18 = vsyncpa [#allocation6], 0  ;;  %s2562_s13 = smov [#allocation7]  }
   0x4   :  { %s36_s14 = sshll.u32 %s2562_s13, 4  ;;  %s37_s14 = int_to_ptr.vmem [resolvable:$true] %s36_s14 }
   0x5   :  { %s2462_s15 = scalar_lea.vmem %s37_s14, 3072  ;;  %p2467_p1 = scmp.lt.s32.totalorder %s37_s14, %s37_s14 }
   0x6   :  { %p2463_p0 = scmp.ne.s32.totalorder %s37_s14, %s2462_s15  ;;  %p2468_p2 = scmp.lt.s32.totalorder %s2462_s15, %s2462_s15 }
   0x8   :  { %p2469_p3 = por %p2468_p2, %p2467_p1 }
   0xa   :  { %p2470_p4 = pnand %p2469_p3, %p2463_p0 }
   0xc   :  { %2473 = shalt.err (!%p2470_p4)
}
   0xd   :  { %s2563_s16 = smov 64   ;;  %s2564_s17 = smov 4  }
   0xe   :  { %42 = dma.hbm_to_vmem [thread:$0]  %s3337_s1, 3072, %s37_s14, [#allocation8], %s2563_s16, %s2563_s16, %s2564_s17  }
   0xf   :  { %s2565_s20 = smov [#allocation4]  }
  0x10   :  { %s24_s21 = sshll.u32 %s2565_s20, 4  ;;  %s25_s21 = int_to_ptr.vmem [resolvable:$true] %s24_s21 }
  0x11   :  { %s2482_s22 = scalar_lea.vmem %s25_s21, 512  ;;  %p2487_p6 = scmp.lt.s32.totalorder %s25_s21, %s25_s21 }
  0x12   :  { %p2483_p5 = scmp.ne.s32.totalorder %s25_s21, %s2482_s22  ;;  %p2488_p7 = scmp.lt.s32.totalorder %s2482_s22, %s2482_s22 }
  0x14   :  { %p2489_p8 = por %p2488_p7, %p2487_p6 }
  0x16   :  { %p2490_p9 = pnand %p2489_p8, %p2483_p5 }
  0x18   :  { %2493 = shalt.err (!%p2490_p9)
}
  0x19   :  { %s2566_s23 = smov 128   ;;  %s2567_s24 = smov 8  }
  0x1a   :  { %30 = dma.hbm_to_vmem [thread:$0]  %s3336_s0, 512, %s25_s21, [#allocation5], %s2566_s23, %s2566_s23, %s2567_s24  }
  0x1b   :  { %s2568_s1 = smov [#allocation9]   ;;  %s2569_s28 = smov [#allocation10]  }
  0x1c   :  { %s52_s27 = sshll.u32 %s2568_s1, 4  ;;  %s68_s29 = sshll.u32 %s2569_s28, 4  ;;  %s53_s27 = int_to_ptr.vmem [resolvable:$true] %s52_s27  ;;  %s69_s29 = int_to_ptr.vmem [resolvable:$true] %s68_s29 }
  0x1d   :  { %s2502_s30 = scalar_lea.vmem %s53_s27, 3072  ;;  %p2507_p11 = scmp.lt.s32.totalorder %s53_s27, %s53_s27 }
  0x1e   :  { %p2503_p10 = scmp.ne.s32.totalorder %s53_s27, %s2502_s30  ;;  %p2508_p12 = scmp.lt.s32.totalorder %s2502_s30, %s2502_s30 }
  0x20   :  { %p2509_p13 = por %p2508_p12, %p2507_p11 }
  0x22   :  { %p2510_p0 = pnand %p2509_p13, %p2503_p10 }
  0x24   :  { %2513 = shalt.err (!%p2510_p0)
}
  0x25   :  { %58 = dma.hbm_to_vmem [thread:$0]  %s3340_s4, 3072, %s53_s27, [#allocation8], %s2563_s16, %s2563_s16, %s2564_s17  }
  0x26   :  { %s2522_s0 = scalar_lea.vmem %s69_s29, 1024  ;;  %p2527_p2 = scmp.lt.s32.totalorder %s69_s29, %s69_s29 }
  0x27   :  { %p2523_p1 = scmp.ne.s32.totalorder %s69_s29, %s2522_s0  ;;  %p2528_p3 = scmp.lt.s32.totalorder %s2522_s0, %s2522_s0 }
  0x29   :  { %p2529_p4 = por %p2528_p3, %p2527_p2 }
  0x2b   :  { %p2530_p5 = pnand %p2529_p4, %p2523_p1 }
  0x2d   :  { %2533 = shalt.err (!%p2530_p5)
}
  0x2e   :  { %74 = dma.hbm_to_vmem [thread:$0]  %s3343_s7, 1024, %s69_s29, [#allocation11], %s2563_s16, %s2563_s16, %s2564_s17  }
  0x2f   :  { %2554 = dma.done.wait [#allocation5], 512  }
  0x30   :  { %2555 = vsyncadd [#allocation5], 4294966784 }
  0x31   :  { %2556 = dma.done.wait [#allocation8], 6144  }
  0x32   :  { %2557 = vsyncadd [#allocation8], 4294961152 }
  0x33   :  { %2558 = dma.done.wait [#allocation11], 1024  }
  0x34   :  { %2559 = vsyncadd [#allocation11], 4294966272  ;;  %v2570_v0 = vmov 0.0   ;;  %vm2571_vm0 = vmmov 0   ;;  %v2572_v1 = vmov 0   ;;  %v2368_v2 = vld [vmem:[#allocation7 + $0x78] sm:$0xff]  }
  0x35   :  { %2142 = vmatprep.subr.bf16.mxu0 %v2570_v0  ;;  %2170 = vmatprep.subr.bf16.mxu1 %v2570_v0  ;;  %197 = vst [vmem:[#allocation2 + $0x10] sm:$0xc] %v2572_v1  ;;  %198 = vst [vmem:[#allocation2 + $0x14] sm:$0x1] %v2572_v1  ;;  %v2369_v3 = vld [vmem:[#allocation7 + $0x38] sm:$0xff]   ;;  %v2370_v4 = vld [vmem:[#allocation7 + $0x70] sm:$0xff]  }
  0x36   :  { %2158 = vmatprep.mubr.msk.bf16.mxu0 %vm2571_vm0, %v2570_v0  ;;  %2186 = vmatprep.mubr.msk.bf16.mxu1 %vm2571_vm0, %v2570_v0  ;;  %1300 = vst [vmem:[#allocation3 + $0x10] sm:$0xc] %v2572_v1  ;;  %1301 = vst [vmem:[#allocation3 + $0x14] sm:$0x1] %v2572_v1  ;;  %v2371_v5 = vld [vmem:[#allocation7 + $0x30] sm:$0xff]   ;;  %v2372_v6 = vld [vmem:[#allocation7 + $0x68] sm:$0xff]  }
  0x37   :  { %2143 = vmatpush3.bf16.msra.mxu0 %v2368_v2  ;;  %2171 = vmatpush3.bf16.msra.mxu1 %v2369_v3  ;;  %vm93_vm1 = vsmask.f32 256  ;;  %vm92_vm2 = vcmask 1040384   ;;  %v2373_v7 = vld [vmem:[#allocation7 + $0x28] sm:$0xff]   ;;  %vm98_vm3 = vsmask.f32 7938 }
  0x38   :  { %2144 = vmatprep.subr.bf16.mxu0 %v2570_v0  ;;  %2172 = vmatprep.subr.bf16.mxu1 %v2570_v0  ;;  %vm2671_vm4 = vmand %vm92_vm2, %vm93_vm1  ;;  %vm143_vm5 = vsmask.f32 1280  ;;  %v2374_v9 = vld [vmem:[#allocation7 + $0x60] sm:$0xff]   ;;  %vm142_vm6 = vcmask 1041409   ;;  %vm111_vm8 = vsmask.f32 4368 }
  0x39   :  { %v2375_v10 = vld [vmem:[#allocation7 + $0x20] sm:$0xff]   ;;  %vm2679_vm7 = vmand %vm92_vm2, %vm98_vm3  ;;  %vm148_vm10 = vsmask.f32 7942  ;;  %v2376_v13 = vld [vmem:[#allocation7 + $0x58] sm:$0xff]   ;;  %vm162_vm11 = vsmask.f32 5392 }
  0x3a   :  { %vm2685_vm9 = vmand %vm142_vm6, %vm143_vm5  ;;  %v2377_v14 = vld [vmem:[#allocation7 + $0x18] sm:$0xff]   ;;  %v95_v15 = vld [vmem:[#allocation2] sm:$0x1]  ;;  %vm133_vm12 = vcmask 1043456   ;;  %vm186_vm14 = vcmask 1043457  }
  0x3b   :  { %2145 = vmatpush3.bf16.msra.mxu0 %v2370_v4  ;;  %2173 = vmatpush3.bf16.msra.mxu1 %v2371_v5  ;;  %v100_v16 = vld [vmem:[#allocation2 + $0x8] sm:$0x1]  ;;  %v103_v17 = vld [vmem:[#allocation4] sm:$0xff]  ;;  %v96_v18 = vsel %vm2671_vm4, 0, %v95_v15  ;;  %v104_v20 = vld [vmem:[#allocation4 + $0x8] sm:$0xff] }
  0x3c   :  { %2146 = vmatprep.subr.bf16.mxu0 %v2570_v0  ;;  %2174 = vmatprep.subr.bf16.mxu1 %v2570_v0  ;;  %v101_v19 = vsel %vm2679_vm7, 0, %v100_v16  ;;  %v2057_v21 = vpack.c.bf16 %v103_v17, %v103_v17  ;;  %v145_v22 = vld [vmem:[#allocation2 + $0x8] sm:$0x2]  ;;  %v154_v23 = vld [vmem:[#allocation4 + $0x10] sm:$0xff]  ;;  %97 = vst [vmem:[#allocation2] sm:$0x1] %v96_v18  ;;  %v2058_v25 = vpack.c.bf16 %v104_v20, %v104_v20  ;;  %vm2701_vm13 = vmor %vm93_vm1, %vm111_vm8 }
  0x3d   :  { %v2378_v24 = vld [vmem:[#allocation7 + $0x50] sm:$0xff]   ;;  %102 = vst [vmem:[#allocation2 + $0x8] sm:$0x1] %v101_v19  ;;  %v146_v26 = vsel %vm2685_vm9, 0, %v145_v22  ;;  %v155_v27 = vld [vmem:[#allocation4 + $0x18] sm:$0xff]  ;;  %v2059_v28 = vpack.c.bf16 %v154_v23, %v154_v23  ;;  %v2380_v41 = vld [vmem:[#allocation7 + $0x48] sm:$0xff]  }
  0x3e   :  { %v2379_v29 = vld [vmem:[#allocation7 + $0x10] sm:$0xff]   ;;  %v114_v30 = vshrl.u32 %v2057_v21, 16  ;;  %v117_v31 = vshll.u32 %v2057_v21, 16  ;;  %147 = vst [vmem:[#allocation2 + $0x8] sm:$0x2] %v146_v26  ;;  %v2060_v32 = vpack.c.bf16 %v155_v27, %v155_v27  ;;  %v122_v33 = vshrl.u32 %v2058_v25, 16  ;;  %vm2707_vm15 = vmand %vm142_vm6, %vm148_vm10 }
  0x3f   :  { %2147 = vmatpush3.bf16.msra.mxu0 %v2372_v6  ;;  %2175 = vmatpush3.bf16.msra.mxu1 %v2373_v7  ;;  %v125_v34 = vshll.u32 %v2058_v25, 16  ;;  %v165_v35 = vshrl.u32 %v2059_v28, 16  ;;  %v168_v36 = vshll.u32 %v2059_v28, 16  ;;  %v2381_v46 = vld [vmem:[#allocation7 + $0x8] sm:$0xff]   ;;  %vm2714_vm1 = vmand %vm133_vm12, %vm98_vm3  ;;  %v2382_v52 = vld [vmem:[#allocation7 + $0x40] sm:$0xff]   ;;  %vm3347_vm6 = vcmask 1041408  }
  0x40   :  { %2148 = vmatprep.subr.bf16.mxu0 %v2570_v0  ;;  %2176 = vmatprep.subr.bf16.mxu1 %v2570_v0  ;;  %v116_v38 = vrot.slane %v114_v30, 7  ;;  %v174_v39 = vshrl.u32 %v2060_v32, 16  ;;  %v177_v40 = vshll.u32 %v2060_v32, 16  ;;  %v124_v42 = vrot.slane %v122_v33, 7  ;;  %vm2721_vm2 = vmand %vm186_vm14, %vm148_vm10  ;;  %v150_v57 = vld [vmem:[#allocation2 + $0x10] sm:$0x2] }
  0x41   :  { %v167_v43 = vrot.slane %v165_v35, 6  ;;  %v170_v44 = vrot.slane %v168_v36, 7  ;;  %vm2727_vm3 = vmor %vm143_vm5, %vm162_vm11  ;;  %v151_v62 = vsel %vm2707_vm15, 0, %v150_v57  ;;  %v2383_v63 = vld [vmem:[#allocation7] sm:$0xff]   ;;  %vm3348_vm10 = vcmask 1046528  }
  0x42   :  { %v119_v47 = vor.u32 %v117_v31, %v116_v38  ;;  %v120_v48 = vrot.slane %v116_v38, 4  ;;  %v176_v50 = vrot.slane %v174_v39, 6  ;;  %v179_v51 = vrot.slane %v177_v40, 7  ;;  %152 = vst [vmem:[#allocation2 + $0x10] sm:$0x2] %v151_v62  ;;  %vm2744_vm8 = vmand %vm3347_vm6, %vm143_vm5  ;;  %v2387_v31 = vld [vmem:[#allocation7 + $0xb0] sm:$0xff]  }
  0x43   :  { %2149 = vmatpush3.bf16.msra.mxu0 %v2374_v9  ;;  %2177 = vmatpush3.bf16.msra.mxu1 %v2375_v10  ;;  %v127_v53 = vor.u32 %v125_v34, %v124_v42  ;;  %v129_v54 = vrot.slane %v124_v42, 4  ;;  %v171_v55 = vor.u32 %v170_v44, %v167_v43  ;;  %v135_v58 = vld [vmem:[#allocation2] sm:$0xf]  ;;  %vm253_vm5 = vsmask.f32 7424  ;;  %v2388_v34 = vld [vmem:[#allocation7 + $0xa8] sm:$0xff]  }
  0x44   :  { %2150 = vmatprep.subr.bf16.mxu0 %v2570_v0  ;;  %2178 = vmatprep.subr.bf16.mxu1 %v2570_v0  ;;  %v139_v59 = vld [vmem:[#allocation2 + $0x8] sm:$0x1]  ;;  %v180_v61 = vor.u32 %v179_v51, %v176_v50  ;;  %v136_v2 = vsel %vm2714_vm1, %v119_v47, %v135_v58  ;;  %v220_v22 = vld [vmem:[#allocation2 + $0x14] sm:$0x1]  ;;  %v2392_v43 = vld [vmem:[#allocation7 + $0x90] sm:$0xff]  }
  0x45   :  { %v128_v1 = vsel %vm2701_vm13, %v120_v48, %v127_v53  ;;  %v140_v3 = vsel %vm2671_vm4, %v129_v54, %v139_v59  ;;  %v172_v4 = vrot.slane %v171_v55, 4  ;;  %v188_v5 = vld [vmem:[#allocation2 + $0x8] sm:$0xe]  ;;  %137 = vst [vmem:[#allocation2] sm:$0xf] %v136_v2  ;;  %v2390_v40 = vld [vmem:[#allocation7 + $0xa0] sm:$0xff]  }
  0x46   :  { %138 = vst [vmem:[#allocation2 + $0x4] sm:$0xf] %v128_v1  ;;  %141 = vst [vmem:[#allocation2 + $0x8] sm:$0x1] %v140_v3  ;;  %v189_v6 = vsel %vm2721_vm2, %v171_v55, %v188_v5  ;;  %v182_v7 = vrot.slane %v180_v61, 4  ;;  %v2391_v42 = vld [vmem:[#allocation7 + $0x98] sm:$0xff]  }
  0x47   :  { %2151 = vmatpush3.bf16.msra.mxu0 %v2376_v13  ;;  %2179 = vmatpush3.bf16.msra.mxu1 %v2377_v14  ;;  %v181_v10 = vsel %vm2727_vm3, %v172_v4, %v180_v61  ;;  %190 = vst [vmem:[#allocation2 + $0x8] sm:$0xe] %v189_v6  ;;  %v2395_v48 = vld [vmem:[#allocation7 + $0x80] sm:$0xff]   ;;  %v1210_v2 = vld [vmem:[#allocation3] sm:$0x1] }
  0x48   :  { %2152 = vmatprep.subr.bf16.mxu0 %v2570_v0  ;;  %2180 = vmatprep.subr.bf16.mxu1 %v2570_v0  ;;  %191 = vst [vmem:[#allocation2 + $0xc] sm:$0xf] %v181_v10  ;;  %v1211_v3 = vsel %vm2671_vm4, 0, %v1210_v2 }
  0x49   :  { %v194_v13 = vld [vmem:[#allocation2 + $0x10] sm:$0x3]  ;;  %1212 = vst [vmem:[#allocation3] sm:$0x1] %v1211_v3 }
  0x4a   :  { %v195_v16 = vsel %vm2744_vm8, %v182_v7, %v194_v13 }
  0x4b   :  { %2153 = vmatpush3.bf16.msra.mxu0 %v2378_v24  ;;  %2181 = vmatpush3.bf16.msra.mxu1 %v2379_v29  ;;  %196 = vst [vmem:[#allocation2 + $0x10] sm:$0x3] %v195_v16  ;;  %v2386_v24 = vld [vmem:[#allocation7 + $0xb8] sm:$0xff]  }
  0x4c   :  { %2154 = vmatprep.subr.bf16.mxu0 %v2570_v0  ;;  %2182 = vmatprep.subr.bf16.mxu1 %v2570_v0  ;;  %v199_v14 = vld [vmem:[#allocation2] sm:$0xf] }
  0x4d   :  { %v200_v15 = vld [vmem:[#allocation2 + $0x4] sm:$0xf]  ;;  %v492_v44 = vld [vmem:[#allocation2] sm:$0xe] }
  0x4e   :  { %v1955_v17 = vcombine.low %v199_v14, %v200_v15  ;;  %v1975_v47 = vcombine.low %v492_v44, %v200_v15 }
  0x4f   :  { %2155 = vmatpush3.bf16.msra.mxu0 %v2380_v41  ;;  %2183 = vmatpush3.bf16.msra.mxu1 %v2381_v46  ;;  %v2755_v18 = vld [vmem:[#allocation2 + $0x8] sm:$0xff]   ;;  %v2394_v46 = vld [vmem:[#allocation7 + $0x88] sm:$0xff]  }
  0x50   :  { %2156 = vmatprep.subr.bf16.mxu0 %v2570_v0  ;;  %2184 = vmatprep.subr.bf16.mxu1 %v2570_v0  ;;  %v255_v19 = vshrl.u32 %v1955_v17, 16  ;;  %v257_v20 = vshll.u32 %v1955_v17, 16  ;;  %v262_v21 = vshll.u32 %v2755_v18, 16  ;;  %v266_v26 = vshrl.u32 %v2755_v18, 16 }
  0x51   :  { %v514_v50 = vrot.slane %v1975_v47, 1  ;;  %v515_v51 = vrot.slane %v2755_v18, 1 }
  0x52   :  { %v259_v23 = vrot.slane %v257_v20, 1  ;;  %v264_v25 = vrot.slane %v262_v21, 1  ;;  %v203_v28 = vld [vmem:[#allocation2 + $0x10] sm:$0xf] }
  0x53   :  { %2157 = vmatpush3.bf16.msra.mxu0 %v2382_v52  ;;  %2185 = vmatpush3.bf16.msra.mxu1 %v2383_v63  ;;  %v1957_v30 = vcombine.low %v203_v28, %v220_v22  ;;  %v1966_v39 = vcombine.low %v203_v28, %v203_v28  ;;  %v516_v52 = vsel %vm3348_vm10, %v514_v50, %v515_v51 }
  0x54   :  { %2198 = vmatprep.subr.bf16.mxu0 %v2570_v0  ;;  %2226 = vmatprep.subr.bf16.mxu1 %v2570_v0  ;;  %v260_v27 = vor.u32 %v259_v23, %v255_v19  ;;  %v268_v32 = vor.u32 %v266_v26, %v264_v25  ;;  %v1213_v19 = vld [vmem:[#allocation3 + $0x8] sm:$0x1] }
  0x55   :  { %v270_v33 = vshll.u32 %v1957_v30, 16  ;;  %v274_v36 = vshrl.u32 %v1957_v30, 16  ;;  %v517_v53 = vrot.slane %v1957_v30, 1  ;;  %v1214_v21 = vsel %vm2679_vm7, 0, %v1213_v19 }
  0x56   :  { %2187 = vmatmul.mubr.bf16.vlgmr.msra.gmra.mxu1 %v1955_v17  ;;  %v265_v29 = vsel %vm253_vm5, %v260_v27, %v264_v25  ;;  %1215 = vst [vmem:[#allocation3 + $0x8] sm:$0x1] %v1214_v21 }
  0x57   :  { %2190 = vmatprep.mubr.msk.bf16.mxu1 %vm2571_vm0, %v2570_v0  ;;  %2159 = vmatmul.mubr.bf16.vlgmr.msra.gmra.mxu0 %v265_v29  ;;  %v272_v35 = vrot.slane %v270_v33, 1  ;;  %v518_v54 = vsel %vm3348_vm10, %v515_v51, %v517_v53  ;;  %v1984_v29 = vld [vmem:[%s3338_s2] ss:$0 sm:$0xff] }
  0x58   :  { %2199 = vmatpush3.bf16.msra.mxu0 %v2386_v24  ;;  %2162 = vmatprep.mubr.msk.bf16.mxu0 %vm2571_vm0, %v2570_v0 }
  0x59   :  { %2200 = vmatprep.subr.bf16.mxu0 %v2570_v0  ;;  %v273_v38 = vsel %vm253_vm5, %v268_v32, %v272_v35  ;;  %v276_v41 = vor.u32 %v274_v36, %v272_v35 }
  0x5c   :  { %2201 = vmatpush3.bf16.msra.mxu0 %v2387_v31  ;;  %v1985_v31 = vld [vmem:[%s3339_s3] ss:$0 sm:$0xff] }
  0x5d   :  { %2202 = vmatprep.subr.bf16.mxu0 %v2570_v0 }
  0x5e   :  { %2191 = vmatmul.mubr.bf16.gmra.mxu1 %v2755_v18 }
  0x5f   :  { %2194 = vmatprep.mubr.msk.bf16.mxu1 %vm2571_vm0, %v2570_v0  ;;  %2163 = vmatmul.mubr.bf16.gmra.mxu0 %v273_v38 }
  0x60   :  { %2203 = vmatpush3.bf16.msra.mxu0 %v2388_v34  ;;  %2166 = vmatprep.mubr.msk.bf16.mxu0 %vm2571_vm0, %v2570_v0 }
  0x61   :  { %2204 = vmatprep.subr.bf16.mxu0 %v2570_v0 }
  0x64   :  { %2205 = vmatpush3.bf16.msra.mxu0 %v2390_v40 }
  0x65   :  { %2206 = vmatprep.subr.bf16.mxu0 %v2570_v0 }
  0x66   :  { %2195 = vmatmul.mubr.bf16.gmra.mxu1 %v1966_v39 }
  0x67   :  { %2242 = vmatprep.mubr.msk.bf16.mxu1 %vm2571_vm0, %v2570_v0  ;;  %2167 = vmatmul.mubr.bf16.gmra.mxu0 %v276_v41 }
  0x68   :  { %2207 = vmatpush3.bf16.msra.mxu0 %v2391_v42  ;;  %2214 = vmatprep.mubr.msk.bf16.mxu0 %vm2571_vm0, %v2570_v0 }
  0x69   :  { %2208 = vmatprep.subr.bf16.mxu0 %v2570_v0 }
  0x6c   :  { %2209 = vmatpush3.bf16.msra.mxu0 %v2392_v43  ;;  %v1249_v43 = vld [vmem:[#allocation3 + $0x8] sm:$0x2] }
  0x6d   :  { %2210 = vmatprep.subr.bf16.mxu0 %v2570_v0 }
  0x70   :  { %2211 = vmatpush3.bf16.msra.mxu0 %v2394_v46 }
  0x71   :  { %2212 = vmatprep.subr.bf16.mxu0 %v2570_v0 }
  0x74   :  { %2213 = vmatpush3.bf16.msra.mxu0 %v2395_v48  ;;  %v1250_v48 = vsel %vm2685_vm9, 0, %v1249_v43 }
  0x75   :  { %2254 = vmatprep.subr.bf16.mxu0 %v2570_v0  ;;  %1251 = vst [vmem:[#allocation3 + $0x8] sm:$0x2] %v1250_v48 }
  0x77   :  { %2215 = vmatmul.mubr.bf16.vlgmr.msra.gmra.mxu0 %v516_v52 }
  0x78   :  { %2218 = vmatprep.mubr.msk.bf16.mxu0 %vm2571_vm0, %v2570_v0 }
  0x7f   :  { %2219 = vmatmul.mubr.bf16.gmra.mxu0 %v518_v54 }
  0x80   :  { %2222 = vmatprep.mubr.msk.bf16.mxu0 %vm2571_vm0, %v2570_v0 }
  0x87   :  { %2223 = vmatmul.mubr.bf16.gmra.mxu0 %v517_v53 }
  0x88   :  { %2270 = vmatprep.mubr.msk.bf16.mxu0 %vm2571_vm0, %v2570_v0 }
 0x116   :  { %v470_v55 = vpop.f32.mrf.mxu1 }
 0x117   :  { %v362_v60 = vpop.f32.mrf.mxu0 }
 0x118   :  { %v2188_v57 = vpop.f32.mrf.mxu1  ;;  %v471_v27 = vadd.f32 %v470_v55, %v362_v60 }
 0x119   :  { %v2160_v61 = vpop.f32.mrf.mxu0 }
 0x11a   :  { %v473_v58 = vpop.f32.mrf.mxu1 }
 0x11b   :  { %v365_v63 = vpop.f32.mrf.mxu0 }
 0x11c   :  { %v2189_v59 = vpop.f32.mrf.mxu1  ;;  %v474_v11 = vadd.f32 %v473_v58, %v365_v63 }
 0x11d   :  { %v2161_v4 = vpop.f32.mrf.mxu0 }
 0x11e   :  { %v478_v62 = vpop.f32.mrf.mxu1 }
 0x11f   :  { %v370_v6 = vpop.f32.mrf.mxu0 }
 0x120   :  { %v2192_v1 = vpop.f32.mrf.mxu1  ;;  %v479_v39 = vadd.f32 %v478_v62, %v370_v6 }
 0x121   :  { %v2164_v10 = vpop.f32.mrf.mxu0 }
 0x122   :  { %v481_v5 = vpop.f32.mrf.mxu1 }
 0x123   :  { %v373_v14 = vpop.f32.mrf.mxu0 }
 0x124   :  { %v2193_v7 = vpop.f32.mrf.mxu1  ;;  %v482_v16 = vadd.f32 %v481_v5, %v373_v14 }
 0x125   :  { %v2165_v17 = vpop.f32.mrf.mxu0 }
 0x126   :  { %v486_v13 = vpop.f32.mrf.mxu1 }
 0x127   :  { %v378_v20 = vpop.f32.mrf.mxu0 }
 0x128   :  { %v2196_v15 = vpop.f32.mrf.mxu1  ;;  %v487_v23 = vadd.f32 %v486_v13, %v378_v20 }
 0x129   :  { %v2168_v24 = vpop.f32.mrf.mxu0 }
 0x12a   :  { %v489_v18 = vpop.f32.mrf.mxu1 }
 0x12b   :  { %v381_v25 = vpop.f32.mrf.mxu0 }
 0x12c   :  { %v2197_v22 = vpop.f32.mrf.mxu1 }
 0x12d   :  { %v2169_v26 = vpop.f32.mrf.mxu0 }
 0x137   :  { %v604_v28 = vpop.f32.mrf.mxu0 }
 0x138   :  { %v626_v30 = vadd.f32 %v604_v28, %v471_v27 }
 0x139   :  { %v2216_v32 = vpop.f32.mrf.mxu0 }
 0x13a   :  { %v638_v33 = vmul.f32 %v1984_v29, %v626_v30 }
 0x13b   :  { %v607_v34 = vpop.f32.mrf.mxu0 }
 0x13c   :  { %v2801_v35 = vadd.f32 %v1985_v31, %v638_v33  ;;  %v627_v36 = vadd.f32 %v607_v34, %v474_v11  ;;  %v2573_v34 = vmov 683565275  }
 0x13d   :  { %v2217_v38 = vpop.f32.mrf.mxu0 }
 0x13e   :  { %v1986_v40 = vadd.f32 -0.7853982, %v2801_v35  ;;  %v639_v41 = vmul.f32 %v1984_v29, %v627_v36  ;;  %v2574_v38 = vmov 2475754826  }
 0x13f   :  { %v612_v42 = vpop.f32.mrf.mxu0 }
 0x140   :  { %v660_v44 = vmax.f32 %v1986_v40, -1.5707964  ;;  %v2804_v46 = vadd.f32 %v1985_v31, %v639_v41  ;;  %v628_v47 = vadd.f32 %v612_v42, %v479_v39  ;;  %v2575_v41 = vmov 2131351028  }
 0x141   :  { %v2220_v50 = vpop.f32.mrf.mxu0  ;;  %v2576_v42 = vmov 2102212464  }
 0x142   :  { %v665_v51 = vmin.f32 %v660_v44, 0.7853982  ;;  %v1987_v52 = vadd.f32 -0.7853982, %v2804_v46  ;;  %v640_v53 = vmul.f32 %v1984_v29, %v628_v47  ;;  %v2577_v44 = vmov 920167782  }
 0x143   :  { %v615_v54 = vpop.f32.mrf.mxu0 }
 0x144   :  { %v2809_v55 = vadd.f32 0.7853982, %v665_v51  ;;  %v661_v57 = vmax.f32 %v1987_v52, -1.5707964  ;;  %v2811_v58 = vadd.f32 %v1985_v31, %v640_v53  ;;  %v629_v59 = vadd.f32 %v615_v54, %v482_v16 }
 0x145   :  { %v2221_v60 = vpop.f32.mrf.mxu0  ;;  %v2578_v54 = vmov 1326507024  }
 0x146   :  { %v675_v61 = vand.u32 2147483647, %v2809_v55  ;;  %v678_v62 = vand.u32 2139095040, %v2809_v55  ;;  %v666_v12 = vmin.f32 %v661_v57, 0.7853982  ;;  %v641_v1 = vmul.f32 %v1984_v29, %v629_v59 }
 0x147   :  { %v1988_v63 = vadd.f32 -0.7853982, %v2811_v58  ;;  %v620_v2 = vpop.f32.mrf.mxu0 }
 0x148   :  { %v679_v3 = vshrl.u32 %v678_v62, 23  ;;  %v630_v4 = vadd.f32 %v620_v2, %v487_v23  ;;  %v682_v5 = vand.u32 8388607, %v675_v61  ;;  %v2818_v6 = vadd.f32 0.7853982, %v666_v12 }
 0x149   :  { %v662_v7 = vmax.f32 %v1988_v63, -1.5707964  ;;  %v2820_v10 = vadd.f32 %v1985_v31, %v641_v1  ;;  %v2224_v13 = vpop.f32.mrf.mxu0 }
 0x14a   :  { %v1991_v14 = vadd.s32 4294967169, %v679_v3  ;;  %v642_v15 = vmul.f32 %v1984_v29, %v630_v4  ;;  %v779_v16 = vand.u32 2147483647, %v2818_v6  ;;  %v782_v17 = vand.u32 2139095040, %v2818_v6 }
 0x14b   :  { %v623_v18 = vpop.f32.mrf.mxu0  ;;  %v683_v20 = vor.u32 8388608, %v682_v5  ;;  %v667_v23 = vmin.f32 %v662_v7, 0.7853982  ;;  %vm781_vm6 = vcmp.lt.s32.totalorder %v2818_v6, 0 }
 0x14c   :  { %v685_v19 = vadd.s32 1, %v1991_v14  ;;  %v783_v21 = vshrl.u32 %v782_v17, 23  ;;  %v786_v22 = vand.u32 8388607, %v779_v16  ;;  %v2826_v25 = vadd.f32 %v1985_v31, %v642_v15 }
 0x14d   :  { %v2225_v24 = vpop.f32.mrf.mxu0  ;;  %v2828_v30 = vshll.u32 %v683_v20, 8  ;;  %v2830_v11 = vadd.f32 0.7853982, %v667_v23 }
 0x14e   :  { %vm686_vm7 = vcmp.gt.s32.totalorder %v685_v19, 0  ;;  %v1995_v27 = vadd.s32 4294967169, %v783_v21  ;;  %v787_v32 = vor.u32 8388608, %v786_v22 }
 0x14f   :  { %v687_v26 = vsel %vm686_vm7, %v685_v19, 0 }
 0x150   :  { %v688_v28 = vshrl.u32 %v687_v26, 5  ;;  %v689_v29 = vand.u32 31, %v687_v26  ;;  %v789_v40 = vadd.s32 1, %v1995_v27  ;;  %v2854_v23 = vshll.u32 %v787_v32, 8 }
 0x152   :  { %v690_v33 = vsub.s32 32, %v689_v29  ;;  %v692_v36 = vshll.u32 %v2573_v34, %v689_v29  ;;  %v695_v39 = vshll.u32 %v2574_v38, %v689_v29  ;;  %v698_v31 = vshll.u32 %v2575_v41, %v689_v29 }
 0x153   :  { %v701_v43 = vshll.u32 %v2576_v42, %v689_v29  ;;  %v704_v47 = vshll.u32 %v2577_v44, %v689_v29  ;;  %vm707_vm9 = vcmp.lt.s32.totalorder %v688_v28, 1  ;;  %vm708_vm11 = vcmp.lt.s32.totalorder %v688_v28, 2 }
 0x154   :  { %v693_v48 = vshrl.u32 %v2574_v38, %v690_v33  ;;  %v696_v50 = vshrl.u32 %v2575_v41, %v690_v33  ;;  %v699_v51 = vshrl.u32 %v2576_v42, %v690_v33  ;;  %v691_v52 = vshrl.u32 %v2573_v34, %v690_v33 }
 0x155   :  { %v702_v53 = vshrl.u32 %v2577_v44, %v690_v33  ;;  %v705_v57 = vshrl.u32 %v2578_v54, %v690_v33  ;;  %vm709_vm12 = vcmp.lt.s32.totalorder %v688_v28, 3  ;;  %vm790_vm14 = vcmp.gt.s32.totalorder %v789_v40, 0 }
 0x156   :  { %v694_v59 = vor.u32 %v693_v48, %v692_v36  ;;  %v697_v60 = vor.u32 %v696_v50, %v695_v39  ;;  %v700_v62 = vor.u32 %v699_v51, %v698_v31  ;;  %vm710_vm3 = vcmp.lt.s32.totalorder %v688_v28, 4 }
 0x157   :  { %v703_v12 = vor.u32 %v702_v53, %v701_v43  ;;  %v706_v63 = vor.u32 %v705_v57, %v704_v47  ;;  %v791_v1 = vsel %vm790_vm14, %v789_v40, 0  ;;  %v886_v39 = vand.u32 2139095040, %v2830_v11 }
 0x158   :  { %v711_v2 = vsel %vm707_vm9, %v691_v52, %v694_v59  ;;  %v712_v3 = vsel %vm710_vm3, %v700_v62, 2102212464  ;;  %v715_v4 = vsel %vm707_vm9, %v694_v59, %v697_v60  ;;  %v719_v5 = vsel %vm707_vm9, %v697_v60, %v700_v62 }
 0x159   :  { %v713_v7 = vsel %vm709_vm12, %v697_v60, %v712_v3  ;;  %v716_v13 = vsel %vm710_vm3, %v703_v12, 920167782  ;;  %v720_v14 = vsel %vm710_vm3, %v706_v63, 1326507024  ;;  %v2847_v15 = vshrl.u32 %v791_v1, 5  ;;  %v2397_v60 = vld [vmem:[#allocation9 + $0x38] sm:$0xff]  }
 0x15a   :  { %v714_v17 = vsel %vm708_vm11, %v711_v2, %v713_v7  ;;  %v717_v18 = vsel %vm709_vm12, %v700_v62, %v716_v13  ;;  %v721_v19 = vsel %vm709_vm12, %v703_v12, %v720_v14  ;;  %v793_v20 = vand.u32 31, %v791_v1  ;;  %2255 = vmatpush3.bf16.msra.mxu0 %v2397_v60 }
 0x15b   :  { %v718_v21 = vsel %vm708_vm11, %v715_v4, %v717_v18  ;;  %v722_v22 = vsel %vm708_vm11, %v719_v5, %v721_v19  ;;  %v730_v33 = vmul.u32 %v2828_v30, %v714_v17  ;;  %vm811_vm7 = vcmp.lt.s32.totalorder %v2847_v15, 1  ;;  %2256 = vmatprep.subr.bf16.mxu0 %v2570_v0 }
 0x15c   :  { %v2857_v24 = vmul.u32.u64.low %v2828_v30, %v722_v22  ;;  %v2858_v26 = vmul.u32.u64.high %v2828_v30, %v722_v22, %v2857_v24  ;;  %v2861_v27 = vmul.u32.u64.low %v2828_v30, %v718_v21  ;;  %v2862_v29 = vmul.u32.u64.high %v2828_v30, %v718_v21, %v2861_v27 }
 0x15d   :  { %v794_v36 = vsub.s32 32, %v793_v20  ;;  %v796_v28 = vshll.u32 %v2573_v34, %v793_v20  ;;  %v799_v32 = vshll.u32 %v2574_v38, %v793_v20  ;;  %v802_v40 = vshll.u32 %v2575_v41, %v793_v20 }
 0x15e   :  { %v805_v31 = vshll.u32 %v2576_v42, %v793_v20  ;;  %v808_v30 = vshll.u32 %v2577_v44, %v793_v20  ;;  %vm732_vm9 = vc.u32 %v2858_v26, %v2861_v27  ;;  %v733_v50 = vadd.s32 1, %v2862_v29  ;;  %v2398_v20 = vld [vmem:[#allocation9 + $0x30] sm:$0xff]  }
 0x15f   :  { %v797_v43 = vshrl.u32 %v2574_v38, %v794_v36  ;;  %v800_v47 = vshrl.u32 %v2575_v41, %v794_v36  ;;  %v803_v48 = vshrl.u32 %v2576_v42, %v794_v36  ;;  %v806_v51 = vshrl.u32 %v2577_v44, %v794_v36  ;;  %2257 = vmatpush3.bf16.msra.mxu0 %v2398_v20  ;;  %v2403_v20 = vld [vmem:[#allocation9 + $0x18] sm:$0xff]  }
 0x160   :  { %vm812_vm11 = vcmp.lt.s32.totalorder %v2847_v15, 2  ;;  %v809_v59 = vshrl.u32 %v2578_v54, %v794_v36  ;;  %v734_v62 = vsel %vm732_vm9, %v733_v50, %v2862_v29  ;;  %vm814_vm12 = vcmp.lt.s32.totalorder %v2847_v15, 4  ;;  %2258 = vmatprep.subr.bf16.mxu0 %v2570_v0 }
 0x161   :  { %v798_v52 = vor.u32 %v797_v43, %v796_v28  ;;  %v801_v53 = vor.u32 %v800_v47, %v799_v32  ;;  %v804_v57 = vor.u32 %v803_v48, %v802_v40  ;;  %v807_v12 = vor.u32 %v806_v51, %v805_v31 }
 0x162   :  { %v887_v63 = vshrl.u32 %v886_v39, 23  ;;  %v735_v1 = vadd.s32 %v734_v62, %v730_v33  ;;  %v795_v2 = vshrl.u32 %v2573_v34, %v794_v36  ;;  %v810_v3 = vor.u32 %v809_v59, %v808_v30  ;;  %v2399_v30 = vld [vmem:[#allocation9 + $0x28] sm:$0xff]   ;;  %v2400_v59 = vld [vmem:[#allocation9 + $0x78] sm:$0xff]  }
 0x163   :  { %v816_v4 = vsel %vm814_vm12, %v804_v57, 2102212464  ;;  %vm813_vm14 = vcmp.lt.s32.totalorder %v2847_v15, 3  ;;  %v819_v5 = vsel %vm811_vm7, %v798_v52, %v801_v53  ;;  %v820_v7 = vsel %vm814_vm12, %v807_v12, 920167782  ;;  %2259 = vmatpush3.bf16.msra.mxu0 %v2399_v30  ;;  %2227 = vmatpush3.bf16.msra.mxu1 %v2400_v59 }
 0x164   :  { %v823_v13 = vsel %vm811_vm7, %v801_v53, %v804_v57  ;;  %v736_v14 = vadd.s32 536870912, %v735_v1  ;;  %v815_v17 = vsel %vm811_vm7, %v795_v2, %v798_v52  ;;  %v821_v18 = vsel %vm813_vm14, %v804_v57, %v820_v7  ;;  %2260 = vmatprep.subr.bf16.mxu0 %v2570_v0  ;;  %2228 = vmatprep.subr.bf16.mxu1 %v2570_v0 }
 0x165   :  { %v824_v19 = vsel %vm814_vm12, %v810_v3, 1326507024  ;;  %v817_v21 = vsel %vm813_vm14, %v801_v53, %v816_v4  ;;  %v822_v22 = vsel %vm812_vm11, %v819_v5, %v821_v18  ;;  %v1999_v29 = vadd.s32 4294967169, %v887_v63  ;;  %v2401_v63 = vld [vmem:[#allocation9 + $0x20] sm:$0xff]  }
 0x166   :  { %v825_v24 = vsel %vm813_vm14, %v807_v12, %v824_v19  ;;  %v737_v33 = vshrl.u32 %v736_v14, 30  ;;  %v2898_v39 = vmul.u32.u64.low %v2854_v23, %v822_v22  ;;  %v2899_v28 = vmul.u32.u64.high %v2854_v23, %v822_v22, %v2898_v39 }
 0x167   :  { %v826_v36 = vsel %vm812_vm11, %v823_v13, %v825_v24  ;;  %v893_v31 = vadd.s32 1, %v1999_v29  ;;  %v818_v47 = vsel %vm812_vm11, %v815_v17, %v817_v21  ;;  %v1989_v48 = vadd.f32 -0.7853982, %v2820_v10  ;;  %2261 = vmatpush3.bf16.msra.mxu0 %v2401_v63  ;;  %v2402_v13 = vld [vmem:[#allocation9 + $0x70] sm:$0xff]  }
 0x168   :  { %v2903_v32 = vmul.u32.u64.low %v2854_v23, %v826_v36  ;;  %v2904_v40 = vmul.u32.u64.high %v2854_v23, %v826_v36, %v2903_v32  ;;  %v738_v43 = vshll.u32 %v737_v33, 30  ;;  %v837_v51 = vadd.s32 1, %v2899_v28  ;;  %2262 = vmatprep.subr.bf16.mxu0 %v2570_v0  ;;  %2229 = vmatpush3.bf16.msra.mxu1 %v2402_v13 }
 0x169   :  { %vm894_vm3 = vcmp.gt.s32.totalorder %v893_v31, 0  ;;  %v834_v53 = vmul.u32 %v2854_v23, %v818_v47  ;;  %v883_v57 = vand.u32 2147483647, %v2830_v11  ;;  %v663_v12 = vmax.f32 %v1989_v48, -1.5707964  ;;  %2230 = vmatprep.subr.bf16.mxu1 %v2570_v0  ;;  %v2404_v48 = vld [vmem:[#allocation9 + $0x68] sm:$0xff]  }
 0x16a   :  { %v2910_v50 = vsub.s32 %v735_v1, %v738_v43  ;;  %v895_v52 = vsel %vm894_vm3, %v893_v31, 0  ;;  %vm836_vm7 = vc.u32 %v2904_v40, %v2898_v39  ;;  %v1195_v2 = vmax.f32 %v2801_v35, 0.0 }
 0x16b   :  { %v838_v60 = vsel %vm836_vm7, %v837_v51, %v2899_v28  ;;  %v897_v62 = vand.u32 31, %v895_v52  ;;  %vm677_vm9 = vcmp.lt.s32.totalorder %v2809_v55, 0  ;;  %v761_v4 = vsub.s32 4, %v737_v33  ;;  %2263 = vmatpush3.bf16.msra.mxu0 %v2403_v20 }
 0x16c   :  { %v741_v15 = vsub.s32 0, %v2910_v50  ;;  %v839_v1 = vadd.s32 %v838_v60, %v834_v53  ;;  %v2926_v7 = vand.u32 8388607, %v883_v57  ;;  %v731_v14 = vadd.s32 %v2861_v27, %v2858_v26  ;;  %2264 = vmatprep.subr.bf16.mxu0 %v2570_v0  ;;  %v2405_v53 = vld [vmem:[#allocation9 + $0x10] sm:$0xff]   ;;  %2231 = vmatpush3.bf16.msra.mxu1 %v2404_v48 }
 0x16d   :  { %v898_v3 = vsub.s32 32, %v897_v62  ;;  %v2930_v18 = vshrl.u32 %v895_v52, 5  ;;  %v2932_v19 = vmin.f32 %v663_v12, 0.7853982  ;;  %v900_v22 = vshll.u32 %v2573_v34, %v897_v62  ;;  %2232 = vmatprep.subr.bf16.mxu1 %v2570_v0 }
 0x16e   :  { %v1992_v23 = vmin.u32 %v741_v15, %v2910_v50  ;;  %v840_v5 = vadd.s32 536870912, %v839_v1  ;;  %vm2942_vm11 = vcmp.le.f32.partialorder %v675_v61, 0.7853982  ;;  %v903_v36 = vshll.u32 %v2574_v38, %v897_v62 }
 0x16f   :  { %v901_v24 = vshrl.u32 %v2574_v38, %v898_v3  ;;  %v904_v29 = vshrl.u32 %v2575_v41, %v898_v3  ;;  %v907_v28 = vshrl.u32 %v2576_v42, %v898_v3  ;;  %v910_v32 = vshrl.u32 %v2577_v44, %v898_v3  ;;  %2265 = vmatpush3.bf16.msra.mxu0 %v2405_v53 }
 0x170   :  { %v743_v17 = vclz %v1992_v23  ;;  %v2935_v21 = vshrl.u32 %v840_v5, 30  ;;  %v2952_v31 = vsel %vm677_vm9, %v761_v4, %v737_v33  ;;  %v891_v61 = vor.u32 8388608, %v2926_v7  ;;  %2266 = vmatprep.subr.bf16.mxu0 %v2570_v0 }
 0x171   :  { %v909_v47 = vshll.u32 %v2576_v42, %v897_v62  ;;  %v902_v30 = vor.u32 %v901_v24, %v900_v22  ;;  %v905_v51 = vor.u32 %v904_v29, %v903_v36  ;;  %v906_v52 = vshll.u32 %v2575_v41, %v897_v62  ;;  %v2407_v22 = vld [vmem:[#allocation9 + $0x8] sm:$0xff]  }
 0x172   :  { %v1993_v27 = vadd.s32 4294967294, %v743_v17  ;;  %v842_v43 = vshll.u32 %v2935_v21, 30  ;;  %v913_v60 = vshrl.u32 %v2578_v54, %v898_v3  ;;  %vm915_vm14 = vcmp.lt.s32.totalorder %v2930_v18, 1 }
 0x173   :  { %v911_v33 = vor.u32 %v910_v32, %v909_v47  ;;  %v908_v23 = vor.u32 %v907_v28, %v906_v52  ;;  %v899_v5 = vshrl.u32 %v2573_v34, %v898_v3  ;;  %v912_v7 = vshll.u32 %v2577_v44, %v897_v62  ;;  %2267 = vmatpush3.bf16.msra.mxu0 %v2407_v22  ;;  %v2408_v47 = vld [vmem:[#allocation9 + $0x58] sm:$0xff]  }
 0x174   :  { %vm1994_vm12 = vcmp.lt.s32.totalorder %v1993_v27, 0  ;;  %v2959_v15 = vsub.s32 %v839_v1, %v842_v43  ;;  %vm917_vm3 = vcmp.lt.s32.totalorder %v2930_v18, 3  ;;  %v2406_v1 = vld [vmem:[#allocation9 + $0x60] sm:$0xff]   ;;  %vm918_vm7 = vcmp.lt.s32.totalorder %v2930_v18, 4  ;;  %2268 = vmatprep.subr.bf16.mxu0 %v2570_v0 }
 0x175   :  { %v746_v59 = vsel %vm1994_vm12, 0, %v1993_v27  ;;  %v914_v29 = vor.u32 %v913_v60, %v912_v7  ;;  %v923_v3 = vsel %vm915_vm14, %v902_v30, %v905_v51  ;;  %v924_v62 = vsel %vm918_vm7, %v911_v33, 920167782  ;;  %2233 = vmatpush3.bf16.msra.mxu1 %v2406_v1 }
 0x176   :  { %v747_v12 = vsub.s32 32, %v746_v59  ;;  %v751_v63 = vsub.s32 4294967266, %v746_v59  ;;  %v845_v4 = vsub.s32 0, %v2959_v15  ;;  %v748_v13 = vshll.u32 %v2910_v50, %v746_v59  ;;  %2234 = vmatprep.subr.bf16.mxu1 %v2570_v0 }
 0x177   :  { %v920_v50 = vsel %vm918_vm7, %v908_v23, 2102212464  ;;  %v764_v28 = vsel %vm2942_vm11, 0, %v2952_v31  ;;  %vm916_vm12 = vcmp.lt.s32.totalorder %v2930_v18, 2  ;;  %v2986_v43 = vadd.f32 -0.7853982, %v2826_v25 }
 0x178   :  { %v749_v17 = vshrl.u32 %v731_v14, %v747_v12  ;;  %v752_v20 = vadd.s32 127, %v751_v63  ;;  %v1996_v24 = vmin.u32 %v845_v4, %v2959_v15  ;;  %v925_v14 = vsel %vm917_vm3, %v908_v23, %v924_v62  ;;  %v2409_v31 = vld [vmem:[#allocation9] sm:$0xff]  }
 0x179   :  { %v919_v52 = vsel %vm915_vm14, %v899_v5, %v902_v30  ;;  %v926_v53 = vsel %vm916_vm12, %v923_v3, %v925_v14  ;;  %v927_v59 = vsel %vm915_vm14, %v905_v51, %v908_v23  ;;  %v921_v12 = vsel %vm917_vm3, %v905_v51, %v920_v50  ;;  %2235 = vmatpush3.bf16.msra.mxu1 %v2408_v47 }
 0x17a   :  { %v750_v27 = vor.u32 %v749_v17, %v748_v13  ;;  %v753_v36 = vshll.u32 %v752_v20, 23  ;;  %v847_v32 = vclz %v1996_v24  ;;  %v928_v63 = vsel %vm918_vm7, %v914_v29, 1326507024  ;;  %2236 = vmatprep.subr.bf16.mxu1 %v2570_v0  ;;  %2269 = vmatpush3.bf16.msra.mxu0 %v2409_v31 }
 0x17b   :  { %v931_v4 = vshll.u32 %v891_v61, 8  ;;  %v929_v5 = vsel %vm917_vm3, %v911_v33, %v928_v63  ;;  %v3003_v23 = vadd.f32 0.7853982, %v2932_v19  ;;  %v2411_v61 = vld [vmem:[#allocation9 + $0x50] sm:$0xff]   ;;  %v835_v19 = vadd.s32 %v2898_v39, %v2904_v40  ;;  %v2412_v40 = vld [vmem:[#allocation9 + $0x48] sm:$0xff]  }
 0x17c   :  { %v754_v48 = vor.u32 4788187, %v753_v36  ;;  %v1997_v60 = vadd.s32 4294967294, %v847_v32  ;;  %v757_v30 = vcvt.s32.f32 %v750_v27  ;;  %v930_v51 = vsel %vm916_vm12, %v927_v59, %v929_v5 }
 0x17d   :  { %v3008_v1 = vmul.u32.u64.low %v931_v4, %v926_v53  ;;  %v3009_v13 = vmul.u32.u64.high %v931_v4, %v926_v53, %v3008_v1  ;;  %v3012_v22 = vmul.u32.u64.low %v931_v4, %v930_v51  ;;  %v3013_v24 = vmul.u32.u64.high %v931_v4, %v930_v51, %v3012_v22  ;;  %2237 = vmatpush3.bf16.msra.mxu1 %v2411_v61 }
 0x17e   :  { %v755_v7 = vand.u32 2147483647, %v754_v48  ;;  %vm1998_vm14 = vcmp.lt.s32.totalorder %v1997_v60, 0  ;;  %v922_v3 = vsel %vm916_vm12, %v919_v52, %v921_v12  ;;  %v865_v27 = vsub.s32 4, %v2935_v21  ;;  %2238 = vmatprep.subr.bf16.mxu1 %v2570_v0  ;;  %v3025_v48 = vld [vmem:[#allocation10 + $0x38] sm:$0xff]   ;;  %v2414_v12 = vld [vmem:[#allocation9 + $0x40] sm:$0xff]  }
 0x17f   :  { %v850_v20 = vsel %vm1998_vm14, 0, %v1997_v60  ;;  %v990_v36 = vand.u32 2139095040, %v3003_v23  ;;  %v664_v50 = vmax.f32 %v2986_v43, -1.5707964  ;;  %v941_v39 = vadd.s32 1, %v3009_v13  ;;  %2310 = vmatprep.subr.bf16.mxu0 %v3025_v48 }
 0x180   :  { %v758_v17 = vmul.f32 %v757_v30, %v755_v7  ;;  %v851_v33 = vsub.s32 32, %v850_v20  ;;  %v855_v29 = vsub.s32 4294967266, %v850_v20  ;;  %v852_v14 = vshll.u32 %v2959_v15, %v850_v20  ;;  %v1252_v60 = vld [vmem:[#allocation3 + $0x10] sm:$0x2] }
 0x181   :  { %v768_v52 = vadd.s32 3, %v764_v28  ;;  %v938_v53 = vmul.u32 %v931_v4, %v922_v3  ;;  %vm940_vm3 = vc.u32 %v3013_v24, %v3008_v1  ;;  %2239 = vmatpush3.bf16.msra.mxu1 %v2412_v40  ;;  %v987_v28 = vand.u32 2147483647, %v3003_v23 }
 0x182   :  { %v759_v62 = vxor.u32 2147483648, %v758_v17  ;;  %v853_v32 = vshrl.u32 %v835_v19, %v851_v33  ;;  %v856_v47 = vadd.s32 127, %v855_v29  ;;  %v942_v31 = vsel %vm940_vm3, %v941_v39, %v3009_v13  ;;  %2240 = vmatprep.subr.bf16.mxu1 %v2570_v0 }
 0x183   :  { %v943_v63 = vadd.s32 %v942_v31, %v938_v53  ;;  %v991_v4 = vshrl.u32 %v990_v36, 23  ;;  %v866_v26 = vsel %vm781_vm6, %v865_v27, %v2935_v21  ;;  %v669_v30 = vmin.f32 %v664_v50, 0.7853982 }
 0x184   :  { %v760_v18 = vsel %vm677_vm9, %v759_v62, %v758_v17  ;;  %v854_v15 = vor.u32 %v853_v32, %v852_v14  ;;  %v857_v59 = vshll.u32 %v856_v47, 23  ;;  %v1196_v5 = vmax.f32 %v2804_v46, 0.0 }
 0x185   :  { %v763_v43 = vsel %vm2942_vm11, %v2809_v55, %v760_v18  ;;  %v944_v51 = vadd.s32 536870912, %v943_v63  ;;  %v2003_v13 = vadd.s32 4294967169, %v991_v4  ;;  %v1253_v61 = vsel %vm2707_vm15, 0, %v1252_v60  ;;  %2241 = vmatpush3.bf16.msra.mxu1 %v2414_v12 }
 0x186   :  { %2434 = vcosq.f32 %v763_v43  ;;  %v858_v7 = vor.u32 4788187, %v857_v59  ;;  %vm3046_vm9 = vcmp.le.f32.partialorder %v779_v16, 0.7853982  ;;  %v861_v22 = vcvt.s32.f32 %v854_v15  ;;  %1254 = vst [vmem:[#allocation3 + $0x10] sm:$0x2] %v1253_v61  ;;  %2282 = vmatprep.subr.bf16.mxu1 %v2570_v0 }
 0x187   :  { %2436 = vsinq.f32 %v763_v43  ;;  %v3050_v19 = vadd.f32 0.7853982, %v669_v30  ;;  %v868_v46 = vsel %vm3046_vm9, 0, %v866_v26  ;;  %v945_v21 = vshrl.u32 %v944_v51, 30 }
 0x188   :  { %v859_v20 = vand.u32 2147483647, %v858_v7  ;;  %v994_v45 = vand.u32 8388607, %v987_v28  ;;  %v997_v33 = vadd.s32 1, %v2003_v13  ;;  %v769_v16 = vand.u32 3, %v768_v52 }
 0x189   :  { %v1094_v3 = vand.u32 2139095040, %v3050_v19  ;;  %v1200_v62 = vmul.f32 0.05, %v1195_v2  ;;  %v946_v27 = vshll.u32 %v945_v21, 30  ;;  %v872_v50 = vadd.s32 3, %v868_v46 }
 0x18a   :  { %v862_v29 = vmul.f32 %v861_v22, %v859_v20  ;;  %vm998_vm15 = vcmp.gt.s32.totalorder %v997_v33, 0  ;;  %v3060_v14 = vmul.f32 0.05, %v1196_v5  ;;  %vm885_vm11 = vcmp.lt.s32.totalorder %v2830_v11, 0 }
 0x18b   :  { %v999_v32 = vsel %vm998_vm15, %v997_v33, 0  ;;  %v3063_v47 = vsub.s32 %v943_v63, %v946_v27  ;;  %v995_v39 = vor.u32 8388608, %v994_v45  ;;  %vm770_vm7 = vcmp.lt.s32.totalorder %v769_v16, 2 }
 0x18c   :  { %v863_v36 = vxor.u32 2147483648, %v862_v29  ;;  %v1001_v40 = vand.u32 31, %v999_v32  ;;  %v969_v52 = vsub.s32 4, %v945_v21  ;;  %v1095_v35 = vshrl.u32 %v1094_v3, 23 }
 0x18d   :  { %vm767_vm12 = vweird.f32 %v2809_v55  ;;  %vm771_vm14 = vcmp.eq.s32.totalorder %v769_v16, 0  ;;  %v949_v53 = vsub.s32 0, %v3063_v47  ;;  %vm774_vm3 = vcmp.eq.s32.totalorder %v769_v16, 2 }
 0x18e   :  { %v864_v18 = vsel %vm781_vm6, %v863_v36, %v862_v29  ;;  %v1002_v43 = vsub.s32 32, %v1001_v40  ;;  %v3072_v15 = vand.u32 3, %v872_v50  ;;  %v939_v59 = vadd.s32 %v3008_v1, %v3013_v24 }
 0x18f   :  { %v867_v2 = vsel %vm3046_vm9, %v2818_v6, %v864_v18  ;;  %v2000_v31 = vmin.u32 %v949_v53, %v3063_v47  ;;  %v3077_v60 = vshll.u32 %v995_v39, 8  ;;  %v1091_v12 = vand.u32 2147483647, %v3050_v19 }
 0x190   :  { %2438 = vcosq.f32 %v867_v2  ;;  %v3082_v4 = vsel %vm885_vm11, %v969_v52, %v945_v21  ;;  %v3084_v7 = vshrl.u32 %v999_v32, 5  ;;  %v1005_v26 = vshrl.u32 %v2574_v38, %v1002_v43 }
 0x191   :  { %2440 = vsinq.f32 %v867_v2  ;;  %v3087_v30 = vadd.s32 4294967169, %v1095_v35  ;;  %v951_v24 = vclz %v2000_v31  ;;  %v1008_v51 = vshrl.u32 %v2575_v41, %v1002_v43 }
 0x192   :  { %v1011_v13 = vshrl.u32 %v2576_v42, %v1002_v43  ;;  %v1004_v17 = vshll.u32 %v2573_v34, %v1001_v40  ;;  %v1007_v20 = vshll.u32 %v2574_v38, %v1001_v40  ;;  %v1010_v22 = vshll.u32 %v2575_v41, %v1001_v40 }
 0x193   :  { %v2435_v63 = vpop.eup %2434  ;;  %v2001_v21 = vadd.s32 4294967294, %v951_v24  ;;  %v1013_v45 = vshll.u32 %v2576_v42, %v1001_v40  ;;  %v1014_v33 = vshrl.u32 %v2577_v44, %v1002_v43  ;;  %v1016_v27 = vshll.u32 %v2577_v44, %v1001_v40 }
 0x194   :  { %v2437_v5 = vpop.eup %2436  ;;  %v775_v1 = vxor.u32 2147483648, %v2435_v63  ;;  %v1006_v3 = vor.u32 %v1005_v26, %v1004_v17  ;;  %v1017_v36 = vshrl.u32 %v2578_v54, %v1002_v43  ;;  %vm878_vm6 = vcmp.eq.s32.totalorder %v3072_v15, 2 }
 0x195   :  { %v772_v61 = vxor.u32 2147483648, %v2437_v5  ;;  %vm2002_vm9 = vcmp.lt.s32.totalorder %v2001_v21, 0  ;;  %v1009_v32 = vor.u32 %v1008_v51, %v1007_v20  ;;  %v1012_v39 = vor.u32 %v1011_v13, %v1010_v22 }
 0x196   :  { %v776_v46 = vsel %vm774_vm3, %v775_v1, %v2437_v5  ;;  %vm875_vm15 = vcmp.eq.s32.totalorder %v3072_v15, 0  ;;  %v954_v52 = vsel %vm2002_vm9, 0, %v2001_v21  ;;  %v1015_v35 = vor.u32 %v1014_v33, %v1013_v45 }
 0x197   :  { %v773_v29 = vsel %vm771_vm14, %v2435_v63, %v772_v61  ;;  %v1018_v2 = vor.u32 %v1017_v36, %v1016_v27  ;;  %vm874_vm14 = vcmp.lt.s32.totalorder %v3072_v15, 2  ;;  %v955_v40 = vsub.s32 32, %v954_v52  ;;  %v1242_v36 = vld [vmem:[#allocation3] sm:$0xf] }
 0x198   :  { %v777_v50 = vsel %vm770_vm7, %v773_v29, %v776_v46  ;;  %v959_v31 = vsub.s32 4294967266, %v954_v52  ;;  %v1003_v16 = vshrl.u32 %v2573_v34, %v1002_v43  ;;  %vm871_vm7 = vweird.f32 %v2818_v6 }
 0x199   :  { %v778_v18 = vsel %vm767_vm12, nan, %v777_v50  ;;  %v956_v63 = vshll.u32 %v3063_v47, %v954_v52  ;;  %vm1019_vm3 = vcmp.lt.s32.totalorder %v3084_v7, 1  ;;  %vm1020_vm12 = vcmp.lt.s32.totalorder %v3084_v7, 2 }
 0x19a   :  { %v1205_v53 = vadd.f32 %v1200_v62, %v778_v18  ;;  %vm1021_vm10 = vcmp.lt.s32.totalorder %v3084_v7, 3  ;;  %v957_v26 = vshrl.u32 %v939_v59, %v955_v40  ;;  %v960_v5 = vadd.s32 127, %v959_v31 }
 0x19b   :  { %vm1022_vm9 = vcmp.lt.s32.totalorder %v3084_v7, 4  ;;  %v1023_v62 = vsel %vm1019_vm3, %v1003_v16, %v1006_v3  ;;  %v1031_v43 = vsel %vm1019_vm3, %v1009_v32, %v1012_v39  ;;  %v1027_v59 = vsel %vm1019_vm3, %v1006_v3, %v1009_v32 }
 0x19c   :  { %v2061_v55 = vpack.c.bf16 %v1205_v53, %v1205_v53  ;;  %v1028_v1 = vsel %vm1022_vm9, %v1015_v35, 920167782  ;;  %v1032_v24 = vsel %vm1022_vm9, %v1018_v2, 1326507024  ;;  %v958_v13 = vor.u32 %v957_v26, %v956_v63 }
 0x19d   :  { %v2439_v47 = vpop.eup %2438  ;;  %v961_v61 = vshll.u32 %v960_v5, 23  ;;  %v1024_v17 = vsel %vm1022_vm9, %v1012_v39, 2102212464  ;;  %v1029_v46 = vsel %vm1021_vm10, %v1012_v39, %v1028_v1  ;;  %v1033_v21 = vsel %vm1021_vm10, %v1015_v35, %v1032_v24 }
 0x19e   :  { %v1223_v51 = vshrl.u32 %v2061_v55, 16  ;;  %v2441_v20 = vpop.eup %2440  ;;  %v879_v22 = vxor.u32 2147483648, %v2439_v47  ;;  %v1226_v33 = vshll.u32 %v2061_v55, 16  ;;  %v965_v18 = vcvt.s32.f32 %v958_v13 }
 0x19f   :  { %v876_v29 = vxor.u32 2147483648, %v2441_v20  ;;  %v962_v27 = vor.u32 4788187, %v961_v61  ;;  %v1025_v52 = vsel %vm1021_vm10, %v1009_v32, %v1024_v17  ;;  %v1034_v3 = vsel %vm1020_vm12, %v1031_v43, %v1033_v21  ;;  %v1246_v21 = vld [vmem:[#allocation3 + $0x8] sm:$0x1] }
 0x1a0   :  { %v3123_v45 = vrot.slane %v1223_v51, 7  ;;  %v880_v50 = vsel %vm878_vm6, %v879_v22, %v2441_v20  ;;  %v1030_v53 = vsel %vm1020_vm12, %v1027_v59, %v1029_v46  ;;  %v1101_v32 = vadd.s32 1, %v3087_v30 }
 0x1a1   :  { %v877_v35 = vsel %vm875_vm15, %v2439_v47, %v876_v29  ;;  %v963_v2 = vand.u32 2147483647, %v962_v27  ;;  %v3139_v31 = vmul.u32.u64.low %v3077_v60, %v1034_v3  ;;  %v3140_v16 = vmul.u32.u64.high %v3077_v60, %v1034_v3, %v3139_v31 }
 0x1a2   :  { %v1228_v39 = vor.u32 %v1226_v33, %v3123_v45  ;;  %v881_v40 = vsel %vm874_vm14, %v877_v35, %v880_v50  ;;  %v1026_v5 = vsel %vm1020_vm12, %v1023_v62, %v1025_v52  ;;  %vm1102_vm10 = vcmp.gt.s32.totalorder %v1101_v32, 0 }
 0x1a3   :  { %v882_v55 = vsel %vm871_vm7, nan, %v881_v40  ;;  %v966_v26 = vmul.f32 %v965_v18, %v963_v2  ;;  %v3151_v1 = vmul.u32.u64.low %v3077_v60, %v1030_v53  ;;  %v3152_v43 = vmul.u32.u64.high %v3077_v60, %v1030_v53, %v3151_v1 }
 0x1a4   :  { %v1243_v63 = vsel %vm2714_vm1, %v1228_v39, %v1242_v36  ;;  %v1206_v15 = vadd.f32 %v3060_v14, %v882_v55  ;;  %vm3157_vm6 = vcmp.le.f32.partialorder %v883_v57, 0.7853982  ;;  %v1103_v30 = vsel %vm1102_vm10, %v1101_v32, 0 }
 0x1a5   :  { %1244 = vst [vmem:[#allocation3] sm:$0xf] %v1243_v63  ;;  %v967_v6 = vxor.u32 2147483648, %v966_v26  ;;  %v972_v7 = vsel %vm3157_vm6, 0, %v3082_v4  ;;  %v1098_v14 = vand.u32 8388607, %v1091_v12  ;;  %v1042_v47 = vmul.u32 %v3077_v60, %v1026_v5 }
 0x1a6   :  { %v2062_v24 = vpack.c.bf16 %v1206_v15, %v1206_v15  ;;  %vm1044_vm1 = vc.u32 %v3140_v16, %v3151_v1  ;;  %v1105_v57 = vand.u32 31, %v1103_v30  ;;  %v1229_v51 = vrot.slane %v3123_v45, 4 }
 0x1a7   :  { %v968_v62 = vsel %vm885_vm11, %v967_v6, %v966_v26  ;;  %v1045_v4 = vadd.s32 1, %v3152_v43  ;;  %v3176_v20 = vshrl.u32 %v1103_v30, 5  ;;  %v1099_v26 = vor.u32 8388608, %v1098_v14 }
 0x1a8   :  { %v1231_v13 = vshrl.u32 %v2062_v24, 16  ;;  %v971_v61 = vsel %vm3157_vm6, %v2830_v11, %v968_v62  ;;  %v1234_v17 = vshll.u32 %v2062_v24, 16  ;;  %v1106_v22 = vsub.s32 32, %v1105_v57 }
 0x1a9   :  { %2442 = vcosq.f32 %v971_v61  ;;  %v1046_v60 = vsel %vm1044_vm1, %v1045_v4, %v3152_v43  ;;  %v1108_v46 = vshll.u32 %v2573_v34, %v1105_v57  ;;  %v1111_v29 = vshll.u32 %v2574_v38, %v1105_v57 }
 0x1aa   :  { %v1233_v59 = vrot.slane %v1231_v13, 7  ;;  %2444 = vsinq.f32 %v971_v61  ;;  %v1047_v45 = vadd.s32 %v1046_v60, %v1042_v47  ;;  %v1109_v33 = vshrl.u32 %v2574_v38, %v1106_v22 }
 0x1ab   :  { %v1112_v27 = vshrl.u32 %v2575_v41, %v1106_v22  ;;  %v1114_v18 = vshll.u32 %v2575_v41, %v1105_v57  ;;  %v1115_v52 = vshrl.u32 %v2576_v42, %v1106_v22  ;;  %v1117_v35 = vshll.u32 %v2576_v42, %v1105_v57 }
 0x1ac   :  { %v1236_v36 = vor.u32 %v1234_v17, %v1233_v59  ;;  %v1238_v50 = vrot.slane %v1233_v59, 4  ;;  %v1048_v3 = vadd.s32 536870912, %v1047_v45  ;;  %v1110_v39 = vor.u32 %v1109_v33, %v1108_v46 }
 0x1ad   :  { %v1118_v2 = vshrl.u32 %v2577_v44, %v1106_v22  ;;  %v1113_v40 = vor.u32 %v1112_v27, %v1111_v29  ;;  %v1116_v31 = vor.u32 %v1115_v52, %v1114_v18  ;;  %v1120_v63 = vshll.u32 %v2577_v44, %v1105_v57  ;;  %v2419_v29 = vld [vmem:[#allocation10 + $0x30] sm:$0xff]  }
 0x1ae   :  { %v1237_v53 = vsel %vm2701_vm13, %v1229_v51, %v1236_v36  ;;  %v1247_v38 = vsel %vm2671_vm4, %v1238_v50, %v1246_v21  ;;  %v3191_v32 = vshrl.u32 %v1048_v3, 30  ;;  %v1121_v55 = vshrl.u32 %v2578_v54, %v1106_v22 }
 0x1af   :  { %1245 = vst [vmem:[#allocation3 + $0x4] sm:$0xf] %v1237_v53  ;;  %1248 = vst [vmem:[#allocation3 + $0x8] sm:$0x1] %v1247_v38  ;;  %v1119_v41 = vor.u32 %v1118_v2, %v1117_v35  ;;  %v976_v42 = vadd.s32 3, %v972_v7  ;;  %v1107_v5 = vshrl.u32 %v2573_v34, %v1106_v22  ;;  %vm1123_vm4 = vcmp.lt.s32.totalorder %v3176_v20, 1 }
 0x1b0   :  { %v1050_v15 = vshll.u32 %v3191_v32, 30  ;;  %v1122_v43 = vor.u32 %v1121_v55, %v1120_v63  ;;  %vm1126_vm11 = vcmp.lt.s32.totalorder %v3176_v20, 4  ;;  %vm1124_vm15 = vcmp.lt.s32.totalorder %v3176_v20, 2  ;;  %v1302_v22 = vld [vmem:[#allocation3] sm:$0xf] }
 0x1b1   :  { %vm1125_vm14 = vcmp.lt.s32.totalorder %v3176_v20, 3  ;;  %v1131_v8 = vsel %vm1123_vm4, %v1110_v39, %v1113_v40  ;;  %v1132_v49 = vsel %vm1126_vm11, %v1119_v41, 920167782  ;;  %v1128_v54 = vsel %vm1126_vm11, %v1116_v31, 2102212464  ;;  %v2421_v38 = vld [vmem:[#allocation10 + $0x28] sm:$0xff]  }
 0x1b2   :  { %v3201_v44 = vsub.s32 %v1047_v45, %v1050_v15  ;;  %v1133_v6 = vsel %vm1125_vm14, %v1116_v31, %v1132_v49  ;;  %v1135_v30 = vsel %vm1123_vm4, %v1113_v40, %v1116_v31  ;;  %v977_v24 = vand.u32 3, %v976_v42 }
 0x1b3   :  { %v1134_v34 = vsel %vm1124_vm15, %v1131_v8, %v1133_v6  ;;  %v1136_v7 = vsel %vm1126_vm11, %v1122_v43, 1326507024  ;;  %v1139_v14 = vshll.u32 %v1099_v26, 8  ;;  %v1127_v47 = vsel %vm1123_vm4, %v1107_v5, %v1110_v39  ;;  %v2423_v5 = vld [vmem:[#allocation10 + $0x20] sm:$0xff]  }
 0x1b4   :  { %v1053_v62 = vsub.s32 0, %v3201_v44  ;;  %v1137_v57 = vsel %vm1125_vm14, %v1119_v41, %v1136_v7  ;;  %v1129_v13 = vsel %vm1125_vm14, %v1113_v40, %v1128_v54  ;;  %v1197_v21 = vmax.f32 %v2811_v58, 0.0 }
 0x1b5   :  { %v1138_v61 = vsel %vm1124_vm15, %v1135_v30, %v1137_v57  ;;  %v3208_v4 = vmul.u32.u64.low %v1139_v14, %v1134_v34  ;;  %v3209_v17 = vmul.u32.u64.high %v1139_v14, %v1134_v34, %v3208_v4  ;;  %vm982_vm7 = vcmp.eq.s32.totalorder %v977_v24, 2 }
 0x1b6   :  { %v2443_v51 = vpop.eup %2442  ;;  %v3212_v59 = vld [vmem:[#allocation3 + $0x4] sm:$0xf]  ;;  %v2004_v45 = vmin.u32 %v1053_v62, %v3201_v44  ;;  %v3219_v36 = vmul.u32.u64.low %v1139_v14, %v1138_v61  ;;  %v3220_v50 = vmul.u32.u64.high %v1139_v14, %v1138_v61, %v3219_v36  ;;  %vm979_vm3 = vcmp.eq.s32.totalorder %v977_v24, 0  ;;  %v2427_v61 = vld [vmem:[#allocation10 + $0x10] sm:$0xff]  }
 0x1b7   :  { %v2445_v60 = vpop.eup %2444  ;;  %v983_v46 = vxor.u32 2147483648, %v2443_v51  ;;  %v3217_v33 = vcombine.low %v1302_v22, %v3212_v59  ;;  %v1130_v3 = vsel %vm1124_vm15, %v1127_v47, %v1129_v13  ;;  %vm978_vm12 = vcmp.lt.s32.totalorder %v977_v24, 2 }
 0x1b8   :  { %v980_v27 = vxor.u32 2147483648, %v2445_v60  ;;  %v1055_v52 = vclz %v2004_v45  ;;  %v1149_v39 = vadd.s32 1, %v3209_v17  ;;  %vm975_vm9 = vweird.f32 %v2830_v11 }
 0x1b9   :  { %v984_v18 = vsel %vm982_vm7, %v983_v46, %v2445_v60  ;;  %2271 = vmatmul.mubr.bf16.vlgmr.msra.gmra.mxu0 %v3217_v33  ;;  %v1202_v2 = vmul.f32 0.05, %v1197_v21  ;;  %v1146_v40 = vmul.u32 %v1139_v14, %v1130_v3  ;;  %vm1148_vm10 = vc.u32 %v3220_v50, %v3208_v4  ;;  %v2429_v21 = vld [vmem:[#allocation10 + $0x8] sm:$0xff]  }
 0x1ba   :  { %v981_v58 = vsel %vm979_vm3, %v2443_v51, %v980_v27  ;;  %2274 = vmatprep.mubr.msk.bf16.mxu0 %vm2571_vm0, %v2570_v0  ;;  %2311 = vmatpush3.bf16.msra.mxu0 %v3025_v48  ;;  %v2005_v53 = vadd.s32 4294967294, %v1055_v52  ;;  %v1150_v41 = vsel %vm1148_vm10, %v1149_v39, %v3209_v17  ;;  %v1043_v11 = vadd.s32 %v3151_v1, %v3140_v16  ;;  %v2425_v16 = vld [vmem:[#allocation10 + $0x18] sm:$0xff]   ;;  %v1293_v1 = vld [vmem:[#allocation3 + $0x8] sm:$0xe]  ;;  %v2431_v52 = vld [vmem:[#allocation10] sm:$0xff]  }
 0x1bb   :  { %v985_v35 = vsel %vm978_vm12, %v981_v58, %v984_v18  ;;  %2312 = vmatprep.subr.bf16.mxu0 %v2419_v29  ;;  %v1151_v55 = vadd.s32 %v1150_v41, %v1146_v40  ;;  %vm989_vm1 = vcmp.lt.s32.totalorder %v3003_v23, 0  ;;  %v1073_v45 = vsub.s32 4, %v3191_v32 }
 0x1bc   :  { %v986_v20 = vsel %vm975_vm9, nan, %v985_v35  ;;  %vm2006_vm6 = vcmp.lt.s32.totalorder %v2005_v53, 0  ;;  %vm1093_vm14 = vcmp.lt.s32.totalorder %v3050_v19, 0  ;;  %vm3265_vm3 = vcmp.le.f32.partialorder %v1091_v12, 0.7853982 }
 0x1bd   :  { %v1207_v31 = vadd.f32 %v1202_v2, %v986_v20  ;;  %v1058_v63 = vsel %vm2006_vm6, 0, %v2005_v53  ;;  %v1152_v15 = vadd.s32 536870912, %v1151_v55  ;;  %v1074_v3 = vsel %vm989_vm1, %v1073_v45, %v3191_v32 }
 0x1be   :  { %2313 = vmatpush3.bf16.msra.mxu0 %v2419_v29  ;;  %v1059_v42 = vsub.s32 32, %v1058_v63  ;;  %v1063_v26 = vsub.s32 4294967266, %v1058_v63  ;;  %v1060_v8 = vshll.u32 %v3201_v44, %v1058_v63  ;;  %vm1079_vm12 = vweird.f32 %v3003_v23 }
 0x1bf   :  { %v2063_v48 = vpack.c.bf16 %v1207_v31, %v1207_v31  ;;  %2314 = vmatprep.subr.bf16.mxu0 %v2421_v38  ;;  %v3236_v6 = vshrl.u32 %v1152_v15, 30  ;;  %v1359_v45 = vshll.u32 %v3217_v33, 16 }
 0x1c0   :  { %v1061_v49 = vshrl.u32 %v1043_v11, %v1059_v42  ;;  %v1064_v54 = vadd.s32 127, %v1063_v26  ;;  %v1198_v26 = vmax.f32 %v2820_v10, 0.0 }
 0x1c1   :  { %v1266_v43 = vshrl.u32 %v2063_v48, 16  ;;  %v1269_v24 = vshll.u32 %v2063_v48, 16  ;;  %v1154_v14 = vshll.u32 %v3236_v6, 30 }
 0x1c2   :  { %2315 = vmatpush3.bf16.msra.mxu0 %v2421_v38  ;;  %v1062_v34 = vor.u32 %v1061_v49, %v1060_v8  ;;  %v1065_v7 = vshll.u32 %v1064_v54, 23  ;;  %v1177_v8 = vsub.s32 4, %v3236_v6 }
 0x1c3   :  { %v3238_v30 = vrot.slane %v1266_v43, 7  ;;  %2316 = vmatprep.subr.bf16.mxu0 %v2423_v5  ;;  %v1155_v57 = vsub.s32 %v1151_v55, %v1154_v14 }
 0x1c4   :  { %v1066_v47 = vor.u32 4788187, %v1065_v7  ;;  %v1069_v13 = vcvt.s32.f32 %v1062_v34  ;;  %v1203_v34 = vmul.f32 0.05, %v1198_v26  ;;  %v1178_v14 = vsel %vm1093_vm14, %v1177_v8, %v3236_v6  ;;  %v2426_v26 = vld [vmem:[#allocation9 + $0x98] sm:$0xff]   ;;  %v1758_v8 = vld [vmem:[#allocation4 + $0x10] sm:$0xff] }
 0x1c5   :  { %v1271_v62 = vor.u32 %v1269_v24, %v3238_v30  ;;  %v1157_v17 = vsub.s32 0, %v1155_v57  ;;  %v1180_v12 = vsel %vm3265_vm3, 0, %v1178_v14  ;;  %v2432_v14 = vld [vmem:[#allocation9 + $0x80] sm:$0xff]  }
 0x1c6   :  { %2317 = vmatpush3.bf16.msra.mxu0 %v2423_v5  ;;  %v1067_v51 = vand.u32 2147483647, %v1066_v47 }
 0x1c7   :  { %v1294_v44 = vsel %vm2721_vm2, %v1271_v62, %v1293_v1  ;;  %2318 = vmatprep.subr.bf16.mxu0 %v2425_v16  ;;  %v2008_v60 = vmin.u32 %v1157_v17, %v1155_v57  ;;  %vm3248_vm2 = vcmp.le.f32.partialorder %v987_v28, 0.7853982  ;;  %v1147_v28 = vadd.s32 %v3208_v4, %v3220_v50 }
 0x1c8   :  { %1295 = vst [vmem:[#allocation3 + $0x8] sm:$0xe] %v1294_v44  ;;  %v1070_v22 = vmul.f32 %v1069_v13, %v1067_v51  ;;  %v1076_v2 = vsel %vm3248_vm2, 0, %v1074_v3  ;;  %v1272_v51 = vrot.slane %v3238_v30, 4 }
 0x1c9   :  { %v1159_v29 = vclz %v2008_v60  ;;  %v1080_v40 = vadd.s32 3, %v1076_v2 }
 0x1ca   :  { %2319 = vmatpush3.bf16.msra.mxu0 %v2425_v16  ;;  %v1071_v46 = vxor.u32 2147483648, %v1070_v22 }
 0x1cb   :  { %2320 = vmatprep.subr.bf16.mxu0 %v2427_v61  ;;  %v2009_v18 = vadd.s32 4294967294, %v1159_v29  ;;  %v1081_v63 = vand.u32 3, %v1080_v40  ;;  %v2420_v40 = vld [vmem:[#allocation9 + $0xb0] sm:$0xff]  }
 0x1cc   :  { %v1072_v27 = vsel %vm989_vm1, %v1071_v46, %v1070_v22  ;;  %v1199_v46 = vmax.f32 %v2826_v25, 0.0  ;;  %vm1183_vm1 = vweird.f32 %v3050_v19  ;;  %v1357_v25 = vshrl.u32 %v3217_v33, 16 }
 0x1cd   :  { %v1075_v36 = vsel %vm3248_vm2, %v3003_v23, %v1072_v27  ;;  %vm2010_vm4 = vcmp.lt.s32.totalorder %v2009_v18, 0  ;;  %vm1086_vm11 = vcmp.eq.s32.totalorder %v1081_v63, 2  ;;  %vm1083_vm15 = vcmp.eq.s32.totalorder %v1081_v63, 0 }
 0x1ce   :  { %2321 = vmatpush3.bf16.msra.mxu0 %v2427_v61  ;;  %2446 = vcosq.f32 %v1075_v36  ;;  %v1162_v58 = vsel %vm2010_vm4, 0, %v2009_v18  ;;  %vm1082_vm7 = vcmp.lt.s32.totalorder %v1081_v63, 2  ;;  %v1184_v23 = vadd.s32 3, %v1180_v12  ;;  %v1594_v12 = vld [vmem:[#allocation3] sm:$0xe] }
 0x1cf   :  { %2322 = vmatprep.subr.bf16.mxu0 %v2429_v21  ;;  %2448 = vsinq.f32 %v1075_v36  ;;  %v1163_v39 = vsub.s32 32, %v1162_v58  ;;  %v1167_v35 = vsub.s32 4294967266, %v1162_v58  ;;  %v1164_v53 = vshll.u32 %v1155_v57, %v1162_v58 }
 0x1d0   :  { %v1185_v17 = vand.u32 3, %v1184_v23  ;;  %v1204_v27 = vmul.f32 0.05, %v1199_v46  ;;  %vm3379_vm2 = vcmask 1041408  }
 0x1d1   :  { %v1165_v38 = vshrl.u32 %v1147_v28, %v1163_v39  ;;  %v1168_v20 = vadd.s32 127, %v1167_v35 }
 0x1d2   :  { %2323 = vmatpush3.bf16.msra.mxu0 %v2429_v21  ;;  %vm1190_vm9 = vcmp.eq.s32.totalorder %v1185_v17, 2  ;;  %vm1187_vm10 = vcmp.eq.s32.totalorder %v1185_v17, 0  ;;  %vm1186_vm6 = vcmp.lt.s32.totalorder %v1185_v17, 2 }
 0x1d3   :  { %2324 = vmatprep.subr.bf16.mxu0 %v2431_v52  ;;  %v1166_v31 = vor.u32 %v1165_v38, %v1164_v53  ;;  %v1169_v41 = vshll.u32 %v1168_v20, 23 }
 0x1d5   :  { %v1170_v32 = vor.u32 4788187, %v1169_v41  ;;  %v1173_v48 = vcvt.s32.f32 %v1166_v31  ;;  %v1297_v41 = vld [vmem:[#allocation3 + $0x10] sm:$0x3] }
 0x1d6   :  { %2325 = vmatpush3.bf16.msra.mxu0 %v2431_v52  ;;  %v1361_v52 = vrot.slane %v1359_v45, 1 }
 0x1d7   :  { %v1171_v55 = vand.u32 2147483647, %v1170_v32 }
 0x1d8   :  { %v1362_v39 = vor.u32 %v1361_v52, %v1357_v25 }
 0x1d9   :  { %v1174_v4 = vmul.f32 %v1173_v48, %v1171_v55  ;;  %v2422_v55 = vld [vmem:[#allocation9 + $0xa8] sm:$0xff]   ;;  %v2424_v48 = vld [vmem:[#allocation9 + $0xa0] sm:$0xff]  }
 0x1db   :  { %v2447_v11 = vpop.eup %2446  ;;  %v1175_v15 = vxor.u32 2147483648, %v1174_v4 }
 0x1dc   :  { %v2449_v50 = vpop.eup %2448  ;;  %v1087_v42 = vxor.u32 2147483648, %v2447_v11 }
 0x1dd   :  { %v1084_v5 = vxor.u32 2147483648, %v2449_v50  ;;  %v1176_v24 = vsel %vm1093_vm14, %v1175_v15, %v1174_v4  ;;  %v1757_v4 = vld [vmem:[#allocation4 + $0x8] sm:$0xff] }
 0x1de   :  { %v1088_v43 = vsel %vm1086_vm11, %v1087_v42, %v2449_v50  ;;  %v1179_v7 = vsel %vm3265_vm3, %v3050_v19, %v1176_v24  ;;  %v2416_v19 = vld [vmem:[#allocation9 + $0xb8] sm:$0xff]  }
 0x1df   :  { %v1085_v49 = vsel %vm1083_vm15, %v2447_v11, %v1084_v5  ;;  %2450 = vcosq.f32 %v1179_v7  ;;  %v1756_v11 = vld [vmem:[#allocation4] sm:$0xff]  ;;  %v1323_v50 = vld [vmem:[#allocation3 + $0x14] sm:$0x1] }
 0x1e0   :  { %v1089_v10 = vsel %vm1082_vm7, %v1085_v49, %v1088_v43  ;;  %2452 = vsinq.f32 %v1179_v7  ;;  %v1760_v37 = vpack.c.bf16 %v1757_v4, %v1756_v11  ;;  %v1759_v49 = vld [vmem:[#allocation4 + $0x18] sm:$0xff]  ;;  %v2046_v11 = vld [vmem:[%s3342_s6] ss:$0 sm:$0xff] }
 0x1e1   :  { %v1090_v16 = vsel %vm1079_vm12, nan, %v1089_v10  ;;  %v2428_v10 = vld [vmem:[#allocation9 + $0x90] sm:$0xff]   ;;  %v1761_v7 = vpack.c.bf16 %v1759_v49, %v1758_v8 }
 0x1e2   :  { %v1208_v1 = vadd.f32 %v1203_v34, %v1090_v16  ;;  %v2430_v16 = vld [vmem:[#allocation9 + $0x88] sm:$0xff]  }
 0x1e4   :  { %v2064_v62 = vpack.c.bf16 %v1208_v1, %v1208_v1 }
 0x1e6   :  { %v1274_v47 = vshrl.u32 %v2064_v62, 16  ;;  %v1277_v44 = vshll.u32 %v2064_v62, 16 }
 0x1e8   :  { %v1276_v57 = vrot.slane %v1274_v47, 7  ;;  %v2036_v47 = vcombine.low %v1594_v12, %v3212_v59 }
 0x1ea   :  { %v1279_v13 = vor.u32 %v1277_v44, %v1276_v57  ;;  %v1281_v33 = vrot.slane %v1276_v57, 4  ;;  %v1615_v44 = vrot.slane %v2036_v47, 1 }
 0x1ec   :  { %v1280_v61 = vsel %vm2701_vm13, %v1272_v51, %v1279_v13  ;;  %v2451_v22 = vpop.eup %2450 }
 0x1ed   :  { %1296 = vst [vmem:[#allocation3 + $0xc] sm:$0xf] %v1280_v61  ;;  %v2453_v60 = vpop.eup %2452  ;;  %v1191_v6 = vxor.u32 2147483648, %v2451_v22 }
 0x1ee   :  { %v1188_v21 = vxor.u32 2147483648, %v2453_v60 }
 0x1ef   :  { %v1192_v29 = vsel %vm1190_vm9, %v1191_v6, %v2453_v60 }
 0x1f0   :  { %v1189_v56 = vsel %vm1187_vm10, %v2451_v22, %v1188_v21 }
 0x1f1   :  { %v1193_v30 = vsel %vm1186_vm6, %v1189_v56, %v1192_v29 }
 0x1f2   :  { %v1194_v36 = vsel %vm1183_vm1, nan, %v1193_v30 }
 0x1f3   :  { %v1209_v3 = vadd.f32 %v1204_v27, %v1194_v36 }
 0x1f4   :  { %v3282_v18 = vld [vmem:[#allocation3 + $0x8] sm:$0xff]  }
 0x1f5   :  { %2275 = vmatmul.mubr.bf16.gmra.mxu0 %v3282_v18  ;;  %v1364_v58 = vshll.u32 %v3282_v18, 16  ;;  %v2065_v28 = vpack.c.bf16 %v1209_v3, %v1209_v3  ;;  %v1368_v9 = vshrl.u32 %v3282_v18, 16  ;;  %v1616_v57 = vrot.slane %v3282_v18, 1 }
 0x1f6   :  { %2278 = vmatprep.mubr.msk.bf16.mxu0 %vm2571_vm0, %v2570_v0 }
 0x1f7   :  { %v1366_v35 = vrot.slane %v1364_v58, 1  ;;  %v1283_v2 = vshrl.u32 %v2065_v28, 16  ;;  %v1286_v20 = vshll.u32 %v2065_v28, 16 }
 0x1f9   :  { %v1367_v53 = vsel %vm253_vm5, %v1362_v39, %v1366_v35  ;;  %v1285_v38 = vrot.slane %v1283_v2, 7  ;;  %v1370_v54 = vor.u32 %v1368_v9, %v1366_v35 }
 0x1fa   :  { %2243 = vmatmul.mubr.bf16.vlgmr.msra.gmra.mxu1 %v1367_v53  ;;  %v2055_v53 = vld [vmem:[%s3344_s8] ss:$0 sm:$0xff] }
 0x1fb   :  { %2283 = vmatpush3.bf16.msra.mxu1 %v2416_v19  ;;  %2246 = vmatprep.mubr.msk.bf16.mxu1 %vm2571_vm0, %v2570_v0  ;;  %v1288_v31 = vor.u32 %v1286_v20, %v1285_v38 }
 0x1fc   :  { %2284 = vmatprep.subr.bf16.mxu1 %v2570_v0 }
 0x1fd   :  { %v1289_v32 = vsel %vm2701_vm13, %v1281_v33, %v1288_v31  ;;  %vm3377_vm13 = vcmask 1046528  }
 0x1fe   :  { %v1298_v63 = vsel %vm2744_vm8, %v1289_v32, %v1297_v41  ;;  %v1617_v23 = vsel %vm3377_vm13, %v1615_v44, %v1616_v57  ;;  %vm3378_vm8 = vmmov %vm3377_vm13  ;;  %v2045_v41 = vld [vmem:[%s3341_s5] ss:$0 sm:$0xff]  ;;  %s2579_s5 = smov [#allocation12]  }
 0x1ff   :  { %2285 = vmatpush3.bf16.msra.mxu1 %v2420_v40  ;;  %1299 = vst [vmem:[#allocation3 + $0x10] sm:$0x3] %v1298_v63  ;;  %v2056_v32 = vld [vmem:[%s3345_s9] ss:$0 sm:$0xff]  ;;  %s1937_s6 = sshll.u32 %s2579_s5, 4  ;;  %s1938_s6 = int_to_ptr.vmem [resolvable:$true] %s1937_s6 }
 0x200   :  { %2286 = vmatprep.subr.bf16.mxu1 %v2570_v0  ;;  %s2534_s8 = scalar_lea.vmem %s1938_s6, 512  ;;  %p2539_p7 = scmp.lt.s32.totalorder %s1938_s6, %s1938_s6 }
 0x201   :  { %p2535_p6 = scmp.ne.s32.totalorder %s1938_s6, %s2534_s8  ;;  %p2540_p8 = scmp.lt.s32.totalorder %s2534_s8, %s2534_s8 }
 0x203   :  { %2287 = vmatpush3.bf16.msra.mxu1 %v2422_v55  ;;  %p2541_p9 = por %p2540_p8, %p2539_p7 }
 0x204   :  { %2288 = vmatprep.subr.bf16.mxu1 %v2570_v0 }
 0x205   :  { %p2542_p10 = pnand %p2541_p9, %p2535_p6 }
 0x206   :  { %v1306_v42 = vld [vmem:[#allocation3 + $0x10] sm:$0xf] }
 0x207   :  { %2289 = vmatpush3.bf16.msra.mxu1 %v2424_v48  ;;  %v2018_v5 = vcombine.low %v1306_v42, %v1323_v50  ;;  %v2027_v15 = vcombine.low %v1306_v42, %v1306_v42 }
 0x208   :  { %2290 = vmatprep.subr.bf16.mxu1 %v2570_v0 }
 0x209   :  { %2279 = vmatmul.mubr.bf16.gmra.mxu0 %v2027_v15  ;;  %v1372_v43 = vshll.u32 %v2018_v5, 16  ;;  %v1376_v1 = vshrl.u32 %v2018_v5, 16  ;;  %v1618_v51 = vrot.slane %v2018_v5, 1 }
 0x20a   :  { %2326 = vmatprep.mubr.bf16.mxu0 %v1760_v37 }
 0x20b   :  { %2291 = vmatpush3.bf16.msra.mxu1 %v2426_v26  ;;  %v1374_v24 = vrot.slane %v1372_v43, 1  ;;  %v1619_v13 = vsel %vm3378_vm8, %v1616_v57, %v1618_v51 }
 0x20c   :  { %2292 = vmatprep.subr.bf16.mxu1 %v2570_v0 }
 0x20d   :  { %v1375_v34 = vsel %vm253_vm5, %v1370_v54, %v1374_v24  ;;  %v1378_v62 = vor.u32 %v1376_v1, %v1374_v24 }
 0x20e   :  { %2247 = vmatmul.mubr.bf16.gmra.mxu1 %v1375_v34 }
 0x20f   :  { %2250 = vmatprep.mubr.msk.bf16.mxu1 %vm2571_vm0, %v2570_v0  ;;  %2293 = vmatpush3.bf16.msra.mxu1 %v2428_v10 }
 0x210   :  { %2294 = vmatprep.subr.bf16.mxu1 %v2570_v0 }
 0x211   :  { %2327 = vmatmul.mubr.bf16.vlgmr.msra.gmra.mxu0 %v1761_v7 }
 0x213   :  { %2295 = vmatpush3.bf16.msra.mxu1 %v2430_v16 }
 0x214   :  { %2296 = vmatprep.subr.bf16.mxu1 %v2570_v0 }
 0x216   :  { %2251 = vmatmul.mubr.bf16.gmra.mxu1 %v1378_v62 }
 0x217   :  { %2297 = vmatpush3.bf16.msra.mxu1 %v2432_v14  ;;  %2298 = vmatprep.mubr.msk.bf16.mxu1 %vm2571_vm0, %v2570_v0 }
 0x21e   :  { %2299 = vmatmul.mubr.bf16.vlgmr.msra.gmra.mxu1 %v1617_v23 }
 0x21f   :  { %2302 = vmatprep.mubr.msk.bf16.mxu1 %vm2571_vm0, %v2570_v0 }
 0x226   :  { %2303 = vmatmul.mubr.bf16.gmra.mxu1 %v1619_v13 }
 0x227   :  { %2306 = vmatprep.mubr.msk.bf16.mxu1 %vm2571_vm0, %v2570_v0 }
 0x22e   :  { %2307 = vmatmul.mubr.bf16.gmra.mxu1 %v1618_v51 }
 0x279   :  { %v1572_v61 = vpop.f32.mrf.mxu0 }
 0x27b   :  { %v2272_v17 = vpop.f32.mrf.mxu0 }
 0x27d   :  { %v1575_v59 = vpop.f32.mrf.mxu0 }
 0x27f   :  { %v2273_v22 = vpop.f32.mrf.mxu0 }
 0x2b5   :  { %v1580_v60 = vpop.f32.mrf.mxu0 }
 0x2b7   :  { %v2276_v6 = vpop.f32.mrf.mxu0 }
 0x2b9   :  { %v1583_v46 = vpop.f32.mrf.mxu0 }
 0x2ba   :  { %v1464_v21 = vpop.f32.mrf.mxu1 }
 0x2bb   :  { %v2277_v45 = vpop.f32.mrf.mxu0  ;;  %v1573_v40 = vadd.f32 %v1572_v61, %v1464_v21 }
 0x2bc   :  { %v2244_v29 = vpop.f32.mrf.mxu1 }
 0x2be   :  { %v1467_v56 = vpop.f32.mrf.mxu1 }
 0x2bf   :  { %v1576_v48 = vadd.f32 %v1575_v59, %v1467_v56 }
 0x2c0   :  { %v2245_v30 = vpop.f32.mrf.mxu1 }
 0x2c9   :  { %v1588_v27 = vpop.f32.mrf.mxu0 }
 0x2cb   :  { %v2280_v36 = vpop.f32.mrf.mxu0 }
 0x2cd   :  { %v1591_v18 = vpop.f32.mrf.mxu0 }
 0x2ce   :  { %v1472_v52 = vpop.f32.mrf.mxu1 }
 0x2cf   :  { %v2281_v3 = vpop.f32.mrf.mxu0  ;;  %v1581_v8 = vadd.f32 %v1580_v60, %v1472_v52 }
 0x2d0   :  { %v2248_v25 = vpop.f32.mrf.mxu1 }
 0x2d1   :  { %v2328_v58 = vpop.f32.mrf.mxu0 }
 0x2d2   :  { %v1475_v0 = vpop.f32.mrf.mxu1  ;;  %v1884_v42 = vmul.f32 %v2328_v58, %v2055_v53 }
 0x2d3   :  { %v1860_v35 = vpop.f32.mrf.mxu0  ;;  %v1584_v12 = vadd.f32 %v1583_v46, %v1475_v0 }
 0x2d4   :  { %v2249_v28 = vpop.f32.mrf.mxu1  ;;  %v1882_v33 = vmul.f32 %v2055_v53, %v1860_v35  ;;  %v1895_v54 = vadd.f32 %v2056_v32, %v1884_v42 }
 0x2d5   :  { %v2329_v38 = vpop.f32.mrf.mxu0 }
 0x2d6   :  { %v1480_v39 = vpop.f32.mrf.mxu1  ;;  %v1893_v26 = vadd.f32 %v2056_v32, %v1882_v33  ;;  %v1885_v15 = vmul.f32 %v2329_v38, %v2055_v53  ;;  %v1910_v57 = vrot.slane %v1895_v54, 6 }
 0x2d7   :  { %v1863_v63 = vpop.f32.mrf.mxu0  ;;  %v1589_v6 = vadd.f32 %v1588_v27, %v1480_v39 }
 0x2d8   :  { %v2252_v19 = vpop.f32.mrf.mxu1  ;;  %v1883_v37 = vmul.f32 %v2055_v53, %v1863_v63  ;;  %v1896_v7 = vadd.f32 %v2056_v32, %v1885_v15 }
 0x2da   :  { %v1483_v2 = vpop.f32.mrf.mxu1  ;;  %v1894_v34 = vadd.f32 %v2056_v32, %v1883_v37  ;;  %v1911_v13 = vrot.slane %v1896_v7, 6 }
 0x2dc   :  { %v2253_v20 = vpop.f32.mrf.mxu1  ;;  %v1912_v46 = vsel %vm3379_vm2, %v1910_v57, %v1911_v13 }
 0x2de   :  { %v1705_v31 = vpop.f32.mrf.mxu1 }
 0x2df   :  { %v1727_v55 = vadd.f32 %v1705_v31, %v1573_v40 }
 0x2e0   :  { %v2300_v4 = vpop.f32.mrf.mxu1 }
 0x2e1   :  { %v1739_v50 = vmul.f32 %v2045_v41, %v1727_v55 }
 0x2e2   :  { %v1708_v5 = vpop.f32.mrf.mxu1 }
 0x2e3   :  { %v1751_v9 = vadd.f32 %v2046_v11, %v1739_v50  ;;  %v1728_v43 = vadd.f32 %v1708_v5, %v1576_v48 }
 0x2e4   :  { %v2301_v49 = vpop.f32.mrf.mxu1 }
 0x2e5   :  { %v1897_v24 = vadd.f32 %v1893_v26, %v1751_v9  ;;  %v1740_v10 = vmul.f32 %v2045_v41, %v1728_v43 }
 0x2e6   :  { %v1713_v16 = vpop.f32.mrf.mxu1 }
 0x2e7   :  { %vm1899_vm0 = vcmp.ge.f32.partialorder %v1897_v24, 0.0  ;;  %v1901_v1 = vmul.f32 0.2, %v1897_v24  ;;  %v1752_v14 = vadd.f32 %v2046_v11, %v1740_v10  ;;  %v1729_v62 = vadd.f32 %v1713_v16, %v1581_v8 }
 0x2e8   :  { %v2304_v47 = vpop.f32.mrf.mxu1 }
 0x2e9   :  { %v1903_v44 = vsel %vm1899_vm0, %v1897_v24, %v1901_v1  ;;  %v1898_v23 = vadd.f32 %v1894_v34, %v1752_v14  ;;  %v1741_v51 = vmul.f32 %v2045_v41, %v1729_v62 }
 0x2ea   :  { %1905 = vst [vmem:[#allocation12] sm:$0xff] %v1903_v44  ;;  %v1716_v61 = vpop.f32.mrf.mxu1 }
 0x2eb   :  { %vm1900_vm5 = vcmp.ge.f32.partialorder %v1898_v23, 0.0  ;;  %v1902_v17 = vmul.f32 0.2, %v1898_v23  ;;  %v1753_v59 = vadd.f32 %v2046_v11, %v1741_v51  ;;  %v1730_v22 = vadd.f32 %v1716_v61, %v1584_v12 }
 0x2ec   :  { %v2305_v60 = vpop.f32.mrf.mxu1 }
 0x2ed   :  { %v1904_v21 = vsel %vm1900_vm5, %v1898_v23, %v1902_v17  ;;  %v1916_v45 = vadd.f32 %v1910_v57, %v1753_v59  ;;  %v1742_v29 = vmul.f32 %v2045_v41, %v1730_v22 }
 0x2ee   :  { %1906 = vst [vmem:[#allocation12 + $0x8] sm:$0xff] %v1904_v21  ;;  %v1721_v56 = vpop.f32.mrf.mxu1 }
 0x2ef   :  { %vm1919_vm4 = vcmp.ge.f32.partialorder %v1916_v45, 0.0  ;;  %v1922_v30 = vmul.f32 0.2, %v1916_v45  ;;  %v1754_v36 = vadd.f32 %v2046_v11, %v1742_v29  ;;  %v1731_v18 = vadd.f32 %v1721_v56, %v1589_v6 }
 0x2f0   :  { %v2308_v52 = vpop.f32.mrf.mxu1 }
 0x2f1   :  { %v1925_v3 = vsel %vm1919_vm4, %v1916_v45, %v1922_v30  ;;  %v1917_v25 = vadd.f32 %v1912_v46, %v1754_v36  ;;  %v1743_v0 = vmul.f32 %v2045_v41, %v1731_v18 }
 0x2f2   :  { %1929 = vst [vmem:[#allocation12 + $0xe] sm:$0xfc] %v1925_v3  ;;  %v1724_v58 = vpop.f32.mrf.mxu1 }
 0x2f3   :  { %vm1920_vm11 = vcmp.ge.f32.partialorder %v1917_v25, 0.0  ;;  %v1923_v28 = vmul.f32 0.2, %v1917_v25  ;;  %v1755_v27 = vadd.f32 %v2046_v11, %v1743_v0 }
 0x2f4   :  { %v2309_v39 = vpop.f32.mrf.mxu1 }
 0x2f5   :  { %v1926_v35 = vsel %vm1920_vm11, %v1917_v25, %v1923_v28  ;;  %v1918_v19 = vadd.f32 %v1911_v13, %v1755_v27 }
 0x2f6   :  { %1930 = vst [vmem:[#allocation12 + $0x16] sm:$0xff] %v1926_v35 }
 0x2f7   :  { %vm1921_vm15 = vcmp.ge.f32.partialorder %v1918_v19, 0.0  ;;  %v1924_v2 = vmul.f32 0.2, %v1918_v19 }
 0x2f9   :  { %v1927_v53 = vsel %vm1921_vm15, %v1918_v19, %v1924_v2 }
 0x2fa   :  { %1931 = vst [vmem:[#allocation12 + $0x1e] sm:$0x3] %v1927_v53 }
 0x2fb   :  { %2545 = shalt.err (!%p2542_p10)
}
 0x2fc   :  { %1943 = dma.vmem_to_hbm [thread:$0]  %s1938_s6, 512, %s3346_s10, [#allocation6], %s2566_s23, %s2566_s23, %s2567_s24  }
 0x2fd   :  { %2560 = dma.done.wait [#allocation6], 512  }
 0x2fe   :  { %2561 = vsyncadd [#allocation6], 4294966784 }
 0x2ff   :  { %1947 = vsyncpa [#allocation5], 1 }
 0x300   :  { %1948 = vsyncpa [#allocation8], 1 }
 0x301   :  { %1949 = vsyncpa [#allocation11], 1 }
 0x302   :  { %1950 = vsyncpa [#allocation6], 1 }

</bundles_post_ra>
